<compile_context>
chip_gen: v7x
topology: tpu7x:2x2x1
jax: 0.10.0
libtpu: 0.0.40
codegen_flags: <defaults>
</compile_context>

<pallas_src>
import functools

import jax
import jax.numpy as jnp
import numpy as np
from jax import lax
from jax.experimental import pallas as pl
from jax.experimental.pallas import tpu as pltpu


_SUBLANE = 8  # f32 sublane width


# ---------------------------------------------------------------------------
# Fused Pallas kernel
# ---------------------------------------------------------------------------
def _lstm_cell(x_t, h, c, wih, whh, b):
    """One fused-gate LSTM cell step.

    x_t: (B, I)   h, c: (B, H)
    wih: (I, 4H)  whh: (H, 4H)  b: (1, 4H)   gate order [i, f, g, o]
    """
    H = h.shape[-1]
    gates = (jnp.dot(x_t, wih, preferred_element_type=jnp.float32)
             + jnp.dot(h, whh, preferred_element_type=jnp.float32)
             + b)
    i = jax.nn.sigmoid(gates[:, 0 * H:1 * H])
    f = jax.nn.sigmoid(gates[:, 1 * H:2 * H])
    g = jnp.tanh(gates[:, 2 * H:3 * H])
    o = jax.nn.sigmoid(gates[:, 3 * H:4 * H])
    c_new = f * c + i * g
    h_new = o * jnp.tanh(c_new)
    return h_new, c_new


def _make_multimodal_kernel(T, B, Nl, layer_dims):
    """layer_dims = [(input, hidden)] for [fused(lstm01+lstm02), *mid, lstm03]."""
    n_layers = len(layer_dims)

    def kernel(x_ref, *refs):
        w_refs = refs[:3 * n_layers]
        out_ref = refs[3 * n_layers]

        # Load all weights once; they stay resident for the whole sequence.
        weights = [(w_refs[3 * li + 0][...],
                    w_refs[3 * li + 1][...],
                    w_refs[3 * li + 2][...]) for li in range(n_layers)]

        # Zero initial hidden / cell state for every layer (PyTorch default).
        hs = [jnp.zeros((B, h), jnp.float32) for (_, h) in layer_dims]
        cs = [jnp.zeros((B, h), jnp.float32) for (_, h) in layer_dims]

        for t in range(T):                        # fully unrolled time loop
            z = x_ref[t]                          # (B, Nl+1)
            for li in range(n_layers):
                hs[li], cs[li] = _lstm_cell(z, hs[li], cs[li], *weights[li])
                z = hs[li]
            res_t = z                             # (B, Nl+1) from lstm03

            # Fused epilogue: softmax over the first Nl lanes, last lane raw.
            logits = res_t[:, :Nl]
            m = jnp.max(logits, axis=-1, keepdims=True)
            e = jnp.exp(logits - m)
            sm = e / jnp.sum(e, axis=-1, keepdims=True)
            out_ref[t] = jnp.concatenate([sm, res_t[:, Nl:]], axis=-1)

    return kernel


def _fuse_first_stage(p01, p02):
    """Fuse lstm01 (input Nl) and lstm02 (input 1) into one LSTM cell.

    Block-diagonal, gate-interleaved layout so that the fused hidden state is
    exactly [h1 | h2] (== torch.cat([y1, y2], dim=2) per step).
    """
    wih1, whh1, b1 = p01          # (Nl,4h1), (h1,4h1), (1,4h1)
    wih2, whh2, b2 = p02          # (1, 4h2), (h2,4h2), (1,4h2)
    Nl = wih1.shape[0]
    h1 = whh1.shape[0]
    h2 = whh2.shape[0]
    H = h1 + h2
    wih = jnp.zeros((Nl + 1, 4 * H), jnp.float32)
    whh = jnp.zeros((H, 4 * H), jnp.float32)
    b = jnp.zeros((1, 4 * H), jnp.float32)
    for g in range(4):                           # gate order [i, f, g, o]
        c0 = g * H
        wih = wih.at[:Nl, c0:c0 + h1].set(wih1[:, g * h1:(g + 1) * h1])
        wih = wih.at[Nl:, c0 + h1:c0 + H].set(wih2[:, g * h2:(g + 1) * h2])
        whh = whh.at[:h1, c0:c0 + h1].set(whh1[:, g * h1:(g + 1) * h1])
        whh = whh.at[h1:, c0 + h1:c0 + H].set(whh2[:, g * h2:(g + 1) * h2])
        b = b.at[:, c0:c0 + h1].set(b1[:, g * h1:(g + 1) * h1])
        b = b.at[:, c0 + h1:c0 + H].set(b2[:, g * h2:(g + 1) * h2])
    return wih, whh, b


def multimodal_forward(kparams, x, *, Nl):
    """x: (B, T, Nl+1) -> (res1 (B,T,Nl) softmaxed, res2 (B,T,1))."""
    B, T, F = x.shape
    assert F == Nl + 1

    fused01 = _fuse_first_stage(kparams["lstm01"], kparams["lstm02"])
    layers = [fused01, *kparams["lstms"], kparams["lstm03"]]
    layer_dims = [(wih.shape[0], wih.shape[1] // 4) for (wih, _, _) in layers]
    flat_w = [w for layer in layers for w in layer]

    # Pad batch to a multiple of the sublane width so every vreg row is used.
    B_pad = ((B + _SUBLANE - 1) // _SUBLANE) * _SUBLANE
    x_tbf = jnp.transpose(x.astype(jnp.float32), (1, 0, 2))     # (T, B, F)
    if B_pad != B:
        x_tbf = jnp.pad(x_tbf, ((0, 0), (0, B_pad - B), (0, 0)))

    n_in = 1 + len(flat_w)
    out_tbf = pl.pallas_call(
        _make_multimodal_kernel(T, B_pad, Nl, layer_dims),
        out_shape=jax.ShapeDtypeStruct((T, B_pad, Nl + 1), jnp.float32),
        in_specs=[pl.BlockSpec(memory_space=pltpu.MemorySpace.VMEM)] * n_in,
        out_specs=pl.BlockSpec(memory_space=pltpu.MemorySpace.VMEM),
    )(x_tbf, *flat_w)

    res = jnp.transpose(out_tbf[:, :B, :], (1, 0, 2))            # (B, T, Nl+1)
    return res[:, :, :Nl], res[:, :, Nl:]


# ---------------------------------------------------------------------------
# Parameter setup (PyTorch-shaped: W_ih (4H,I), W_hh (4H,H), biases (4H,))
# ---------------------------------------------------------------------------
def init_lstm_params(key, input_size, hidden_size):
    k = 1.0 / np.sqrt(hidden_size)
    k1, k2, k3, k4 = jax.random.split(key, 4)
    w_ih = jax.random.uniform(k1, (4 * hidden_size, input_size), jnp.float32, -k, k)
    w_hh = jax.random.uniform(k2, (4 * hidden_size, hidden_size), jnp.float32, -k, k)
    b_ih = jax.random.uniform(k3, (4 * hidden_size,), jnp.float32, -k, k)
    b_hh = jax.random.uniform(k4, (4 * hidden_size,), jnp.float32, -k, k)
    # Kernel form (fused gates): gates = x @ W_ih.T + h @ W_hh.T + (b_ih + b_hh)
    wih = jnp.transpose(w_ih)                      # (I, 4H)
    whh = jnp.transpose(w_hh)                      # (H, 4H)
    b = (b_ih + b_hh).reshape(1, 4 * hidden_size)  # (1, 4H)
    return (wih, whh, b), (w_ih, w_hh, b_ih, b_hh)


def build_params(Nl, h1_num, h2_num, hiddens, key):
    keys = jax.random.split(key, 3 + len(hiddens))
    p01, r01 = init_lstm_params(keys[0], Nl, h1_num)
    p02, r02 = init_lstm_params(keys[1], 1, h2_num)
    start = h1_num + h2_num
    mids, rmids = [], []
    for i, h in enumerate(hiddens):
        p, r = init_lstm_params(keys[2 + i], start, h)
        mids.append(p)
        rmids.append(r)
        start = h
    p03, r03 = init_lstm_params(keys[-1], start, Nl + 1)
    kparams = dict(lstm01=p01, lstm02=p02, lstms=mids, lstm03=p03)
    rparams = dict(lstm01=r01, lstm02=r02, lstms=rmids, lstm03=r03)
    return kparams, rparams


# ---------------------------------------------------------------------------
# Pure-JAX reference (mirrors torch.nn.LSTM semantics) for validation
# ---------------------------------------------------------------------------
def lstm_layer_ref(x, params):
    w_ih, w_hh, b_ih, b_hh = params
    B, T, I = x.shape
    H = w_hh.shape[1]

    def step(carry, x_t):
        h, c = carry
        gates = x_t @ w_ih.T + b_ih + h @ w_hh.T + b_hh
        i, f, g, o = jnp.split(gates, 4, axis=-1)
        i, f, o = jax.nn.sigmoid(i), jax.nn.sigmoid(f), jax.nn.sigmoid(o)
        g = jnp.tanh(g)
        c = f * c + i * g
        h = o * jnp.tanh(c)
        return (h, c), h

    carry = (jnp.zeros((B, H), jnp.float32), jnp.zeros((B, H), jnp.float32))
    _, ys = lax.scan(step, carry, jnp.swapaxes(x, 0, 1))
    return jnp.swapaxes(ys, 0, 1)


def multimodal_ref(rparams, x):
    x1 = x[:, :, :-1]
    x2 = x[:, :, -1:]
    y1 = lstm_layer_ref(x1, rparams["lstm01"])
    y2 = lstm_layer_ref(x2, rparams["lstm02"])
    x3 = jnp.concatenate([y1, y2], axis=2)
    for p in rparams["lstms"]:
        x3 = lstm_layer_ref(x3, p)
    res = lstm_layer_ref(x3, rparams["lstm03"])
    res1 = jax.nn.softmax(res[:, :, :-1], axis=2)
    res2 = res[:, :, -1:]
    return res1, res2


# ---------------------------------------------------------------------------
if __name__ == "__main__":
    Nl, h1_num, h2_num, hiddens = 5, 8, 8, [16]
    B, T = 2, 8

    key = jax.random.PRNGKey(0)
    kx, kp = jax.random.split(key)
    x = jax.random.normal(kx, (B, T, Nl + 1), jnp.float32)

    kparams, rparams = build_params(Nl, h1_num, h2_num, hiddens, kp)

    fwd = jax.jit(functools.partial(multimodal_forward, Nl=Nl))
    res1, res2 = fwd(kparams, x)
    res1 = jax.block_until_ready(res1)
    res2 = jax.block_until_ready(res2)

    ref1, ref2 = multimodal_ref(rparams, x)
    np.testing.assert_allclose(np.asarray(res1), np.asarray(ref1), rtol=1e-5, atol=1e-5)
    np.testing.assert_allclose(np.asarray(res2), np.asarray(ref2), rtol=1e-5, atol=1e-5)
    assert res1.shape == (B, T, Nl) and res2.shape == (B, T, 1)

    print("KERNEL_OK")
</pallas_src>

<mosaic_0001>
module attributes {stable_mosaic.version = 11 : i64} {
  func.func @kernel(%arg0: memref<8x8x6xf32, #tpu.memory_space<vmem>>, %arg1: memref<6x64xf32, #tpu.memory_space<vmem>>, %arg2: memref<16x64xf32, #tpu.memory_space<vmem>>, %arg3: memref<1x64xf32, #tpu.memory_space<vmem>>, %arg4: memref<16x64xf32, #tpu.memory_space<vmem>>, %arg5: memref<16x64xf32, #tpu.memory_space<vmem>>, %arg6: memref<1x64xf32, #tpu.memory_space<vmem>>, %arg7: memref<16x24xf32, #tpu.memory_space<vmem>>, %arg8: memref<6x24xf32, #tpu.memory_space<vmem>>, %arg9: memref<1x24xf32, #tpu.memory_space<vmem>>, %arg10: memref<8x8x6xf32, #tpu.memory_space<vmem>>) attributes {dimension_semantics = [], scalar_prefetch = 0 : i64, scratch_operands = 0 : i64, tpu.core_type = #tpu.core_type<tc>} {
    %c0 = arith.constant 0 : index
    %c0_0 = arith.constant 0 : index
    %0 = vector.load %arg1[%c0, %c0_0] : memref<6x64xf32, #tpu.memory_space<vmem>>, vector<6x64xf32>
    %c0_1 = arith.constant 0 : index
    %c0_2 = arith.constant 0 : index
    %1 = vector.load %arg2[%c0_1, %c0_2] : memref<16x64xf32, #tpu.memory_space<vmem>>, vector<16x64xf32>
    %c0_3 = arith.constant 0 : index
    %c0_4 = arith.constant 0 : index
    %2 = vector.load %arg3[%c0_3, %c0_4] : memref<1x64xf32, #tpu.memory_space<vmem>>, vector<1x64xf32>
    %c0_5 = arith.constant 0 : index
    %c0_6 = arith.constant 0 : index
    %3 = vector.load %arg4[%c0_5, %c0_6] : memref<16x64xf32, #tpu.memory_space<vmem>>, vector<16x64xf32>
    %c0_7 = arith.constant 0 : index
    %c0_8 = arith.constant 0 : index
    %4 = vector.load %arg5[%c0_7, %c0_8] : memref<16x64xf32, #tpu.memory_space<vmem>>, vector<16x64xf32>
    %c0_9 = arith.constant 0 : index
    %c0_10 = arith.constant 0 : index
    %5 = vector.load %arg6[%c0_9, %c0_10] : memref<1x64xf32, #tpu.memory_space<vmem>>, vector<1x64xf32>
    %c0_11 = arith.constant 0 : index
    %c0_12 = arith.constant 0 : index
    %6 = vector.load %arg7[%c0_11, %c0_12] : memref<16x24xf32, #tpu.memory_space<vmem>>, vector<16x24xf32>
    %c0_13 = arith.constant 0 : index
    %c0_14 = arith.constant 0 : index
    %7 = vector.load %arg8[%c0_13, %c0_14] : memref<6x24xf32, #tpu.memory_space<vmem>>, vector<6x24xf32>
    %c0_15 = arith.constant 0 : index
    %c0_16 = arith.constant 0 : index
    %8 = vector.load %arg9[%c0_15, %c0_16] : memref<1x24xf32, #tpu.memory_space<vmem>>, vector<1x24xf32>
    %cst = arith.constant 0.000000e+00 : f32
    %9 = vector.broadcast %cst : f32 to vector<8x16xf32>
    %cst_17 = arith.constant 0.000000e+00 : f32
    %10 = vector.broadcast %cst_17 : f32 to vector<8x16xf32>
    %cst_18 = arith.constant 0.000000e+00 : f32
    %11 = vector.broadcast %cst_18 : f32 to vector<8x6xf32>
    %cst_19 = arith.constant 0.000000e+00 : f32
    %12 = vector.broadcast %cst_19 : f32 to vector<8x16xf32>
    %cst_20 = arith.constant 0.000000e+00 : f32
    %13 = vector.broadcast %cst_20 : f32 to vector<8x16xf32>
    %cst_21 = arith.constant 0.000000e+00 : f32
    %14 = vector.broadcast %cst_21 : f32 to vector<8x6xf32>
    %c0_22 = arith.constant 0 : index
    %c0_23 = arith.constant 0 : index
    %c0_24 = arith.constant 0 : index
    %15 = vector.load %arg0[%c0_22, %c0_23, %c0_24] : memref<8x8x6xf32, #tpu.memory_space<vmem>>, vector<1x8x6xf32>
    %16 = vector.shape_cast %15 : vector<1x8x6xf32> to vector<8x6xf32>
    %cst_25 = arith.constant dense<0.000000e+00> : vector<8x64xf32>
    %17 = tpu.matmul %16, %0, %cst_25 {dimension_numbers = #tpu.dot_dimension_numbers<[1], [0], [0], [1], [0, 0, 1, 1], [], []>} : vector<8x6xf32>, vector<6x64xf32>, vector<8x64xf32> -> vector<8x64xf32>
    %cst_26 = arith.constant dense<0.000000e+00> : vector<8x64xf32>
    %18 = tpu.matmul %9, %1, %cst_26 {dimension_numbers = #tpu.dot_dimension_numbers<[1], [0], [0], [1], [0, 0, 1, 1], [], []>} : vector<8x16xf32>, vector<16x64xf32>, vector<8x64xf32> -> vector<8x64xf32>
    %19 = arith.addf %17, %18 : vector<8x64xf32>
    %20 = vector.broadcast %2 : vector<1x64xf32> to vector<8x64xf32>
    %21 = arith.addf %19, %20 : vector<8x64xf32>
    %22 = vector.extract_strided_slice %21 {offsets = [0, 0], sizes = [8, 16], strides = [1, 1]} : vector<8x64xf32> to vector<8x16xf32>
    %23 = arith.negf %22 : vector<8x16xf32>
    %24 = math.exp %23 : vector<8x16xf32>
    %cst_27 = arith.constant 1.000000e+00 : f32
    %25 = vector.broadcast %cst_27 : f32 to vector<8x16xf32>
    %26 = arith.addf %25, %24 : vector<8x16xf32>
    %27 = arith.divf %25, %26 : vector<8x16xf32>
    %28 = vector.extract_strided_slice %21 {offsets = [0, 16], sizes = [8, 16], strides = [1, 1]} : vector<8x64xf32> to vector<8x16xf32>
    %29 = arith.negf %28 : vector<8x16xf32>
    %30 = math.exp %29 : vector<8x16xf32>
    %cst_28 = arith.constant 1.000000e+00 : f32
    %31 = vector.broadcast %cst_28 : f32 to vector<8x16xf32>
    %32 = arith.addf %31, %30 : vector<8x16xf32>
    %33 = arith.divf %31, %32 : vector<8x16xf32>
    %34 = vector.extract_strided_slice %21 {offsets = [0, 32], sizes = [8, 16], strides = [1, 1]} : vector<8x64xf32> to vector<8x16xf32>
    %35 = math.tanh %34 : vector<8x16xf32>
    %36 = vector.extract_strided_slice %21 {offsets = [0, 48], sizes = [8, 16], strides = [1, 1]} : vector<8x64xf32> to vector<8x16xf32>
    %37 = arith.negf %36 : vector<8x16xf32>
    %38 = math.exp %37 : vector<8x16xf32>
    %cst_29 = arith.constant 1.000000e+00 : f32
    %39 = vector.broadcast %cst_29 : f32 to vector<8x16xf32>
    %40 = arith.addf %39, %38 : vector<8x16xf32>
    %41 = arith.divf %39, %40 : vector<8x16xf32>
    %42 = arith.mulf %33, %12 : vector<8x16xf32>
    %43 = arith.mulf %27, %35 : vector<8x16xf32>
    %44 = arith.addf %42, %43 : vector<8x16xf32>
    %45 = math.tanh %44 : vector<8x16xf32>
    %46 = arith.mulf %41, %45 : vector<8x16xf32>
    %cst_30 = arith.constant dense<0.000000e+00> : vector<8x64xf32>
    %47 = tpu.matmul %46, %3, %cst_30 {dimension_numbers = #tpu.dot_dimension_numbers<[1], [0], [0], [1], [0, 0, 1, 1], [], []>} : vector<8x16xf32>, vector<16x64xf32>, vector<8x64xf32> -> vector<8x64xf32>
    %cst_31 = arith.constant dense<0.000000e+00> : vector<8x64xf32>
    %48 = tpu.matmul %10, %4, %cst_31 {dimension_numbers = #tpu.dot_dimension_numbers<[1], [0], [0], [1], [0, 0, 1, 1], [], []>} : vector<8x16xf32>, vector<16x64xf32>, vector<8x64xf32> -> vector<8x64xf32>
    %49 = arith.addf %47, %48 : vector<8x64xf32>
    %50 = vector.broadcast %5 : vector<1x64xf32> to vector<8x64xf32>
    %51 = arith.addf %49, %50 : vector<8x64xf32>
    %52 = vector.extract_strided_slice %51 {offsets = [0, 0], sizes = [8, 16], strides = [1, 1]} : vector<8x64xf32> to vector<8x16xf32>
    %53 = arith.negf %52 : vector<8x16xf32>
    %54 = math.exp %53 : vector<8x16xf32>
    %cst_32 = arith.constant 1.000000e+00 : f32
    %55 = vector.broadcast %cst_32 : f32 to vector<8x16xf32>
    %56 = arith.addf %55, %54 : vector<8x16xf32>
    %57 = arith.divf %55, %56 : vector<8x16xf32>
    %58 = vector.extract_strided_slice %51 {offsets = [0, 16], sizes = [8, 16], strides = [1, 1]} : vector<8x64xf32> to vector<8x16xf32>
    %59 = arith.negf %58 : vector<8x16xf32>
    %60 = math.exp %59 : vector<8x16xf32>
    %cst_33 = arith.constant 1.000000e+00 : f32
    %61 = vector.broadcast %cst_33 : f32 to vector<8x16xf32>
    %62 = arith.addf %61, %60 : vector<8x16xf32>
    %63 = arith.divf %61, %62 : vector<8x16xf32>
    %64 = vector.extract_strided_slice %51 {offsets = [0, 32], sizes = [8, 16], strides = [1, 1]} : vector<8x64xf32> to vector<8x16xf32>
    %65 = math.tanh %64 : vector<8x16xf32>
    %66 = vector.extract_strided_slice %51 {offsets = [0, 48], sizes = [8, 16], strides = [1, 1]} : vector<8x64xf32> to vector<8x16xf32>
    %67 = arith.negf %66 : vector<8x16xf32>
    %68 = math.exp %67 : vector<8x16xf32>
    %cst_34 = arith.constant 1.000000e+00 : f32
    %69 = vector.broadcast %cst_34 : f32 to vector<8x16xf32>
    %70 = arith.addf %69, %68 : vector<8x16xf32>
    %71 = arith.divf %69, %70 : vector<8x16xf32>
    %72 = arith.mulf %63, %13 : vector<8x16xf32>
    %73 = arith.mulf %57, %65 : vector<8x16xf32>
    %74 = arith.addf %72, %73 : vector<8x16xf32>
    %75 = math.tanh %74 : vector<8x16xf32>
    %76 = arith.mulf %71, %75 : vector<8x16xf32>
    %cst_35 = arith.constant dense<0.000000e+00> : vector<8x24xf32>
    %77 = tpu.matmul %76, %6, %cst_35 {dimension_numbers = #tpu.dot_dimension_numbers<[1], [0], [0], [1], [0, 0, 1, 1], [], []>} : vector<8x16xf32>, vector<16x24xf32>, vector<8x24xf32> -> vector<8x24xf32>
    %cst_36 = arith.constant dense<0.000000e+00> : vector<8x24xf32>
    %78 = tpu.matmul %11, %7, %cst_36 {dimension_numbers = #tpu.dot_dimension_numbers<[1], [0], [0], [1], [0, 0, 1, 1], [], []>} : vector<8x6xf32>, vector<6x24xf32>, vector<8x24xf32> -> vector<8x24xf32>
    %79 = arith.addf %77, %78 : vector<8x24xf32>
    %80 = vector.broadcast %8 : vector<1x24xf32> to vector<8x24xf32>
    %81 = arith.addf %79, %80 : vector<8x24xf32>
    %82 = vector.extract_strided_slice %81 {offsets = [0, 0], sizes = [8, 6], strides = [1, 1]} : vector<8x24xf32> to vector<8x6xf32>
    %83 = arith.negf %82 : vector<8x6xf32>
    %84 = math.exp %83 : vector<8x6xf32>
    %cst_37 = arith.constant 1.000000e+00 : f32
    %85 = vector.broadcast %cst_37 : f32 to vector<8x6xf32>
    %86 = arith.addf %85, %84 : vector<8x6xf32>
    %87 = arith.divf %85, %86 : vector<8x6xf32>
    %88 = vector.extract_strided_slice %81 {offsets = [0, 6], sizes = [8, 6], strides = [1, 1]} : vector<8x24xf32> to vector<8x6xf32>
    %89 = arith.negf %88 : vector<8x6xf32>
    %90 = math.exp %89 : vector<8x6xf32>
    %cst_38 = arith.constant 1.000000e+00 : f32
    %91 = vector.broadcast %cst_38 : f32 to vector<8x6xf32>
    %92 = arith.addf %91, %90 : vector<8x6xf32>
    %93 = arith.divf %91, %92 : vector<8x6xf32>
    %94 = vector.extract_strided_slice %81 {offsets = [0, 12], sizes = [8, 6], strides = [1, 1]} : vector<8x24xf32> to vector<8x6xf32>
    %95 = math.tanh %94 : vector<8x6xf32>
    %96 = vector.extract_strided_slice %81 {offsets = [0, 18], sizes = [8, 6], strides = [1, 1]} : vector<8x24xf32> to vector<8x6xf32>
    %97 = arith.negf %96 : vector<8x6xf32>
    %98 = math.exp %97 : vector<8x6xf32>
    %cst_39 = arith.constant 1.000000e+00 : f32
    %99 = vector.broadcast %cst_39 : f32 to vector<8x6xf32>
    %100 = arith.addf %99, %98 : vector<8x6xf32>
    %101 = arith.divf %99, %100 : vector<8x6xf32>
    %102 = arith.mulf %93, %14 : vector<8x6xf32>
    %103 = arith.mulf %87, %95 : vector<8x6xf32>
    %104 = arith.addf %102, %103 : vector<8x6xf32>
    %105 = math.tanh %104 : vector<8x6xf32>
    %106 = arith.mulf %101, %105 : vector<8x6xf32>
    %107 = vector.extract_strided_slice %106 {offsets = [0, 0], sizes = [8, 5], strides = [1, 1]} : vector<8x6xf32> to vector<8x5xf32>
    %cst_40 = arith.constant dense<0xFF800000> : vector<8xf32>
    %108 = vector.multi_reduction <maximumf>, %107, %cst_40 [1] : vector<8x5xf32> to vector<8xf32>
    %109 = vector.shape_cast %108 : vector<8xf32> to vector<8x1xf32>
    %110 = vector.broadcast %109 : vector<8x1xf32> to vector<8x5xf32>
    %111 = arith.subf %107, %110 : vector<8x5xf32>
    %112 = math.exp %111 : vector<8x5xf32>
    %cst_41 = arith.constant dense<0.000000e+00> : vector<8xf32>
    %113 = vector.multi_reduction <add>, %112, %cst_41 [1] : vector<8x5xf32> to vector<8xf32>
    %114 = vector.shape_cast %113 : vector<8xf32> to vector<8x1xf32>
    %115 = vector.broadcast %114 : vector<8x1xf32> to vector<8x5xf32>
    %116 = arith.divf %112, %115 : vector<8x5xf32>
    %117 = vector.extract_strided_slice %106 {offsets = [0, 5], sizes = [8, 1], strides = [1, 1]} : vector<8x6xf32> to vector<8x1xf32>
    %118 = tpu.concatenate %116, %117 in 1 : vector<8x5xf32>, vector<8x1xf32> -> vector<8x6xf32>
    %c0_42 = arith.constant 0 : index
    %c0_43 = arith.constant 0 : index
    %c0_44 = arith.constant 0 : index
    %119 = vector.load %arg10[%c0_42, %c0_43, %c0_44] : memref<8x8x6xf32, #tpu.memory_space<vmem>>, vector<1x8x6xf32>
    %120 = vector.shape_cast %119 : vector<1x8x6xf32> to vector<8x6xf32>
    %121 = vector.shape_cast %118 : vector<8x6xf32> to vector<1x8x6xf32>
    tpu.vector_store %arg10[%c0_42, %c0_43, %c0_44], %121 {strides = array<i32>} : memref<8x8x6xf32, #tpu.memory_space<vmem>>, vector<1x8x6xf32>,
    %c1 = arith.constant 1 : index
    %c0_45 = arith.constant 0 : index
    %c0_46 = arith.constant 0 : index
    %122 = vector.load %arg0[%c1, %c0_45, %c0_46] : memref<8x8x6xf32, #tpu.memory_space<vmem>>, vector<1x8x6xf32>
    %123 = vector.shape_cast %122 : vector<1x8x6xf32> to vector<8x6xf32>
    %cst_47 = arith.constant dense<0.000000e+00> : vector<8x64xf32>
    %124 = tpu.matmul %123, %0, %cst_47 {dimension_numbers = #tpu.dot_dimension_numbers<[1], [0], [0], [1], [0, 0, 1, 1], [], []>} : vector<8x6xf32>, vector<6x64xf32>, vector<8x64xf32> -> vector<8x64xf32>
    %cst_48 = arith.constant dense<0.000000e+00> : vector<8x64xf32>
    %125 = tpu.matmul %46, %1, %cst_48 {dimension_numbers = #tpu.dot_dimension_numbers<[1], [0], [0], [1], [0, 0, 1, 1], [], []>} : vector<8x16xf32>, vector<16x64xf32>, vector<8x64xf32> -> vector<8x64xf32>
    %126 = arith.addf %124, %125 : vector<8x64xf32>
    %127 = vector.broadcast %2 : vector<1x64xf32> to vector<8x64xf32>
    %128 = arith.addf %126, %127 : vector<8x64xf32>
    %129 = vector.extract_strided_slice %128 {offsets = [0, 0], sizes = [8, 16], strides = [1, 1]} : vector<8x64xf32> to vector<8x16xf32>
    %130 = arith.negf %129 : vector<8x16xf32>
    %131 = math.exp %130 : vector<8x16xf32>
    %cst_49 = arith.constant 1.000000e+00 : f32
    %132 = vector.broadcast %cst_49 : f32 to vector<8x16xf32>
    %133 = arith.addf %132, %131 : vector<8x16xf32>
    %134 = arith.divf %132, %133 : vector<8x16xf32>
    %135 = vector.extract_strided_slice %128 {offsets = [0, 16], sizes = [8, 16], strides = [1, 1]} : vector<8x64xf32> to vector<8x16xf32>
    %136 = arith.negf %135 : vector<8x16xf32>
    %137 = math.exp %136 : vector<8x16xf32>
    %cst_50 = arith.constant 1.000000e+00 : f32
    %138 = vector.broadcast %cst_50 : f32 to vector<8x16xf32>
    %139 = arith.addf %138, %137 : vector<8x16xf32>
    %140 = arith.divf %138, %139 : vector<8x16xf32>
    %141 = vector.extract_strided_slice %128 {offsets = [0, 32], sizes = [8, 16], strides = [1, 1]} : vector<8x64xf32> to vector<8x16xf32>
    %142 = math.tanh %141 : vector<8x16xf32>
    %143 = vector.extract_strided_slice %128 {offsets = [0, 48], sizes = [8, 16], strides = [1, 1]} : vector<8x64xf32> to vector<8x16xf32>
    %144 = arith.negf %143 : vector<8x16xf32>
    %145 = math.exp %144 : vector<8x16xf32>
    %cst_51 = arith.constant 1.000000e+00 : f32
    %146 = vector.broadcast %cst_51 : f32 to vector<8x16xf32>
    %147 = arith.addf %146, %145 : vector<8x16xf32>
    %148 = arith.divf %146, %147 : vector<8x16xf32>
    %149 = arith.mulf %140, %44 : vector<8x16xf32>
    %150 = arith.mulf %134, %142 : vector<8x16xf32>
    %151 = arith.addf %149, %150 : vector<8x16xf32>
    %152 = math.tanh %151 : vector<8x16xf32>
    %153 = arith.mulf %148, %152 : vector<8x16xf32>
    %cst_52 = arith.constant dense<0.000000e+00> : vector<8x64xf32>
    %154 = tpu.matmul %153, %3, %cst_52 {dimension_numbers = #tpu.dot_dimension_numbers<[1], [0], [0], [1], [0, 0, 1, 1], [], []>} : vector<8x16xf32>, vector<16x64xf32>, vector<8x64xf32> -> vector<8x64xf32>
    %cst_53 = arith.constant dense<0.000000e+00> : vector<8x64xf32>
    %155 = tpu.matmul %76, %4, %cst_53 {dimension_numbers = #tpu.dot_dimension_numbers<[1], [0], [0], [1], [0, 0, 1, 1], [], []>} : vector<8x16xf32>, vector<16x64xf32>, vector<8x64xf32> -> vector<8x64xf32>
    %156 = arith.addf %154, %155 : vector<8x64xf32>
    %157 = vector.broadcast %5 : vector<1x64xf32> to vector<8x64xf32>
    %158 = arith.addf %156, %157 : vector<8x64xf32>
    %159 = vector.extract_strided_slice %158 {offsets = [0, 0], sizes = [8, 16], strides = [1, 1]} : vector<8x64xf32> to vector<8x16xf32>
    %160 = arith.negf %159 : vector<8x16xf32>
    %161 = math.exp %160 : vector<8x16xf32>
    %cst_54 = arith.constant 1.000000e+00 : f32
    %162 = vector.broadcast %cst_54 : f32 to vector<8x16xf32>
    %163 = arith.addf %162, %161 : vector<8x16xf32>
    %164 = arith.divf %162, %163 : vector<8x16xf32>
    %165 = vector.extract_strided_slice %158 {offsets = [0, 16], sizes = [8, 16], strides = [1, 1]} : vector<8x64xf32> to vector<8x16xf32>
    %166 = arith.negf %165 : vector<8x16xf32>
    %167 = math.exp %166 : vector<8x16xf32>
    %cst_55 = arith.constant 1.000000e+00 : f32
    %168 = vector.broadcast %cst_55 : f32 to vector<8x16xf32>
    %169 = arith.addf %168, %167 : vector<8x16xf32>
    %170 = arith.divf %168, %169 : vector<8x16xf32>
    %171 = vector.extract_strided_slice %158 {offsets = [0, 32], sizes = [8, 16], strides = [1, 1]} : vector<8x64xf32> to vector<8x16xf32>
    %172 = math.tanh %171 : vector<8x16xf32>
    %173 = vector.extract_strided_slice %158 {offsets = [0, 48], sizes = [8, 16], strides = [1, 1]} : vector<8x64xf32> to vector<8x16xf32>
    %174 = arith.negf %173 : vector<8x16xf32>
    %175 = math.exp %174 : vector<8x16xf32>
    %cst_56 = arith.constant 1.000000e+00 : f32
    %176 = vector.broadcast %cst_56 : f32 to vector<8x16xf32>
    %177 = arith.addf %176, %175 : vector<8x16xf32>
    %178 = arith.divf %176, %177 : vector<8x16xf32>
    %179 = arith.mulf %170, %74 : vector<8x16xf32>
    %180 = arith.mulf %164, %172 : vector<8x16xf32>
    %181 = arith.addf %179, %180 : vector<8x16xf32>
    %182 = math.tanh %181 : vector<8x16xf32>
    %183 = arith.mulf %178, %182 : vector<8x16xf32>
    %cst_57 = arith.constant dense<0.000000e+00> : vector<8x24xf32>
    %184 = tpu.matmul %183, %6, %cst_57 {dimension_numbers = #tpu.dot_dimension_numbers<[1], [0], [0], [1], [0, 0, 1, 1], [], []>} : vector<8x16xf32>, vector<16x24xf32>, vector<8x24xf32> -> vector<8x24xf32>
    %cst_58 = arith.constant dense<0.000000e+00> : vector<8x24xf32>
    %185 = tpu.matmul %106, %7, %cst_58 {dimension_numbers = #tpu.dot_dimension_numbers<[1], [0], [0], [1], [0, 0, 1, 1], [], []>} : vector<8x6xf32>, vector<6x24xf32>, vector<8x24xf32> -> vector<8x24xf32>
    %186 = arith.addf %184, %185 : vector<8x24xf32>
    %187 = vector.broadcast %8 : vector<1x24xf32> to vector<8x24xf32>
    %188 = arith.addf %186, %187 : vector<8x24xf32>
    %189 = vector.extract_strided_slice %188 {offsets = [0, 0], sizes = [8, 6], strides = [1, 1]} : vector<8x24xf32> to vector<8x6xf32>
    %190 = arith.negf %189 : vector<8x6xf32>
    %191 = math.exp %190 : vector<8x6xf32>
    %cst_59 = arith.constant 1.000000e+00 : f32
    %192 = vector.broadcast %cst_59 : f32 to vector<8x6xf32>
    %193 = arith.addf %192, %191 : vector<8x6xf32>
    %194 = arith.divf %192, %193 : vector<8x6xf32>
    %195 = vector.extract_strided_slice %188 {offsets = [0, 6], sizes = [8, 6], strides = [1, 1]} : vector<8x24xf32> to vector<8x6xf32>
    %196 = arith.negf %195 : vector<8x6xf32>
    %197 = math.exp %196 : vector<8x6xf32>
    %cst_60 = arith.constant 1.000000e+00 : f32
    %198 = vector.broadcast %cst_60 : f32 to vector<8x6xf32>
    %199 = arith.addf %198, %197 : vector<8x6xf32>
    %200 = arith.divf %198, %199 : vector<8x6xf32>
    %201 = vector.extract_strided_slice %188 {offsets = [0, 12], sizes = [8, 6], strides = [1, 1]} : vector<8x24xf32> to vector<8x6xf32>
    %202 = math.tanh %201 : vector<8x6xf32>
    %203 = vector.extract_strided_slice %188 {offsets = [0, 18], sizes = [8, 6], strides = [1, 1]} : vector<8x24xf32> to vector<8x6xf32>
    %204 = arith.negf %203 : vector<8x6xf32>
    %205 = math.exp %204 : vector<8x6xf32>
    %cst_61 = arith.constant 1.000000e+00 : f32
    %206 = vector.broadcast %cst_61 : f32 to vector<8x6xf32>
    %207 = arith.addf %206, %205 : vector<8x6xf32>
    %208 = arith.divf %206, %207 : vector<8x6xf32>
    %209 = arith.mulf %200, %104 : vector<8x6xf32>
    %210 = arith.mulf %194, %202 : vector<8x6xf32>
    %211 = arith.addf %209, %210 : vector<8x6xf32>
    %212 = math.tanh %211 : vector<8x6xf32>
    %213 = arith.mulf %208, %212 : vector<8x6xf32>
    %214 = vector.extract_strided_slice %213 {offsets = [0, 0], sizes = [8, 5], strides = [1, 1]} : vector<8x6xf32> to vector<8x5xf32>
    %cst_62 = arith.constant dense<0xFF800000> : vector<8xf32>
    %215 = vector.multi_reduction <maximumf>, %214, %cst_62 [1] : vector<8x5xf32> to vector<8xf32>
    %216 = vector.shape_cast %215 : vector<8xf32> to vector<8x1xf32>
    %217 = vector.broadcast %216 : vector<8x1xf32> to vector<8x5xf32>
    %218 = arith.subf %214, %217 : vector<8x5xf32>
    %219 = math.exp %218 : vector<8x5xf32>
    %cst_63 = arith.constant dense<0.000000e+00> : vector<8xf32>
    %220 = vector.multi_reduction <add>, %219, %cst_63 [1] : vector<8x5xf32> to vector<8xf32>
    %221 = vector.shape_cast %220 : vector<8xf32> to vector<8x1xf32>
    %222 = vector.broadcast %221 : vector<8x1xf32> to vector<8x5xf32>
    %223 = arith.divf %219, %222 : vector<8x5xf32>
    %224 = vector.extract_strided_slice %213 {offsets = [0, 5], sizes = [8, 1], strides = [1, 1]} : vector<8x6xf32> to vector<8x1xf32>
    %225 = tpu.concatenate %223, %224 in 1 : vector<8x5xf32>, vector<8x1xf32> -> vector<8x6xf32>
    %c1_64 = arith.constant 1 : index
    %c0_65 = arith.constant 0 : index
    %c0_66 = arith.constant 0 : index
    %226 = vector.load %arg10[%c1_64, %c0_65, %c0_66] : memref<8x8x6xf32, #tpu.memory_space<vmem>>, vector<1x8x6xf32>
    %227 = vector.shape_cast %226 : vector<1x8x6xf32> to vector<8x6xf32>
    %228 = vector.shape_cast %225 : vector<8x6xf32> to vector<1x8x6xf32>
    tpu.vector_store %arg10[%c1_64, %c0_65, %c0_66], %228 {strides = array<i32>} : memref<8x8x6xf32, #tpu.memory_space<vmem>>, vector<1x8x6xf32>,
    %c2 = arith.constant 2 : index
    %c0_67 = arith.constant 0 : index
    %c0_68 = arith.constant 0 : index
    %229 = vector.load %arg0[%c2, %c0_67, %c0_68] : memref<8x8x6xf32, #tpu.memory_space<vmem>>, vector<1x8x6xf32>
    %230 = vector.shape_cast %229 : vector<1x8x6xf32> to vector<8x6xf32>
    %cst_69 = arith.constant dense<0.000000e+00> : vector<8x64xf32>
    %231 = tpu.matmul %230, %0, %cst_69 {dimension_numbers = #tpu.dot_dimension_numbers<[1], [0], [0], [1], [0, 0, 1, 1], [], []>} : vector<8x6xf32>, vector<6x64xf32>, vector<8x64xf32> -> vector<8x64xf32>
    %cst_70 = arith.constant dense<0.000000e+00> : vector<8x64xf32>
    %232 = tpu.matmul %153, %1, %cst_70 {dimension_numbers = #tpu.dot_dimension_numbers<[1], [0], [0], [1], [0, 0, 1, 1], [], []>} : vector<8x16xf32>, vector<16x64xf32>, vector<8x64xf32> -> vector<8x64xf32>
    %233 = arith.addf %231, %232 : vector<8x64xf32>
    %234 = vector.broadcast %2 : vector<1x64xf32> to vector<8x64xf32>
    %235 = arith.addf %233, %234 : vector<8x64xf32>
    %236 = vector.extract_strided_slice %235 {offsets = [0, 0], sizes = [8, 16], strides = [1, 1]} : vector<8x64xf32> to vector<8x16xf32>
    %237 = arith.negf %236 : vector<8x16xf32>
    %238 = math.exp %237 : vector<8x16xf32>
    %cst_71 = arith.constant 1.000000e+00 : f32
    %239 = vector.broadcast %cst_71 : f32 to vector<8x16xf32>
    %240 = arith.addf %239, %238 : vector<8x16xf32>
    %241 = arith.divf %239, %240 : vector<8x16xf32>
    %242 = vector.extract_strided_slice %235 {offsets = [0, 16], sizes = [8, 16], strides = [1, 1]} : vector<8x64xf32> to vector<8x16xf32>
    %243 = arith.negf %242 : vector<8x16xf32>
    %244 = math.exp %243 : vector<8x16xf32>
    %cst_72 = arith.constant 1.000000e+00 : f32
    %245 = vector.broadcast %cst_72 : f32 to vector<8x16xf32>
    %246 = arith.addf %245, %244 : vector<8x16xf32>
    %247 = arith.divf %245, %246 : vector<8x16xf32>
    %248 = vector.extract_strided_slice %235 {offsets = [0, 32], sizes = [8, 16], strides = [1, 1]} : vector<8x64xf32> to vector<8x16xf32>
    %249 = math.tanh %248 : vector<8x16xf32>
    %250 = vector.extract_strided_slice %235 {offsets = [0, 48], sizes = [8, 16], strides = [1, 1]} : vector<8x64xf32> to vector<8x16xf32>
    %251 = arith.negf %250 : vector<8x16xf32>
    %252 = math.exp %251 : vector<8x16xf32>
    %cst_73 = arith.constant 1.000000e+00 : f32
    %253 = vector.broadcast %cst_73 : f32 to vector<8x16xf32>
    %254 = arith.addf %253, %252 : vector<8x16xf32>
    %255 = arith.divf %253, %254 : vector<8x16xf32>
    %256 = arith.mulf %247, %151 : vector<8x16xf32>
    %257 = arith.mulf %241, %249 : vector<8x16xf32>
    %258 = arith.addf %256, %257 : vector<8x16xf32>
    %259 = math.tanh %258 : vector<8x16xf32>
    %260 = arith.mulf %255, %259 : vector<8x16xf32>
    %cst_74 = arith.constant dense<0.000000e+00> : vector<8x64xf32>
    %261 = tpu.matmul %260, %3, %cst_74 {dimension_numbers = #tpu.dot_dimension_numbers<[1], [0], [0], [1], [0, 0, 1, 1], [], []>} : vector<8x16xf32>, vector<16x64xf32>, vector<8x64xf32> -> vector<8x64xf32>
    %cst_75 = arith.constant dense<0.000000e+00> : vector<8x64xf32>
    %262 = tpu.matmul %183, %4, %cst_75 {dimension_numbers = #tpu.dot_dimension_numbers<[1], [0], [0], [1], [0, 0, 1, 1], [], []>} : vector<8x16xf32>, vector<16x64xf32>, vector<8x64xf32> -> vector<8x64xf32>
    %263 = arith.addf %261, %262 : vector<8x64xf32>
    %264 = vector.broadcast %5 : vector<1x64xf32> to vector<8x64xf32>
    %265 = arith.addf %263, %264 : vector<8x64xf32>
    %266 = vector.extract_strided_slice %265 {offsets = [0, 0], sizes = [8, 16], strides = [1, 1]} : vector<8x64xf32> to vector<8x16xf32>
    %267 = arith.negf %266 : vector<8x16xf32>
    %268 = math.exp %267 : vector<8x16xf32>
    %cst_76 = arith.constant 1.000000e+00 : f32
    %269 = vector.broadcast %cst_76 : f32 to vector<8x16xf32>
    %270 = arith.addf %269, %268 : vector<8x16xf32>
    %271 = arith.divf %269, %270 : vector<8x16xf32>
    %272 = vector.extract_strided_slice %265 {offsets = [0, 16], sizes = [8, 16], strides = [1, 1]} : vector<8x64xf32> to vector<8x16xf32>
    %273 = arith.negf %272 : vector<8x16xf32>
    %274 = math.exp %273 : vector<8x16xf32>
    %cst_77 = arith.constant 1.000000e+00 : f32
    %275 = vector.broadcast %cst_77 : f32 to vector<8x16xf32>
    %276 = arith.addf %275, %274 : vector<8x16xf32>
    %277 = arith.divf %275, %276 : vector<8x16xf32>
    %278 = vector.extract_strided_slice %265 {offsets = [0, 32], sizes = [8, 16], strides = [1, 1]} : vector<8x64xf32> to vector<8x16xf32>
    %279 = math.tanh %278 : vector<8x16xf32>
    %280 = vector.extract_strided_slice %265 {offsets = [0, 48], sizes = [8, 16], strides = [1, 1]} : vector<8x64xf32> to vector<8x16xf32>
    %281 = arith.negf %280 : vector<8x16xf32>
    %282 = math.exp %281 : vector<8x16xf32>
    %cst_78 = arith.constant 1.000000e+00 : f32
    %283 = vector.broadcast %cst_78 : f32 to vector<8x16xf32>
    %284 = arith.addf %283, %282 : vector<8x16xf32>
    %285 = arith.divf %283, %284 : vector<8x16xf32>
    %286 = arith.mulf %277, %181 : vector<8x16xf32>
    %287 = arith.mulf %271, %279 : vector<8x16xf32>
    %288 = arith.addf %286, %287 : vector<8x16xf32>
    %289 = math.tanh %288 : vector<8x16xf32>
    %290 = arith.mulf %285, %289 : vector<8x16xf32>
    %cst_79 = arith.constant dense<0.000000e+00> : vector<8x24xf32>
    %291 = tpu.matmul %290, %6, %cst_79 {dimension_numbers = #tpu.dot_dimension_numbers<[1], [0], [0], [1], [0, 0, 1, 1], [], []>} : vector<8x16xf32>, vector<16x24xf32>, vector<8x24xf32> -> vector<8x24xf32>
    %cst_80 = arith.constant dense<0.000000e+00> : vector<8x24xf32>
    %292 = tpu.matmul %213, %7, %cst_80 {dimension_numbers = #tpu.dot_dimension_numbers<[1], [0], [0], [1], [0, 0, 1, 1], [], []>} : vector<8x6xf32>, vector<6x24xf32>, vector<8x24xf32> -> vector<8x24xf32>
    %293 = arith.addf %291, %292 : vector<8x24xf32>
    %294 = vector.broadcast %8 : vector<1x24xf32> to vector<8x24xf32>
    %295 = arith.addf %293, %294 : vector<8x24xf32>
    %296 = vector.extract_strided_slice %295 {offsets = [0, 0], sizes = [8, 6], strides = [1, 1]} : vector<8x24xf32> to vector<8x6xf32>
    %297 = arith.negf %296 : vector<8x6xf32>
    %298 = math.exp %297 : vector<8x6xf32>
    %cst_81 = arith.constant 1.000000e+00 : f32
    %299 = vector.broadcast %cst_81 : f32 to vector<8x6xf32>
    %300 = arith.addf %299, %298 : vector<8x6xf32>
    %301 = arith.divf %299, %300 : vector<8x6xf32>
    %302 = vector.extract_strided_slice %295 {offsets = [0, 6], sizes = [8, 6], strides = [1, 1]} : vector<8x24xf32> to vector<8x6xf32>
    %303 = arith.negf %302 : vector<8x6xf32>
    %304 = math.exp %303 : vector<8x6xf32>
    %cst_82 = arith.constant 1.000000e+00 : f32
    %305 = vector.broadcast %cst_82 : f32 to vector<8x6xf32>
    %306 = arith.addf %305, %304 : vector<8x6xf32>
    %307 = arith.divf %305, %306 : vector<8x6xf32>
    %308 = vector.extract_strided_slice %295 {offsets = [0, 12], sizes = [8, 6], strides = [1, 1]} : vector<8x24xf32> to vector<8x6xf32>
    %309 = math.tanh %308 : vector<8x6xf32>
    %310 = vector.extract_strided_slice %295 {offsets = [0, 18], sizes = [8, 6], strides = [1, 1]} : vector<8x24xf32> to vector<8x6xf32>
    %311 = arith.negf %310 : vector<8x6xf32>
    %312 = math.exp %311 : vector<8x6xf32>
    %cst_83 = arith.constant 1.000000e+00 : f32
    %313 = vector.broadcast %cst_83 : f32 to vector<8x6xf32>
    %314 = arith.addf %313, %312 : vector<8x6xf32>
    %315 = arith.divf %313, %314 : vector<8x6xf32>
    %316 = arith.mulf %307, %211 : vector<8x6xf32>
    %317 = arith.mulf %301, %309 : vector<8x6xf32>
    %318 = arith.addf %316, %317 : vector<8x6xf32>
    %319 = math.tanh %318 : vector<8x6xf32>
    %320 = arith.mulf %315, %319 : vector<8x6xf32>
    %321 = vector.extract_strided_slice %320 {offsets = [0, 0], sizes = [8, 5], strides = [1, 1]} : vector<8x6xf32> to vector<8x5xf32>
    %cst_84 = arith.constant dense<0xFF800000> : vector<8xf32>
    %322 = vector.multi_reduction <maximumf>, %321, %cst_84 [1] : vector<8x5xf32> to vector<8xf32>
    %323 = vector.shape_cast %322 : vector<8xf32> to vector<8x1xf32>
    %324 = vector.broadcast %323 : vector<8x1xf32> to vector<8x5xf32>
    %325 = arith.subf %321, %324 : vector<8x5xf32>
    %326 = math.exp %325 : vector<8x5xf32>
    %cst_85 = arith.constant dense<0.000000e+00> : vector<8xf32>
    %327 = vector.multi_reduction <add>, %326, %cst_85 [1] : vector<8x5xf32> to vector<8xf32>
    %328 = vector.shape_cast %327 : vector<8xf32> to vector<8x1xf32>
    %329 = vector.broadcast %328 : vector<8x1xf32> to vector<8x5xf32>
    %330 = arith.divf %326, %329 : vector<8x5xf32>
    %331 = vector.extract_strided_slice %320 {offsets = [0, 5], sizes = [8, 1], strides = [1, 1]} : vector<8x6xf32> to vector<8x1xf32>
    %332 = tpu.concatenate %330, %331 in 1 : vector<8x5xf32>, vector<8x1xf32> -> vector<8x6xf32>
    %c2_86 = arith.constant 2 : index
    %c0_87 = arith.constant 0 : index
    %c0_88 = arith.constant 0 : index
    %333 = vector.load %arg10[%c2_86, %c0_87, %c0_88] : memref<8x8x6xf32, #tpu.memory_space<vmem>>, vector<1x8x6xf32>
    %334 = vector.shape_cast %333 : vector<1x8x6xf32> to vector<8x6xf32>
    %335 = vector.shape_cast %332 : vector<8x6xf32> to vector<1x8x6xf32>
    tpu.vector_store %arg10[%c2_86, %c0_87, %c0_88], %335 {strides = array<i32>} : memref<8x8x6xf32, #tpu.memory_space<vmem>>, vector<1x8x6xf32>,
    %c3 = arith.constant 3 : index
    %c0_89 = arith.constant 0 : index
    %c0_90 = arith.constant 0 : index
    %336 = vector.load %arg0[%c3, %c0_89, %c0_90] : memref<8x8x6xf32, #tpu.memory_space<vmem>>, vector<1x8x6xf32>
    %337 = vector.shape_cast %336 : vector<1x8x6xf32> to vector<8x6xf32>
    %cst_91 = arith.constant dense<0.000000e+00> : vector<8x64xf32>
    %338 = tpu.matmul %337, %0, %cst_91 {dimension_numbers = #tpu.dot_dimension_numbers<[1], [0], [0], [1], [0, 0, 1, 1], [], []>} : vector<8x6xf32>, vector<6x64xf32>, vector<8x64xf32> -> vector<8x64xf32>
    %cst_92 = arith.constant dense<0.000000e+00> : vector<8x64xf32>
    %339 = tpu.matmul %260, %1, %cst_92 {dimension_numbers = #tpu.dot_dimension_numbers<[1], [0], [0], [1], [0, 0, 1, 1], [], []>} : vector<8x16xf32>, vector<16x64xf32>, vector<8x64xf32> -> vector<8x64xf32>
    %340 = arith.addf %338, %339 : vector<8x64xf32>
    %341 = vector.broadcast %2 : vector<1x64xf32> to vector<8x64xf32>
    %342 = arith.addf %340, %341 : vector<8x64xf32>
    %343 = vector.extract_strided_slice %342 {offsets = [0, 0], sizes = [8, 16], strides = [1, 1]} : vector<8x64xf32> to vector<8x16xf32>
    %344 = arith.negf %343 : vector<8x16xf32>
    %345 = math.exp %344 : vector<8x16xf32>
    %cst_93 = arith.constant 1.000000e+00 : f32
    %346 = vector.broadcast %cst_93 : f32 to vector<8x16xf32>
    %347 = arith.addf %346, %345 : vector<8x16xf32>
    %348 = arith.divf %346, %347 : vector<8x16xf32>
    %349 = vector.extract_strided_slice %342 {offsets = [0, 16], sizes = [8, 16], strides = [1, 1]} : vector<8x64xf32> to vector<8x16xf32>
    %350 = arith.negf %349 : vector<8x16xf32>
    %351 = math.exp %350 : vector<8x16xf32>
    %cst_94 = arith.constant 1.000000e+00 : f32
    %352 = vector.broadcast %cst_94 : f32 to vector<8x16xf32>
    %353 = arith.addf %352, %351 : vector<8x16xf32>
    %354 = arith.divf %352, %353 : vector<8x16xf32>
    %355 = vector.extract_strided_slice %342 {offsets = [0, 32], sizes = [8, 16], strides = [1, 1]} : vector<8x64xf32> to vector<8x16xf32>
    %356 = math.tanh %355 : vector<8x16xf32>
    %357 = vector.extract_strided_slice %342 {offsets = [0, 48], sizes = [8, 16], strides = [1, 1]} : vector<8x64xf32> to vector<8x16xf32>
    %358 = arith.negf %357 : vector<8x16xf32>
    %359 = math.exp %358 : vector<8x16xf32>
    %cst_95 = arith.constant 1.000000e+00 : f32
    %360 = vector.broadcast %cst_95 : f32 to vector<8x16xf32>
    %361 = arith.addf %360, %359 : vector<8x16xf32>
    %362 = arith.divf %360, %361 : vector<8x16xf32>
    %363 = arith.mulf %354, %258 : vector<8x16xf32>
    %364 = arith.mulf %348, %356 : vector<8x16xf32>
    %365 = arith.addf %363, %364 : vector<8x16xf32>
    %366 = math.tanh %365 : vector<8x16xf32>
    %367 = arith.mulf %362, %366 : vector<8x16xf32>
    %cst_96 = arith.constant dense<0.000000e+00> : vector<8x64xf32>
    %368 = tpu.matmul %367, %3, %cst_96 {dimension_numbers = #tpu.dot_dimension_numbers<[1], [0], [0], [1], [0, 0, 1, 1], [], []>} : vector<8x16xf32>, vector<16x64xf32>, vector<8x64xf32> -> vector<8x64xf32>
    %cst_97 = arith.constant dense<0.000000e+00> : vector<8x64xf32>
    %369 = tpu.matmul %290, %4, %cst_97 {dimension_numbers = #tpu.dot_dimension_numbers<[1], [0], [0], [1], [0, 0, 1, 1], [], []>} : vector<8x16xf32>, vector<16x64xf32>, vector<8x64xf32> -> vector<8x64xf32>
    %370 = arith.addf %368, %369 : vector<8x64xf32>
    %371 = vector.broadcast %5 : vector<1x64xf32> to vector<8x64xf32>
    %372 = arith.addf %370, %371 : vector<8x64xf32>
    %373 = vector.extract_strided_slice %372 {offsets = [0, 0], sizes = [8, 16], strides = [1, 1]} : vector<8x64xf32> to vector<8x16xf32>
    %374 = arith.negf %373 : vector<8x16xf32>
    %375 = math.exp %374 : vector<8x16xf32>
    %cst_98 = arith.constant 1.000000e+00 : f32
    %376 = vector.broadcast %cst_98 : f32 to vector<8x16xf32>
    %377 = arith.addf %376, %375 : vector<8x16xf32>
    %378 = arith.divf %376, %377 : vector<8x16xf32>
    %379 = vector.extract_strided_slice %372 {offsets = [0, 16], sizes = [8, 16], strides = [1, 1]} : vector<8x64xf32> to vector<8x16xf32>
    %380 = arith.negf %379 : vector<8x16xf32>
    %381 = math.exp %380 : vector<8x16xf32>
    %cst_99 = arith.constant 1.000000e+00 : f32
    %382 = vector.broadcast %cst_99 : f32 to vector<8x16xf32>
    %383 = arith.addf %382, %381 : vector<8x16xf32>
    %384 = arith.divf %382, %383 : vector<8x16xf32>
    %385 = vector.extract_strided_slice %372 {offsets = [0, 32], sizes = [8, 16], strides = [1, 1]} : vector<8x64xf32> to vector<8x16xf32>
    %386 = math.tanh %385 : vector<8x16xf32>
    %387 = vector.extract_strided_slice %372 {offsets = [0, 48], sizes = [8, 16], strides = [1, 1]} : vector<8x64xf32> to vector<8x16xf32>
    %388 = arith.negf %387 : vector<8x16xf32>
    %389 = math.exp %388 : vector<8x16xf32>
    %cst_100 = arith.constant 1.000000e+00 : f32
    %390 = vector.broadcast %cst_100 : f32 to vector<8x16xf32>
    %391 = arith.addf %390, %389 : vector<8x16xf32>
    %392 = arith.divf %390, %391 : vector<8x16xf32>
    %393 = arith.mulf %384, %288 : vector<8x16xf32>
    %394 = arith.mulf %378, %386 : vector<8x16xf32>
    %395 = arith.addf %393, %394 : vector<8x16xf32>
    %396 = math.tanh %395 : vector<8x16xf32>
    %397 = arith.mulf %392, %396 : vector<8x16xf32>
    %cst_101 = arith.constant dense<0.000000e+00> : vector<8x24xf32>
    %398 = tpu.matmul %397, %6, %cst_101 {dimension_numbers = #tpu.dot_dimension_numbers<[1], [0], [0], [1], [0, 0, 1, 1], [], []>} : vector<8x16xf32>, vector<16x24xf32>, vector<8x24xf32> -> vector<8x24xf32>
    %cst_102 = arith.constant dense<0.000000e+00> : vector<8x24xf32>
    %399 = tpu.matmul %320, %7, %cst_102 {dimension_numbers = #tpu.dot_dimension_numbers<[1], [0], [0], [1], [0, 0, 1, 1], [], []>} : vector<8x6xf32>, vector<6x24xf32>, vector<8x24xf32> -> vector<8x24xf32>
    %400 = arith.addf %398, %399 : vector<8x24xf32>
    %401 = vector.broadcast %8 : vector<1x24xf32> to vector<8x24xf32>
    %402 = arith.addf %400, %401 : vector<8x24xf32>
    %403 = vector.extract_strided_slice %402 {offsets = [0, 0], sizes = [8, 6], strides = [1, 1]} : vector<8x24xf32> to vector<8x6xf32>
    %404 = arith.negf %403 : vector<8x6xf32>
    %405 = math.exp %404 : vector<8x6xf32>
    %cst_103 = arith.constant 1.000000e+00 : f32
    %406 = vector.broadcast %cst_103 : f32 to vector<8x6xf32>
    %407 = arith.addf %406, %405 : vector<8x6xf32>
    %408 = arith.divf %406, %407 : vector<8x6xf32>
    %409 = vector.extract_strided_slice %402 {offsets = [0, 6], sizes = [8, 6], strides = [1, 1]} : vector<8x24xf32> to vector<8x6xf32>
    %410 = arith.negf %409 : vector<8x6xf32>
    %411 = math.exp %410 : vector<8x6xf32>
    %cst_104 = arith.constant 1.000000e+00 : f32
    %412 = vector.broadcast %cst_104 : f32 to vector<8x6xf32>
    %413 = arith.addf %412, %411 : vector<8x6xf32>
    %414 = arith.divf %412, %413 : vector<8x6xf32>
    %415 = vector.extract_strided_slice %402 {offsets = [0, 12], sizes = [8, 6], strides = [1, 1]} : vector<8x24xf32> to vector<8x6xf32>
    %416 = math.tanh %415 : vector<8x6xf32>
    %417 = vector.extract_strided_slice %402 {offsets = [0, 18], sizes = [8, 6], strides = [1, 1]} : vector<8x24xf32> to vector<8x6xf32>
    %418 = arith.negf %417 : vector<8x6xf32>
    %419 = math.exp %418 : vector<8x6xf32>
    %cst_105 = arith.constant 1.000000e+00 : f32
    %420 = vector.broadcast %cst_105 : f32 to vector<8x6xf32>
    %421 = arith.addf %420, %419 : vector<8x6xf32>
    %422 = arith.divf %420, %421 : vector<8x6xf32>
    %423 = arith.mulf %414, %318 : vector<8x6xf32>
    %424 = arith.mulf %408, %416 : vector<8x6xf32>
    %425 = arith.addf %423, %424 : vector<8x6xf32>
    %426 = math.tanh %425 : vector<8x6xf32>
    %427 = arith.mulf %422, %426 : vector<8x6xf32>
    %428 = vector.extract_strided_slice %427 {offsets = [0, 0], sizes = [8, 5], strides = [1, 1]} : vector<8x6xf32> to vector<8x5xf32>
    %cst_106 = arith.constant dense<0xFF800000> : vector<8xf32>
    %429 = vector.multi_reduction <maximumf>, %428, %cst_106 [1] : vector<8x5xf32> to vector<8xf32>
    %430 = vector.shape_cast %429 : vector<8xf32> to vector<8x1xf32>
    %431 = vector.broadcast %430 : vector<8x1xf32> to vector<8x5xf32>
    %432 = arith.subf %428, %431 : vector<8x5xf32>
    %433 = math.exp %432 : vector<8x5xf32>
    %cst_107 = arith.constant dense<0.000000e+00> : vector<8xf32>
    %434 = vector.multi_reduction <add>, %433, %cst_107 [1] : vector<8x5xf32> to vector<8xf32>
    %435 = vector.shape_cast %434 : vector<8xf32> to vector<8x1xf32>
    %436 = vector.broadcast %435 : vector<8x1xf32> to vector<8x5xf32>
    %437 = arith.divf %433, %436 : vector<8x5xf32>
    %438 = vector.extract_strided_slice %427 {offsets = [0, 5], sizes = [8, 1], strides = [1, 1]} : vector<8x6xf32> to vector<8x1xf32>
    %439 = tpu.concatenate %437, %438 in 1 : vector<8x5xf32>, vector<8x1xf32> -> vector<8x6xf32>
    %c3_108 = arith.constant 3 : index
    %c0_109 = arith.constant 0 : index
    %c0_110 = arith.constant 0 : index
    %440 = vector.load %arg10[%c3_108, %c0_109, %c0_110] : memref<8x8x6xf32, #tpu.memory_space<vmem>>, vector<1x8x6xf32>
    %441 = vector.shape_cast %440 : vector<1x8x6xf32> to vector<8x6xf32>
    %442 = vector.shape_cast %439 : vector<8x6xf32> to vector<1x8x6xf32>
    tpu.vector_store %arg10[%c3_108, %c0_109, %c0_110], %442 {strides = array<i32>} : memref<8x8x6xf32, #tpu.memory_space<vmem>>, vector<1x8x6xf32>,
    %c4 = arith.constant 4 : index
    %c0_111 = arith.constant 0 : index
    %c0_112 = arith.constant 0 : index
    %443 = vector.load %arg0[%c4, %c0_111, %c0_112] : memref<8x8x6xf32, #tpu.memory_space<vmem>>, vector<1x8x6xf32>
    %444 = vector.shape_cast %443 : vector<1x8x6xf32> to vector<8x6xf32>
    %cst_113 = arith.constant dense<0.000000e+00> : vector<8x64xf32>
    %445 = tpu.matmul %444, %0, %cst_113 {dimension_numbers = #tpu.dot_dimension_numbers<[1], [0], [0], [1], [0, 0, 1, 1], [], []>} : vector<8x6xf32>, vector<6x64xf32>, vector<8x64xf32> -> vector<8x64xf32>
    %cst_114 = arith.constant dense<0.000000e+00> : vector<8x64xf32>
    %446 = tpu.matmul %367, %1, %cst_114 {dimension_numbers = #tpu.dot_dimension_numbers<[1], [0], [0], [1], [0, 0, 1, 1], [], []>} : vector<8x16xf32>, vector<16x64xf32>, vector<8x64xf32> -> vector<8x64xf32>
    %447 = arith.addf %445, %446 : vector<8x64xf32>
    %448 = vector.broadcast %2 : vector<1x64xf32> to vector<8x64xf32>
    %449 = arith.addf %447, %448 : vector<8x64xf32>
    %450 = vector.extract_strided_slice %449 {offsets = [0, 0], sizes = [8, 16], strides = [1, 1]} : vector<8x64xf32> to vector<8x16xf32>
    %451 = arith.negf %450 : vector<8x16xf32>
    %452 = math.exp %451 : vector<8x16xf32>
    %cst_115 = arith.constant 1.000000e+00 : f32
    %453 = vector.broadcast %cst_115 : f32 to vector<8x16xf32>
    %454 = arith.addf %453, %452 : vector<8x16xf32>
    %455 = arith.divf %453, %454 : vector<8x16xf32>
    %456 = vector.extract_strided_slice %449 {offsets = [0, 16], sizes = [8, 16], strides = [1, 1]} : vector<8x64xf32> to vector<8x16xf32>
    %457 = arith.negf %456 : vector<8x16xf32>
    %458 = math.exp %457 : vector<8x16xf32>
    %cst_116 = arith.constant 1.000000e+00 : f32
    %459 = vector.broadcast %cst_116 : f32 to vector<8x16xf32>
    %460 = arith.addf %459, %458 : vector<8x16xf32>
    %461 = arith.divf %459, %460 : vector<8x16xf32>
    %462 = vector.extract_strided_slice %449 {offsets = [0, 32], sizes = [8, 16], strides = [1, 1]} : vector<8x64xf32> to vector<8x16xf32>
    %463 = math.tanh %462 : vector<8x16xf32>
    %464 = vector.extract_strided_slice %449 {offsets = [0, 48], sizes = [8, 16], strides = [1, 1]} : vector<8x64xf32> to vector<8x16xf32>
    %465 = arith.negf %464 : vector<8x16xf32>
    %466 = math.exp %465 : vector<8x16xf32>
    %cst_117 = arith.constant 1.000000e+00 : f32
    %467 = vector.broadcast %cst_117 : f32 to vector<8x16xf32>
    %468 = arith.addf %467, %466 : vector<8x16xf32>
    %469 = arith.divf %467, %468 : vector<8x16xf32>
    %470 = arith.mulf %461, %365 : vector<8x16xf32>
    %471 = arith.mulf %455, %463 : vector<8x16xf32>
    %472 = arith.addf %470, %471 : vector<8x16xf32>
    %473 = math.tanh %472 : vector<8x16xf32>
    %474 = arith.mulf %469, %473 : vector<8x16xf32>
    %cst_118 = arith.constant dense<0.000000e+00> : vector<8x64xf32>
    %475 = tpu.matmul %474, %3, %cst_118 {dimension_numbers = #tpu.dot_dimension_numbers<[1], [0], [0], [1], [0, 0, 1, 1], [], []>} : vector<8x16xf32>, vector<16x64xf32>, vector<8x64xf32> -> vector<8x64xf32>
    %cst_119 = arith.constant dense<0.000000e+00> : vector<8x64xf32>
    %476 = tpu.matmul %397, %4, %cst_119 {dimension_numbers = #tpu.dot_dimension_numbers<[1], [0], [0], [1], [0, 0, 1, 1], [], []>} : vector<8x16xf32>, vector<16x64xf32>, vector<8x64xf32> -> vector<8x64xf32>
    %477 = arith.addf %475, %476 : vector<8x64xf32>
    %478 = vector.broadcast %5 : vector<1x64xf32> to vector<8x64xf32>
    %479 = arith.addf %477, %478 : vector<8x64xf32>
    %480 = vector.extract_strided_slice %479 {offsets = [0, 0], sizes = [8, 16], strides = [1, 1]} : vector<8x64xf32> to vector<8x16xf32>
    %481 = arith.negf %480 : vector<8x16xf32>
    %482 = math.exp %481 : vector<8x16xf32>
    %cst_120 = arith.constant 1.000000e+00 : f32
    %483 = vector.broadcast %cst_120 : f32 to vector<8x16xf32>
    %484 = arith.addf %483, %482 : vector<8x16xf32>
    %485 = arith.divf %483, %484 : vector<8x16xf32>
    %486 = vector.extract_strided_slice %479 {offsets = [0, 16], sizes = [8, 16], strides = [1, 1]} : vector<8x64xf32> to vector<8x16xf32>
    %487 = arith.negf %486 : vector<8x16xf32>
    %488 = math.exp %487 : vector<8x16xf32>
    %cst_121 = arith.constant 1.000000e+00 : f32
    %489 = vector.broadcast %cst_121 : f32 to vector<8x16xf32>
    %490 = arith.addf %489, %488 : vector<8x16xf32>
    %491 = arith.divf %489, %490 : vector<8x16xf32>
    %492 = vector.extract_strided_slice %479 {offsets = [0, 32], sizes = [8, 16], strides = [1, 1]} : vector<8x64xf32> to vector<8x16xf32>
    %493 = math.tanh %492 : vector<8x16xf32>
    %494 = vector.extract_strided_slice %479 {offsets = [0, 48], sizes = [8, 16], strides = [1, 1]} : vector<8x64xf32> to vector<8x16xf32>
    %495 = arith.negf %494 : vector<8x16xf32>
    %496 = math.exp %495 : vector<8x16xf32>
    %cst_122 = arith.constant 1.000000e+00 : f32
    %497 = vector.broadcast %cst_122 : f32 to vector<8x16xf32>
    %498 = arith.addf %497, %496 : vector<8x16xf32>
    %499 = arith.divf %497, %498 : vector<8x16xf32>
    %500 = arith.mulf %491, %395 : vector<8x16xf32>
    %501 = arith.mulf %485, %493 : vector<8x16xf32>
    %502 = arith.addf %500, %501 : vector<8x16xf32>
    %503 = math.tanh %502 : vector<8x16xf32>
    %504 = arith.mulf %499, %503 : vector<8x16xf32>
    %cst_123 = arith.constant dense<0.000000e+00> : vector<8x24xf32>
    %505 = tpu.matmul %504, %6, %cst_123 {dimension_numbers = #tpu.dot_dimension_numbers<[1], [0], [0], [1], [0, 0, 1, 1], [], []>} : vector<8x16xf32>, vector<16x24xf32>, vector<8x24xf32> -> vector<8x24xf32>
    %cst_124 = arith.constant dense<0.000000e+00> : vector<8x24xf32>
    %506 = tpu.matmul %427, %7, %cst_124 {dimension_numbers = #tpu.dot_dimension_numbers<[1], [0], [0], [1], [0, 0, 1, 1], [], []>} : vector<8x6xf32>, vector<6x24xf32>, vector<8x24xf32> -> vector<8x24xf32>
    %507 = arith.addf %505, %506 : vector<8x24xf32>
    %508 = vector.broadcast %8 : vector<1x24xf32> to vector<8x24xf32>
    %509 = arith.addf %507, %508 : vector<8x24xf32>
    %510 = vector.extract_strided_slice %509 {offsets = [0, 0], sizes = [8, 6], strides = [1, 1]} : vector<8x24xf32> to vector<8x6xf32>
    %511 = arith.negf %510 : vector<8x6xf32>
    %512 = math.exp %511 : vector<8x6xf32>
    %cst_125 = arith.constant 1.000000e+00 : f32
    %513 = vector.broadcast %cst_125 : f32 to vector<8x6xf32>
    %514 = arith.addf %513, %512 : vector<8x6xf32>
    %515 = arith.divf %513, %514 : vector<8x6xf32>
    %516 = vector.extract_strided_slice %509 {offsets = [0, 6], sizes = [8, 6], strides = [1, 1]} : vector<8x24xf32> to vector<8x6xf32>
    %517 = arith.negf %516 : vector<8x6xf32>
    %518 = math.exp %517 : vector<8x6xf32>
    %cst_126 = arith.constant 1.000000e+00 : f32
    %519 = vector.broadcast %cst_126 : f32 to vector<8x6xf32>
    %520 = arith.addf %519, %518 : vector<8x6xf32>
    %521 = arith.divf %519, %520 : vector<8x6xf32>
    %522 = vector.extract_strided_slice %509 {offsets = [0, 12], sizes = [8, 6], strides = [1, 1]} : vector<8x24xf32> to vector<8x6xf32>
    %523 = math.tanh %522 : vector<8x6xf32>
    %524 = vector.extract_strided_slice %509 {offsets = [0, 18], sizes = [8, 6], strides = [1, 1]} : vector<8x24xf32> to vector<8x6xf32>
    %525 = arith.negf %524 : vector<8x6xf32>
    %526 = math.exp %525 : vector<8x6xf32>
    %cst_127 = arith.constant 1.000000e+00 : f32
    %527 = vector.broadcast %cst_127 : f32 to vector<8x6xf32>
    %528 = arith.addf %527, %526 : vector<8x6xf32>
    %529 = arith.divf %527, %528 : vector<8x6xf32>
    %530 = arith.mulf %521, %425 : vector<8x6xf32>
    %531 = arith.mulf %515, %523 : vector<8x6xf32>
    %532 = arith.addf %530, %531 : vector<8x6xf32>
    %533 = math.tanh %532 : vector<8x6xf32>
    %534 = arith.mulf %529, %533 : vector<8x6xf32>
    %535 = vector.extract_strided_slice %534 {offsets = [0, 0], sizes = [8, 5], strides = [1, 1]} : vector<8x6xf32> to vector<8x5xf32>
    %cst_128 = arith.constant dense<0xFF800000> : vector<8xf32>
    %536 = vector.multi_reduction <maximumf>, %535, %cst_128 [1] : vector<8x5xf32> to vector<8xf32>
    %537 = vector.shape_cast %536 : vector<8xf32> to vector<8x1xf32>
    %538 = vector.broadcast %537 : vector<8x1xf32> to vector<8x5xf32>
    %539 = arith.subf %535, %538 : vector<8x5xf32>
    %540 = math.exp %539 : vector<8x5xf32>
    %cst_129 = arith.constant dense<0.000000e+00> : vector<8xf32>
    %541 = vector.multi_reduction <add>, %540, %cst_129 [1] : vector<8x5xf32> to vector<8xf32>
    %542 = vector.shape_cast %541 : vector<8xf32> to vector<8x1xf32>
    %543 = vector.broadcast %542 : vector<8x1xf32> to vector<8x5xf32>
    %544 = arith.divf %540, %543 : vector<8x5xf32>
    %545 = vector.extract_strided_slice %534 {offsets = [0, 5], sizes = [8, 1], strides = [1, 1]} : vector<8x6xf32> to vector<8x1xf32>
    %546 = tpu.concatenate %544, %545 in 1 : vector<8x5xf32>, vector<8x1xf32> -> vector<8x6xf32>
    %c4_130 = arith.constant 4 : index
    %c0_131 = arith.constant 0 : index
    %c0_132 = arith.constant 0 : index
    %547 = vector.load %arg10[%c4_130, %c0_131, %c0_132] : memref<8x8x6xf32, #tpu.memory_space<vmem>>, vector<1x8x6xf32>
    %548 = vector.shape_cast %547 : vector<1x8x6xf32> to vector<8x6xf32>
    %549 = vector.shape_cast %546 : vector<8x6xf32> to vector<1x8x6xf32>
    tpu.vector_store %arg10[%c4_130, %c0_131, %c0_132], %549 {strides = array<i32>} : memref<8x8x6xf32, #tpu.memory_space<vmem>>, vector<1x8x6xf32>,
    %c5 = arith.constant 5 : index
    %c0_133 = arith.constant 0 : index
    %c0_134 = arith.constant 0 : index
    %550 = vector.load %arg0[%c5, %c0_133, %c0_134] : memref<8x8x6xf32, #tpu.memory_space<vmem>>, vector<1x8x6xf32>
    %551 = vector.shape_cast %550 : vector<1x8x6xf32> to vector<8x6xf32>
    %cst_135 = arith.constant dense<0.000000e+00> : vector<8x64xf32>
    %552 = tpu.matmul %551, %0, %cst_135 {dimension_numbers = #tpu.dot_dimension_numbers<[1], [0], [0], [1], [0, 0, 1, 1], [], []>} : vector<8x6xf32>, vector<6x64xf32>, vector<8x64xf32> -> vector<8x64xf32>
    %cst_136 = arith.constant dense<0.000000e+00> : vector<8x64xf32>
    %553 = tpu.matmul %474, %1, %cst_136 {dimension_numbers = #tpu.dot_dimension_numbers<[1], [0], [0], [1], [0, 0, 1, 1], [], []>} : vector<8x16xf32>, vector<16x64xf32>, vector<8x64xf32> -> vector<8x64xf32>
    %554 = arith.addf %552, %553 : vector<8x64xf32>
    %555 = vector.broadcast %2 : vector<1x64xf32> to vector<8x64xf32>
    %556 = arith.addf %554, %555 : vector<8x64xf32>
    %557 = vector.extract_strided_slice %556 {offsets = [0, 0], sizes = [8, 16], strides = [1, 1]} : vector<8x64xf32> to vector<8x16xf32>
    %558 = arith.negf %557 : vector<8x16xf32>
    %559 = math.exp %558 : vector<8x16xf32>
    %cst_137 = arith.constant 1.000000e+00 : f32
    %560 = vector.broadcast %cst_137 : f32 to vector<8x16xf32>
    %561 = arith.addf %560, %559 : vector<8x16xf32>
    %562 = arith.divf %560, %561 : vector<8x16xf32>
    %563 = vector.extract_strided_slice %556 {offsets = [0, 16], sizes = [8, 16], strides = [1, 1]} : vector<8x64xf32> to vector<8x16xf32>
    %564 = arith.negf %563 : vector<8x16xf32>
    %565 = math.exp %564 : vector<8x16xf32>
    %cst_138 = arith.constant 1.000000e+00 : f32
    %566 = vector.broadcast %cst_138 : f32 to vector<8x16xf32>
    %567 = arith.addf %566, %565 : vector<8x16xf32>
    %568 = arith.divf %566, %567 : vector<8x16xf32>
    %569 = vector.extract_strided_slice %556 {offsets = [0, 32], sizes = [8, 16], strides = [1, 1]} : vector<8x64xf32> to vector<8x16xf32>
    %570 = math.tanh %569 : vector<8x16xf32>
    %571 = vector.extract_strided_slice %556 {offsets = [0, 48], sizes = [8, 16], strides = [1, 1]} : vector<8x64xf32> to vector<8x16xf32>
    %572 = arith.negf %571 : vector<8x16xf32>
    %573 = math.exp %572 : vector<8x16xf32>
    %cst_139 = arith.constant 1.000000e+00 : f32
    %574 = vector.broadcast %cst_139 : f32 to vector<8x16xf32>
    %575 = arith.addf %574, %573 : vector<8x16xf32>
    %576 = arith.divf %574, %575 : vector<8x16xf32>
    %577 = arith.mulf %568, %472 : vector<8x16xf32>
    %578 = arith.mulf %562, %570 : vector<8x16xf32>
    %579 = arith.addf %577, %578 : vector<8x16xf32>
    %580 = math.tanh %579 : vector<8x16xf32>
    %581 = arith.mulf %576, %580 : vector<8x16xf32>
    %cst_140 = arith.constant dense<0.000000e+00> : vector<8x64xf32>
    %582 = tpu.matmul %581, %3, %cst_140 {dimension_numbers = #tpu.dot_dimension_numbers<[1], [0], [0], [1], [0, 0, 1, 1], [], []>} : vector<8x16xf32>, vector<16x64xf32>, vector<8x64xf32> -> vector<8x64xf32>
    %cst_141 = arith.constant dense<0.000000e+00> : vector<8x64xf32>
    %583 = tpu.matmul %504, %4, %cst_141 {dimension_numbers = #tpu.dot_dimension_numbers<[1], [0], [0], [1], [0, 0, 1, 1], [], []>} : vector<8x16xf32>, vector<16x64xf32>, vector<8x64xf32> -> vector<8x64xf32>
    %584 = arith.addf %582, %583 : vector<8x64xf32>
    %585 = vector.broadcast %5 : vector<1x64xf32> to vector<8x64xf32>
    %586 = arith.addf %584, %585 : vector<8x64xf32>
    %587 = vector.extract_strided_slice %586 {offsets = [0, 0], sizes = [8, 16], strides = [1, 1]} : vector<8x64xf32> to vector<8x16xf32>
    %588 = arith.negf %587 : vector<8x16xf32>
    %589 = math.exp %588 : vector<8x16xf32>
    %cst_142 = arith.constant 1.000000e+00 : f32
    %590 = vector.broadcast %cst_142 : f32 to vector<8x16xf32>
    %591 = arith.addf %590, %589 : vector<8x16xf32>
    %592 = arith.divf %590, %591 : vector<8x16xf32>
    %593 = vector.extract_strided_slice %586 {offsets = [0, 16], sizes = [8, 16], strides = [1, 1]} : vector<8x64xf32> to vector<8x16xf32>
    %594 = arith.negf %593 : vector<8x16xf32>
    %595 = math.exp %594 : vector<8x16xf32>
    %cst_143 = arith.constant 1.000000e+00 : f32
    %596 = vector.broadcast %cst_143 : f32 to vector<8x16xf32>
    %597 = arith.addf %596, %595 : vector<8x16xf32>
    %598 = arith.divf %596, %597 : vector<8x16xf32>
    %599 = vector.extract_strided_slice %586 {offsets = [0, 32], sizes = [8, 16], strides = [1, 1]} : vector<8x64xf32> to vector<8x16xf32>
    %600 = math.tanh %599 : vector<8x16xf32>
    %601 = vector.extract_strided_slice %586 {offsets = [0, 48], sizes = [8, 16], strides = [1, 1]} : vector<8x64xf32> to vector<8x16xf32>
    %602 = arith.negf %601 : vector<8x16xf32>
    %603 = math.exp %602 : vector<8x16xf32>
    %cst_144 = arith.constant 1.000000e+00 : f32
    %604 = vector.broadcast %cst_144 : f32 to vector<8x16xf32>
    %605 = arith.addf %604, %603 : vector<8x16xf32>
    %606 = arith.divf %604, %605 : vector<8x16xf32>
    %607 = arith.mulf %598, %502 : vector<8x16xf32>
    %608 = arith.mulf %592, %600 : vector<8x16xf32>
    %609 = arith.addf %607, %608 : vector<8x16xf32>
    %610 = math.tanh %609 : vector<8x16xf32>
    %611 = arith.mulf %606, %610 : vector<8x16xf32>
    %cst_145 = arith.constant dense<0.000000e+00> : vector<8x24xf32>
    %612 = tpu.matmul %611, %6, %cst_145 {dimension_numbers = #tpu.dot_dimension_numbers<[1], [0], [0], [1], [0, 0, 1, 1], [], []>} : vector<8x16xf32>, vector<16x24xf32>, vector<8x24xf32> -> vector<8x24xf32>
    %cst_146 = arith.constant dense<0.000000e+00> : vector<8x24xf32>
    %613 = tpu.matmul %534, %7, %cst_146 {dimension_numbers = #tpu.dot_dimension_numbers<[1], [0], [0], [1], [0, 0, 1, 1], [], []>} : vector<8x6xf32>, vector<6x24xf32>, vector<8x24xf32> -> vector<8x24xf32>
    %614 = arith.addf %612, %613 : vector<8x24xf32>
    %615 = vector.broadcast %8 : vector<1x24xf32> to vector<8x24xf32>
    %616 = arith.addf %614, %615 : vector<8x24xf32>
    %617 = vector.extract_strided_slice %616 {offsets = [0, 0], sizes = [8, 6], strides = [1, 1]} : vector<8x24xf32> to vector<8x6xf32>
    %618 = arith.negf %617 : vector<8x6xf32>
    %619 = math.exp %618 : vector<8x6xf32>
    %cst_147 = arith.constant 1.000000e+00 : f32
    %620 = vector.broadcast %cst_147 : f32 to vector<8x6xf32>
    %621 = arith.addf %620, %619 : vector<8x6xf32>
    %622 = arith.divf %620, %621 : vector<8x6xf32>
    %623 = vector.extract_strided_slice %616 {offsets = [0, 6], sizes = [8, 6], strides = [1, 1]} : vector<8x24xf32> to vector<8x6xf32>
    %624 = arith.negf %623 : vector<8x6xf32>
    %625 = math.exp %624 : vector<8x6xf32>
    %cst_148 = arith.constant 1.000000e+00 : f32
    %626 = vector.broadcast %cst_148 : f32 to vector<8x6xf32>
    %627 = arith.addf %626, %625 : vector<8x6xf32>
    %628 = arith.divf %626, %627 : vector<8x6xf32>
    %629 = vector.extract_strided_slice %616 {offsets = [0, 12], sizes = [8, 6], strides = [1, 1]} : vector<8x24xf32> to vector<8x6xf32>
    %630 = math.tanh %629 : vector<8x6xf32>
    %631 = vector.extract_strided_slice %616 {offsets = [0, 18], sizes = [8, 6], strides = [1, 1]} : vector<8x24xf32> to vector<8x6xf32>
    %632 = arith.negf %631 : vector<8x6xf32>
    %633 = math.exp %632 : vector<8x6xf32>
    %cst_149 = arith.constant 1.000000e+00 : f32
    %634 = vector.broadcast %cst_149 : f32 to vector<8x6xf32>
    %635 = arith.addf %634, %633 : vector<8x6xf32>
    %636 = arith.divf %634, %635 : vector<8x6xf32>
    %637 = arith.mulf %628, %532 : vector<8x6xf32>
    %638 = arith.mulf %622, %630 : vector<8x6xf32>
    %639 = arith.addf %637, %638 : vector<8x6xf32>
    %640 = math.tanh %639 : vector<8x6xf32>
    %641 = arith.mulf %636, %640 : vector<8x6xf32>
    %642 = vector.extract_strided_slice %641 {offsets = [0, 0], sizes = [8, 5], strides = [1, 1]} : vector<8x6xf32> to vector<8x5xf32>
    %cst_150 = arith.constant dense<0xFF800000> : vector<8xf32>
    %643 = vector.multi_reduction <maximumf>, %642, %cst_150 [1] : vector<8x5xf32> to vector<8xf32>
    %644 = vector.shape_cast %643 : vector<8xf32> to vector<8x1xf32>
    %645 = vector.broadcast %644 : vector<8x1xf32> to vector<8x5xf32>
    %646 = arith.subf %642, %645 : vector<8x5xf32>
    %647 = math.exp %646 : vector<8x5xf32>
    %cst_151 = arith.constant dense<0.000000e+00> : vector<8xf32>
    %648 = vector.multi_reduction <add>, %647, %cst_151 [1] : vector<8x5xf32> to vector<8xf32>
    %649 = vector.shape_cast %648 : vector<8xf32> to vector<8x1xf32>
    %650 = vector.broadcast %649 : vector<8x1xf32> to vector<8x5xf32>
    %651 = arith.divf %647, %650 : vector<8x5xf32>
    %652 = vector.extract_strided_slice %641 {offsets = [0, 5], sizes = [8, 1], strides = [1, 1]} : vector<8x6xf32> to vector<8x1xf32>
    %653 = tpu.concatenate %651, %652 in 1 : vector<8x5xf32>, vector<8x1xf32> -> vector<8x6xf32>
    %c5_152 = arith.constant 5 : index
    %c0_153 = arith.constant 0 : index
    %c0_154 = arith.constant 0 : index
    %654 = vector.load %arg10[%c5_152, %c0_153, %c0_154] : memref<8x8x6xf32, #tpu.memory_space<vmem>>, vector<1x8x6xf32>
    %655 = vector.shape_cast %654 : vector<1x8x6xf32> to vector<8x6xf32>
    %656 = vector.shape_cast %653 : vector<8x6xf32> to vector<1x8x6xf32>
    tpu.vector_store %arg10[%c5_152, %c0_153, %c0_154], %656 {strides = array<i32>} : memref<8x8x6xf32, #tpu.memory_space<vmem>>, vector<1x8x6xf32>,
    %c6 = arith.constant 6 : index
    %c0_155 = arith.constant 0 : index
    %c0_156 = arith.constant 0 : index
    %657 = vector.load %arg0[%c6, %c0_155, %c0_156] : memref<8x8x6xf32, #tpu.memory_space<vmem>>, vector<1x8x6xf32>
    %658 = vector.shape_cast %657 : vector<1x8x6xf32> to vector<8x6xf32>
    %cst_157 = arith.constant dense<0.000000e+00> : vector<8x64xf32>
    %659 = tpu.matmul %658, %0, %cst_157 {dimension_numbers = #tpu.dot_dimension_numbers<[1], [0], [0], [1], [0, 0, 1, 1], [], []>} : vector<8x6xf32>, vector<6x64xf32>, vector<8x64xf32> -> vector<8x64xf32>
    %cst_158 = arith.constant dense<0.000000e+00> : vector<8x64xf32>
    %660 = tpu.matmul %581, %1, %cst_158 {dimension_numbers = #tpu.dot_dimension_numbers<[1], [0], [0], [1], [0, 0, 1, 1], [], []>} : vector<8x16xf32>, vector<16x64xf32>, vector<8x64xf32> -> vector<8x64xf32>
    %661 = arith.addf %659, %660 : vector<8x64xf32>
    %662 = vector.broadcast %2 : vector<1x64xf32> to vector<8x64xf32>
    %663 = arith.addf %661, %662 : vector<8x64xf32>
    %664 = vector.extract_strided_slice %663 {offsets = [0, 0], sizes = [8, 16], strides = [1, 1]} : vector<8x64xf32> to vector<8x16xf32>
    %665 = arith.negf %664 : vector<8x16xf32>
    %666 = math.exp %665 : vector<8x16xf32>
    %cst_159 = arith.constant 1.000000e+00 : f32
    %667 = vector.broadcast %cst_159 : f32 to vector<8x16xf32>
    %668 = arith.addf %667, %666 : vector<8x16xf32>
    %669 = arith.divf %667, %668 : vector<8x16xf32>
    %670 = vector.extract_strided_slice %663 {offsets = [0, 16], sizes = [8, 16], strides = [1, 1]} : vector<8x64xf32> to vector<8x16xf32>
    %671 = arith.negf %670 : vector<8x16xf32>
    %672 = math.exp %671 : vector<8x16xf32>
    %cst_160 = arith.constant 1.000000e+00 : f32
    %673 = vector.broadcast %cst_160 : f32 to vector<8x16xf32>
    %674 = arith.addf %673, %672 : vector<8x16xf32>
    %675 = arith.divf %673, %674 : vector<8x16xf32>
    %676 = vector.extract_strided_slice %663 {offsets = [0, 32], sizes = [8, 16], strides = [1, 1]} : vector<8x64xf32> to vector<8x16xf32>
    %677 = math.tanh %676 : vector<8x16xf32>
    %678 = vector.extract_strided_slice %663 {offsets = [0, 48], sizes = [8, 16], strides = [1, 1]} : vector<8x64xf32> to vector<8x16xf32>
    %679 = arith.negf %678 : vector<8x16xf32>
    %680 = math.exp %679 : vector<8x16xf32>
    %cst_161 = arith.constant 1.000000e+00 : f32
    %681 = vector.broadcast %cst_161 : f32 to vector<8x16xf32>
    %682 = arith.addf %681, %680 : vector<8x16xf32>
    %683 = arith.divf %681, %682 : vector<8x16xf32>
    %684 = arith.mulf %675, %579 : vector<8x16xf32>
    %685 = arith.mulf %669, %677 : vector<8x16xf32>
    %686 = arith.addf %684, %685 : vector<8x16xf32>
    %687 = math.tanh %686 : vector<8x16xf32>
    %688 = arith.mulf %683, %687 : vector<8x16xf32>
    %cst_162 = arith.constant dense<0.000000e+00> : vector<8x64xf32>
    %689 = tpu.matmul %688, %3, %cst_162 {dimension_numbers = #tpu.dot_dimension_numbers<[1], [0], [0], [1], [0, 0, 1, 1], [], []>} : vector<8x16xf32>, vector<16x64xf32>, vector<8x64xf32> -> vector<8x64xf32>
    %cst_163 = arith.constant dense<0.000000e+00> : vector<8x64xf32>
    %690 = tpu.matmul %611, %4, %cst_163 {dimension_numbers = #tpu.dot_dimension_numbers<[1], [0], [0], [1], [0, 0, 1, 1], [], []>} : vector<8x16xf32>, vector<16x64xf32>, vector<8x64xf32> -> vector<8x64xf32>
    %691 = arith.addf %689, %690 : vector<8x64xf32>
    %692 = vector.broadcast %5 : vector<1x64xf32> to vector<8x64xf32>
    %693 = arith.addf %691, %692 : vector<8x64xf32>
    %694 = vector.extract_strided_slice %693 {offsets = [0, 0], sizes = [8, 16], strides = [1, 1]} : vector<8x64xf32> to vector<8x16xf32>
    %695 = arith.negf %694 : vector<8x16xf32>
    %696 = math.exp %695 : vector<8x16xf32>
    %cst_164 = arith.constant 1.000000e+00 : f32
    %697 = vector.broadcast %cst_164 : f32 to vector<8x16xf32>
    %698 = arith.addf %697, %696 : vector<8x16xf32>
    %699 = arith.divf %697, %698 : vector<8x16xf32>
    %700 = vector.extract_strided_slice %693 {offsets = [0, 16], sizes = [8, 16], strides = [1, 1]} : vector<8x64xf32> to vector<8x16xf32>
    %701 = arith.negf %700 : vector<8x16xf32>
    %702 = math.exp %701 : vector<8x16xf32>
    %cst_165 = arith.constant 1.000000e+00 : f32
    %703 = vector.broadcast %cst_165 : f32 to vector<8x16xf32>
    %704 = arith.addf %703, %702 : vector<8x16xf32>
    %705 = arith.divf %703, %704 : vector<8x16xf32>
    %706 = vector.extract_strided_slice %693 {offsets = [0, 32], sizes = [8, 16], strides = [1, 1]} : vector<8x64xf32> to vector<8x16xf32>
    %707 = math.tanh %706 : vector<8x16xf32>
    %708 = vector.extract_strided_slice %693 {offsets = [0, 48], sizes = [8, 16], strides = [1, 1]} : vector<8x64xf32> to vector<8x16xf32>
    %709 = arith.negf %708 : vector<8x16xf32>
    %710 = math.exp %709 : vector<8x16xf32>
    %cst_166 = arith.constant 1.000000e+00 : f32
    %711 = vector.broadcast %cst_166 : f32 to vector<8x16xf32>
    %712 = arith.addf %711, %710 : vector<8x16xf32>
    %713 = arith.divf %711, %712 : vector<8x16xf32>
    %714 = arith.mulf %705, %609 : vector<8x16xf32>
    %715 = arith.mulf %699, %707 : vector<8x16xf32>
    %716 = arith.addf %714, %715 : vector<8x16xf32>
    %717 = math.tanh %716 : vector<8x16xf32>
    %718 = arith.mulf %713, %717 : vector<8x16xf32>
    %cst_167 = arith.constant dense<0.000000e+00> : vector<8x24xf32>
    %719 = tpu.matmul %718, %6, %cst_167 {dimension_numbers = #tpu.dot_dimension_numbers<[1], [0], [0], [1], [0, 0, 1, 1], [], []>} : vector<8x16xf32>, vector<16x24xf32>, vector<8x24xf32> -> vector<8x24xf32>
    %cst_168 = arith.constant dense<0.000000e+00> : vector<8x24xf32>
    %720 = tpu.matmul %641, %7, %cst_168 {dimension_numbers = #tpu.dot_dimension_numbers<[1], [0], [0], [1], [0, 0, 1, 1], [], []>} : vector<8x6xf32>, vector<6x24xf32>, vector<8x24xf32> -> vector<8x24xf32>
    %721 = arith.addf %719, %720 : vector<8x24xf32>
    %722 = vector.broadcast %8 : vector<1x24xf32> to vector<8x24xf32>
    %723 = arith.addf %721, %722 : vector<8x24xf32>
    %724 = vector.extract_strided_slice %723 {offsets = [0, 0], sizes = [8, 6], strides = [1, 1]} : vector<8x24xf32> to vector<8x6xf32>
    %725 = arith.negf %724 : vector<8x6xf32>
    %726 = math.exp %725 : vector<8x6xf32>
    %cst_169 = arith.constant 1.000000e+00 : f32
    %727 = vector.broadcast %cst_169 : f32 to vector<8x6xf32>
    %728 = arith.addf %727, %726 : vector<8x6xf32>
    %729 = arith.divf %727, %728 : vector<8x6xf32>
    %730 = vector.extract_strided_slice %723 {offsets = [0, 6], sizes = [8, 6], strides = [1, 1]} : vector<8x24xf32> to vector<8x6xf32>
    %731 = arith.negf %730 : vector<8x6xf32>
    %732 = math.exp %731 : vector<8x6xf32>
    %cst_170 = arith.constant 1.000000e+00 : f32
    %733 = vector.broadcast %cst_170 : f32 to vector<8x6xf32>
    %734 = arith.addf %733, %732 : vector<8x6xf32>
    %735 = arith.divf %733, %734 : vector<8x6xf32>
    %736 = vector.extract_strided_slice %723 {offsets = [0, 12], sizes = [8, 6], strides = [1, 1]} : vector<8x24xf32> to vector<8x6xf32>
    %737 = math.tanh %736 : vector<8x6xf32>
    %738 = vector.extract_strided_slice %723 {offsets = [0, 18], sizes = [8, 6], strides = [1, 1]} : vector<8x24xf32> to vector<8x6xf32>
    %739 = arith.negf %738 : vector<8x6xf32>
    %740 = math.exp %739 : vector<8x6xf32>
    %cst_171 = arith.constant 1.000000e+00 : f32
    %741 = vector.broadcast %cst_171 : f32 to vector<8x6xf32>
    %742 = arith.addf %741, %740 : vector<8x6xf32>
    %743 = arith.divf %741, %742 : vector<8x6xf32>
    %744 = arith.mulf %735, %639 : vector<8x6xf32>
    %745 = arith.mulf %729, %737 : vector<8x6xf32>
    %746 = arith.addf %744, %745 : vector<8x6xf32>
    %747 = math.tanh %746 : vector<8x6xf32>
    %748 = arith.mulf %743, %747 : vector<8x6xf32>
    %749 = vector.extract_strided_slice %748 {offsets = [0, 0], sizes = [8, 5], strides = [1, 1]} : vector<8x6xf32> to vector<8x5xf32>
    %cst_172 = arith.constant dense<0xFF800000> : vector<8xf32>
    %750 = vector.multi_reduction <maximumf>, %749, %cst_172 [1] : vector<8x5xf32> to vector<8xf32>
    %751 = vector.shape_cast %750 : vector<8xf32> to vector<8x1xf32>
    %752 = vector.broadcast %751 : vector<8x1xf32> to vector<8x5xf32>
    %753 = arith.subf %749, %752 : vector<8x5xf32>
    %754 = math.exp %753 : vector<8x5xf32>
    %cst_173 = arith.constant dense<0.000000e+00> : vector<8xf32>
    %755 = vector.multi_reduction <add>, %754, %cst_173 [1] : vector<8x5xf32> to vector<8xf32>
    %756 = vector.shape_cast %755 : vector<8xf32> to vector<8x1xf32>
    %757 = vector.broadcast %756 : vector<8x1xf32> to vector<8x5xf32>
    %758 = arith.divf %754, %757 : vector<8x5xf32>
    %759 = vector.extract_strided_slice %748 {offsets = [0, 5], sizes = [8, 1], strides = [1, 1]} : vector<8x6xf32> to vector<8x1xf32>
    %760 = tpu.concatenate %758, %759 in 1 : vector<8x5xf32>, vector<8x1xf32> -> vector<8x6xf32>
    %c6_174 = arith.constant 6 : index
    %c0_175 = arith.constant 0 : index
    %c0_176 = arith.constant 0 : index
    %761 = vector.load %arg10[%c6_174, %c0_175, %c0_176] : memref<8x8x6xf32, #tpu.memory_space<vmem>>, vector<1x8x6xf32>
    %762 = vector.shape_cast %761 : vector<1x8x6xf32> to vector<8x6xf32>
    %763 = vector.shape_cast %760 : vector<8x6xf32> to vector<1x8x6xf32>
    tpu.vector_store %arg10[%c6_174, %c0_175, %c0_176], %763 {strides = array<i32>} : memref<8x8x6xf32, #tpu.memory_space<vmem>>, vector<1x8x6xf32>,
    %c7 = arith.constant 7 : index
    %c0_177 = arith.constant 0 : index
    %c0_178 = arith.constant 0 : index
    %764 = vector.load %arg0[%c7, %c0_177, %c0_178] : memref<8x8x6xf32, #tpu.memory_space<vmem>>, vector<1x8x6xf32>
    %765 = vector.shape_cast %764 : vector<1x8x6xf32> to vector<8x6xf32>
    %cst_179 = arith.constant dense<0.000000e+00> : vector<8x64xf32>
    %766 = tpu.matmul %765, %0, %cst_179 {dimension_numbers = #tpu.dot_dimension_numbers<[1], [0], [0], [1], [0, 0, 1, 1], [], []>} : vector<8x6xf32>, vector<6x64xf32>, vector<8x64xf32> -> vector<8x64xf32>
    %cst_180 = arith.constant dense<0.000000e+00> : vector<8x64xf32>
    %767 = tpu.matmul %688, %1, %cst_180 {dimension_numbers = #tpu.dot_dimension_numbers<[1], [0], [0], [1], [0, 0, 1, 1], [], []>} : vector<8x16xf32>, vector<16x64xf32>, vector<8x64xf32> -> vector<8x64xf32>
    %768 = arith.addf %766, %767 : vector<8x64xf32>
    %769 = vector.broadcast %2 : vector<1x64xf32> to vector<8x64xf32>
    %770 = arith.addf %768, %769 : vector<8x64xf32>
    %771 = vector.extract_strided_slice %770 {offsets = [0, 0], sizes = [8, 16], strides = [1, 1]} : vector<8x64xf32> to vector<8x16xf32>
    %772 = arith.negf %771 : vector<8x16xf32>
    %773 = math.exp %772 : vector<8x16xf32>
    %cst_181 = arith.constant 1.000000e+00 : f32
    %774 = vector.broadcast %cst_181 : f32 to vector<8x16xf32>
    %775 = arith.addf %774, %773 : vector<8x16xf32>
    %776 = arith.divf %774, %775 : vector<8x16xf32>
    %777 = vector.extract_strided_slice %770 {offsets = [0, 16], sizes = [8, 16], strides = [1, 1]} : vector<8x64xf32> to vector<8x16xf32>
    %778 = arith.negf %777 : vector<8x16xf32>
    %779 = math.exp %778 : vector<8x16xf32>
    %cst_182 = arith.constant 1.000000e+00 : f32
    %780 = vector.broadcast %cst_182 : f32 to vector<8x16xf32>
    %781 = arith.addf %780, %779 : vector<8x16xf32>
    %782 = arith.divf %780, %781 : vector<8x16xf32>
    %783 = vector.extract_strided_slice %770 {offsets = [0, 32], sizes = [8, 16], strides = [1, 1]} : vector<8x64xf32> to vector<8x16xf32>
    %784 = math.tanh %783 : vector<8x16xf32>
    %785 = vector.extract_strided_slice %770 {offsets = [0, 48], sizes = [8, 16], strides = [1, 1]} : vector<8x64xf32> to vector<8x16xf32>
    %786 = arith.negf %785 : vector<8x16xf32>
    %787 = math.exp %786 : vector<8x16xf32>
    %cst_183 = arith.constant 1.000000e+00 : f32
    %788 = vector.broadcast %cst_183 : f32 to vector<8x16xf32>
    %789 = arith.addf %788, %787 : vector<8x16xf32>
    %790 = arith.divf %788, %789 : vector<8x16xf32>
    %791 = arith.mulf %782, %686 : vector<8x16xf32>
    %792 = arith.mulf %776, %784 : vector<8x16xf32>
    %793 = arith.addf %791, %792 : vector<8x16xf32>
    %794 = math.tanh %793 : vector<8x16xf32>
    %795 = arith.mulf %790, %794 : vector<8x16xf32>
    %cst_184 = arith.constant dense<0.000000e+00> : vector<8x64xf32>
    %796 = tpu.matmul %795, %3, %cst_184 {dimension_numbers = #tpu.dot_dimension_numbers<[1], [0], [0], [1], [0, 0, 1, 1], [], []>} : vector<8x16xf32>, vector<16x64xf32>, vector<8x64xf32> -> vector<8x64xf32>
    %cst_185 = arith.constant dense<0.000000e+00> : vector<8x64xf32>
    %797 = tpu.matmul %718, %4, %cst_185 {dimension_numbers = #tpu.dot_dimension_numbers<[1], [0], [0], [1], [0, 0, 1, 1], [], []>} : vector<8x16xf32>, vector<16x64xf32>, vector<8x64xf32> -> vector<8x64xf32>
    %798 = arith.addf %796, %797 : vector<8x64xf32>
    %799 = vector.broadcast %5 : vector<1x64xf32> to vector<8x64xf32>
    %800 = arith.addf %798, %799 : vector<8x64xf32>
    %801 = vector.extract_strided_slice %800 {offsets = [0, 0], sizes = [8, 16], strides = [1, 1]} : vector<8x64xf32> to vector<8x16xf32>
    %802 = arith.negf %801 : vector<8x16xf32>
    %803 = math.exp %802 : vector<8x16xf32>
    %cst_186 = arith.constant 1.000000e+00 : f32
    %804 = vector.broadcast %cst_186 : f32 to vector<8x16xf32>
    %805 = arith.addf %804, %803 : vector<8x16xf32>
    %806 = arith.divf %804, %805 : vector<8x16xf32>
    %807 = vector.extract_strided_slice %800 {offsets = [0, 16], sizes = [8, 16], strides = [1, 1]} : vector<8x64xf32> to vector<8x16xf32>
    %808 = arith.negf %807 : vector<8x16xf32>
    %809 = math.exp %808 : vector<8x16xf32>
    %cst_187 = arith.constant 1.000000e+00 : f32
    %810 = vector.broadcast %cst_187 : f32 to vector<8x16xf32>
    %811 = arith.addf %810, %809 : vector<8x16xf32>
    %812 = arith.divf %810, %811 : vector<8x16xf32>
    %813 = vector.extract_strided_slice %800 {offsets = [0, 32], sizes = [8, 16], strides = [1, 1]} : vector<8x64xf32> to vector<8x16xf32>
    %814 = math.tanh %813 : vector<8x16xf32>
    %815 = vector.extract_strided_slice %800 {offsets = [0, 48], sizes = [8, 16], strides = [1, 1]} : vector<8x64xf32> to vector<8x16xf32>
    %816 = arith.negf %815 : vector<8x16xf32>
    %817 = math.exp %816 : vector<8x16xf32>
    %cst_188 = arith.constant 1.000000e+00 : f32
    %818 = vector.broadcast %cst_188 : f32 to vector<8x16xf32>
    %819 = arith.addf %818, %817 : vector<8x16xf32>
    %820 = arith.divf %818, %819 : vector<8x16xf32>
    %821 = arith.mulf %812, %716 : vector<8x16xf32>
    %822 = arith.mulf %806, %814 : vector<8x16xf32>
    %823 = arith.addf %821, %822 : vector<8x16xf32>
    %824 = math.tanh %823 : vector<8x16xf32>
    %825 = arith.mulf %820, %824 : vector<8x16xf32>
    %cst_189 = arith.constant dense<0.000000e+00> : vector<8x24xf32>
    %826 = tpu.matmul %825, %6, %cst_189 {dimension_numbers = #tpu.dot_dimension_numbers<[1], [0], [0], [1], [0, 0, 1, 1], [], []>} : vector<8x16xf32>, vector<16x24xf32>, vector<8x24xf32> -> vector<8x24xf32>
    %cst_190 = arith.constant dense<0.000000e+00> : vector<8x24xf32>
    %827 = tpu.matmul %748, %7, %cst_190 {dimension_numbers = #tpu.dot_dimension_numbers<[1], [0], [0], [1], [0, 0, 1, 1], [], []>} : vector<8x6xf32>, vector<6x24xf32>, vector<8x24xf32> -> vector<8x24xf32>
    %828 = arith.addf %826, %827 : vector<8x24xf32>
    %829 = vector.broadcast %8 : vector<1x24xf32> to vector<8x24xf32>
    %830 = arith.addf %828, %829 : vector<8x24xf32>
    %831 = vector.extract_strided_slice %830 {offsets = [0, 0], sizes = [8, 6], strides = [1, 1]} : vector<8x24xf32> to vector<8x6xf32>
    %832 = arith.negf %831 : vector<8x6xf32>
    %833 = math.exp %832 : vector<8x6xf32>
    %cst_191 = arith.constant 1.000000e+00 : f32
    %834 = vector.broadcast %cst_191 : f32 to vector<8x6xf32>
    %835 = arith.addf %834, %833 : vector<8x6xf32>
    %836 = arith.divf %834, %835 : vector<8x6xf32>
    %837 = vector.extract_strided_slice %830 {offsets = [0, 6], sizes = [8, 6], strides = [1, 1]} : vector<8x24xf32> to vector<8x6xf32>
    %838 = arith.negf %837 : vector<8x6xf32>
    %839 = math.exp %838 : vector<8x6xf32>
    %cst_192 = arith.constant 1.000000e+00 : f32
    %840 = vector.broadcast %cst_192 : f32 to vector<8x6xf32>
    %841 = arith.addf %840, %839 : vector<8x6xf32>
    %842 = arith.divf %840, %841 : vector<8x6xf32>
    %843 = vector.extract_strided_slice %830 {offsets = [0, 12], sizes = [8, 6], strides = [1, 1]} : vector<8x24xf32> to vector<8x6xf32>
    %844 = math.tanh %843 : vector<8x6xf32>
    %845 = vector.extract_strided_slice %830 {offsets = [0, 18], sizes = [8, 6], strides = [1, 1]} : vector<8x24xf32> to vector<8x6xf32>
    %846 = arith.negf %845 : vector<8x6xf32>
    %847 = math.exp %846 : vector<8x6xf32>
    %cst_193 = arith.constant 1.000000e+00 : f32
    %848 = vector.broadcast %cst_193 : f32 to vector<8x6xf32>
    %849 = arith.addf %848, %847 : vector<8x6xf32>
    %850 = arith.divf %848, %849 : vector<8x6xf32>
    %851 = arith.mulf %842, %746 : vector<8x6xf32>
    %852 = arith.mulf %836, %844 : vector<8x6xf32>
    %853 = arith.addf %851, %852 : vector<8x6xf32>
    %854 = math.tanh %853 : vector<8x6xf32>
    %855 = arith.mulf %850, %854 : vector<8x6xf32>
    %856 = vector.extract_strided_slice %855 {offsets = [0, 0], sizes = [8, 5], strides = [1, 1]} : vector<8x6xf32> to vector<8x5xf32>
    %cst_194 = arith.constant dense<0xFF800000> : vector<8xf32>
    %857 = vector.multi_reduction <maximumf>, %856, %cst_194 [1] : vector<8x5xf32> to vector<8xf32>
    %858 = vector.shape_cast %857 : vector<8xf32> to vector<8x1xf32>
    %859 = vector.broadcast %858 : vector<8x1xf32> to vector<8x5xf32>
    %860 = arith.subf %856, %859 : vector<8x5xf32>
    %861 = math.exp %860 : vector<8x5xf32>
    %cst_195 = arith.constant dense<0.000000e+00> : vector<8xf32>
    %862 = vector.multi_reduction <add>, %861, %cst_195 [1] : vector<8x5xf32> to vector<8xf32>
    %863 = vector.shape_cast %862 : vector<8xf32> to vector<8x1xf32>
    %864 = vector.broadcast %863 : vector<8x1xf32> to vector<8x5xf32>
    %865 = arith.divf %861, %864 : vector<8x5xf32>
    %866 = vector.extract_strided_slice %855 {offsets = [0, 5], sizes = [8, 1], strides = [1, 1]} : vector<8x6xf32> to vector<8x1xf32>
    %867 = tpu.concatenate %865, %866 in 1 : vector<8x5xf32>, vector<8x1xf32> -> vector<8x6xf32>
    %c7_196 = arith.constant 7 : index
    %c0_197 = arith.constant 0 : index
    %c0_198 = arith.constant 0 : index
    %868 = vector.load %arg10[%c7_196, %c0_197, %c0_198] : memref<8x8x6xf32, #tpu.memory_space<vmem>>, vector<1x8x6xf32>
    %869 = vector.shape_cast %868 : vector<1x8x6xf32> to vector<8x6xf32>
    %870 = vector.shape_cast %867 : vector<8x6xf32> to vector<1x8x6xf32>
    tpu.vector_store %arg10[%c7_196, %c0_197, %c0_198], %870 {strides = array<i32>} : memref<8x8x6xf32, #tpu.memory_space<vmem>>, vector<1x8x6xf32>,
    return
  }
}

</mosaic_0001>

<bundles_post_ra>
// kernel: multimodal_forward.1
= control target key start
LH: loop header
LB: loop body
LE: loop exit
PB: predicated region body
PF: predicated region fallthrough
CT: control target
= control target key end

     0   :  { %vm127_vm0 = vcmask 1045504   ;;  %v5256_v0 = vmov 0.0|0.0   ;;  %v5257_v3 = vmov 0.0   ;;  %vm123_vm1 = vcmask 48128   ;;  %s5259_s22 = smov 96   ;;  %s5260_s23 = smov 16   ;;  %s6031_s2 = inlined_call_operand.vmem [shape: f32[16,64], index: 2, kind: input, shape index: {}]   ;;  %s6032_s1 = inlined_call_operand.vmem [shape: f32[6,64], index: 1, kind: input, shape index: {}]   ;;  %s6033_s0 = inlined_call_operand.vmem [shape: f32[8,8,6], index: 0, kind: input, shape index: {}]   ;;  %s6034_s3 = inlined_call_operand.vmem [shape: f32[1,64], index: 3, kind: input, shape index: {}]   ;;  %s6035_s5 = inlined_call_operand.vmem [shape: f32[16,64], index: 5, kind: input, shape index: {}]   ;;  %s6036_s4 = inlined_call_operand.vmem [shape: f32[16,64], index: 4, kind: input, shape index: {}]   ;;  %s6037_s8 = inlined_call_operand.vmem [shape: f32[6,24], index: 8, kind: input, shape index: {}]   ;;  %s6038_s6 = inlined_call_operand.vmem [shape: f32[1,64], index: 6, kind: input, shape index: {}]   ;;  %s6039_s7 = inlined_call_operand.vmem [shape: f32[16,24], index: 7, kind: input, shape index: {}]   ;;  %s6040_s9 = inlined_call_operand.vmem [shape: f32[1,24], index: 9, kind: input, shape index: {}]   ;;  %s6041_s10 = inlined_call_operand.vmem [shape: f32[8,8,6], index: 10, kind: output, shape index: {}]  }
   0x1   :  { %4920 = vmatprep.subr.bf16.mxu0 %v5256_v0  ;;  %v36_v1 = vld [vmem:[%s6031_s2] sm:$0xff]  ;;  %v37_v2 = vld [vmem:[%s6031_s2 + $0x8] sm:$0xff]  ;;  %4623 = vmatprep.subr.mxu1 %v5257_v3  ;;  %vm5258_vm2 = vmmov 0   ;;  %vm49_vm3 = vcmask 130048   ;;  %s5263_s24 = smov 116   ;;  %s5264_s25 = smov 6  }
   0x2   :  { %v5333_v4 = vld [vmem:[%s6032_s1] sm:$0x3f]  ;;  %v5335_v5 = vpack.c.bf16 %v37_v2, %v36_v1  ;;  %4625 = vmatprep.mubr.msk.f32.mxu1 %vm5258_vm2, %v5257_v3  ;;  %4620 = vmatprep.mubr.msk.f32.mxu0 %vm5258_vm2, %v5257_v3  ;;  %v42_v25 = vld [vmem:[%s6035_s5 + $0x8] sm:$0xff]  ;;  %s5265_s26 = smov 12   ;;  %s5266_s27 = smov 110   ;;  %vm589_vm4 = vcmask 187536  }
   0x3   :  { %4624 = vmatpush3.msk.msra.mxu1 %vm127_vm0, %v5333_v4  ;;  %v48_v6 = vld [vmem:[%s6033_s0] sm:$0xff]  ;;  %v40_v28 = vld [vmem:[%s6036_s4 + $0x8] sm:$0xff]  ;;  %vm600_vm5 = vcmask 39936  }
   0x4   :  { %4626 = vmatmul.mubr.msk.f32.vlgmr.msra.gmra.mrb[0].mxu1 %vm123_vm1, %v48_v6  ;;  %4922 = vmatpush3.bf16.msra.mxu0 %v5335_v5  ;;  %v5358_v9 = vld [vmem:[%s6034_s3] ss:$0 sm:$0xff]  ;;  %v45_v57 = vld [vmem:[%s6039_s7 + $0x8] sm:$0xff] }
   0x5   :  { %4923 = vmatprep.subr.bf16.mxu1 %v5256_v0  ;;  %4632 = vmatprep.mubr.msk.f32.mxu1 %vm5258_vm2, %v5257_v3  ;;  %v41_v24 = vld [vmem:[%s6035_s5] sm:$0xff]  ;;  %s5262_s5 = smov 80   ;;  %v4397_v63 = vld [vmem:[%s6033_s0 + $0x8] sm:$0xff] }
   0x6   :  { %4926 = vmatprep.subr.bf16.mxu0 %v5256_v0  ;;  %v5372_v26 = vpack.c.bf16 %v42_v25, %v41_v24  ;;  %v39_v27 = vld [vmem:[%s6036_s4] sm:$0xff]  ;;  %s5261_s4 = smov 32  }
   0x7   :  { %4621 = vmatmul.mubr.f32.vlgmr.msra.gmra.mrb[0].mxu0 %v5257_v3  ;;  %v5380_v29 = vpack.c.bf16 %v40_v28, %v39_v27  ;;  %v5387_v30 = vld [vmem:[%s6037_s8] sm:$0x3f] }
   0x8   :  { %4639 = vmatprep.mubr.msk.f32.mxu0 %vm5258_vm2, %v5257_v3  ;;  %4925 = vmatpush3.bf16.msra.mxu1 %v5372_v26  ;;  %v5415_v39 = vld [vmem:[%s6038_s6] ss:$0 sm:$0xff] }
   0x9   :  { %4642 = vmatprep.subr.mxu1 %v5257_v3  ;;  %4928 = vmatpush3.bf16.msra.mxu0 %v5380_v29  ;;  %v44_v56 = vld [vmem:[%s6039_s7] sm:$0xff] }
   0xa   :  { %4929 = vmatprep.subr.bf16.mxu0 %v5256_v0  ;;  %v5429_v58 = vpack.c.bf16 %v45_v57, %v44_v56 }
   0xb   :  { %4633 = vmatmul.mubr.f32.vlgmr.msra.gmra.mrb[2].mxu1 %v5257_v3 }
   0xc   :  { %4643 = vmatpush3.msk.msra.mxu1 %vm127_vm0, %v5387_v30  ;;  %4644 = vmatprep.mubr.msk.f32.mxu1 %vm5258_vm2, %v5257_v3 }
   0xd   :  { %4932 = vmatprep.subr.bf16.mxu1 %v5256_v0 }
   0xf   :  { %4645 = vmatmul.mubr.f32.vlgmr.msra.gmra.mrb[4].mxu1 %v5257_v3 }
  0x10   :  { %4934 = vmatpush3.bf16.msra.mxu1 %v5335_v5  ;;  %4658 = vmatprep.mubr.msk.f32.mxu1 %vm5258_vm2, %v5257_v3 }
  0x11   :  { %4935 = vmatprep.subr.bf16.mxu1 %v5256_v0 }
  0xd7   :  { %v197_v7 = vpop.f32.mrb[0].mxu1 }
  0xd8   :  { %v4627_v8 = vpop.f32.mrb[1].mxu1 }
  0xda   :  { %v119_v10 = vpop.f32.mrb[0].mxu0 }
  0xdb   :  { %v198_v11 = vadd.f32 %v197_v7, %v119_v10  ;;  %v4622_v12 = vpop.f32.mrb[1].mxu0 }
  0xdd   :  { %v207_v13 = vadd.f32 %v5358_v9, %v198_v11 }
  0xde   :  { %v298_v34 = vpop.f32.mrb[2].mxu1 }
  0xdf   :  { %5027 = vtanh.f32 %v207_v13  ;;  %v4389_v15 = vmul.f32 -1.442695, %v207_v13  ;;  %v4634_v35 = vpop.f32.mrb[3].mxu1 }
  0xe1   :  { %5029 = vpow2.f32 %v4389_v15 }
  0xe2   :  { %v479_v36 = vpop.f32.mrb[4].mxu1 }
  0xe3   :  { %v4646_v37 = vpop.f32.mrb[5].mxu1 }
  0xe9   :  { %v5028_v14 = vpop.eup %5027 }
  0xea   :  { %217 = vrot.lane.b32.xlu0 %v5028_v14, %s5259_s22 }
  0xeb   :  { %v5030_v16 = vpop.eup %5029 }
  0xec   :  { %v211_v17 = vadd.f32 1.0, %v5030_v16 }
  0xee   :  { %5031 = vrcp.f32 %v211_v17 }
  0xf8   :  { %v5032_v18 = vpop.eup %5031 }
  0xf9   :  { %v215_v21 = vmul.f32 0.0, %v5032_v18 }
 0x15c   :  { %v218_v19 = vpop.permute.xlu0 %217 }
 0x15d   :  { %v220_v20 = vmul.f32 %v5032_v18, %v218_v19 }
 0x15f   :  { %222 = vrot.lane.b32.xlu0 %v220_v20, %s5260_s23 }
 0x1d1   :  { %v223_v22 = vpop.permute.xlu0 %222 }
 0x1d2   :  { %v5363_v23 = vadd.f32 %v223_v22, %v215_v21  ;;  %v5464_v22 = vld [vmem:[%s6040_s9] ss:$0 sm:$0xff] }
 0x1d4   :  { %5033 = vtanh.f32 %v5363_v23 }
 0x1de   :  { %v5034_v31 = vpop.eup %5033 }
 0x1df   :  { %228 = vrot.lane.b32.xlu1 %v5034_v31, %s5261_s4 }
 0x251   :  { %v229_v32 = vpop.permute.xlu1 %228 }
 0x252   :  { %v231_v33 = vmul.f32 %v5032_v18, %v229_v32 }
 0x254   :  { %303 = vrot.lane.b32.xlu1 %v231_v33, %s5262_s5 }
 0x2c6   :  { %v304_v38 = vpop.permute.xlu1 %303 }
 0x2c7   :  { %4640 = vmatmul.mubr.msk.f32.vlgmr.msra.gmra.mrb[2].mxu0 %vm49_vm3, %v304_v38  ;;  %4659 = vmatmul.mubr.msk.f32.vlgmr.msra.gmra.mrb[6].mxu1 %vm49_vm3, %v304_v38 }
 0x2c8   :  { %4937 = vmatpush3.bf16.msra.mxu1 %v5372_v26  ;;  %4651 = vmatprep.mubr.msk.f32.mxu0 %vm5258_vm2, %v5257_v3 }
 0x2c9   :  { %4670 = vmatprep.mubr.msk.f32.mxu1 %vm5258_vm2, %v5257_v3  ;;  %4680 = vmatprep.subr.mxu1 %v5257_v3 }
 0x2ca   :  { %4931 = vmatpush3.bf16.msra.mxu0 %v5429_v58 }
 0x2cb   :  { %4661 = vmatprep.subr.mxu0 %v5257_v3 }
 0x39a   :  { %v373_v40 = vpop.f32.mrb[2].mxu0  ;;  %v684_v41 = vpop.f32.mrb[6].mxu1 }
 0x39b   :  { %v374_v42 = vadd.f32 %v373_v40, %v298_v34  ;;  %v4641_v43 = vpop.f32.mrb[3].mxu0  ;;  %v4660_v44 = vpop.f32.mrb[7].mxu1 }
 0x39d   :  { %v383_v45 = vadd.f32 %v5415_v39, %v374_v42 }
 0x39f   :  { %5035 = vtanh.f32 %v383_v45  ;;  %v4392_v47 = vmul.f32 -1.442695, %v383_v45 }
 0x3a1   :  { %5037 = vpow2.f32 %v4392_v47 }
 0x3a9   :  { %v5036_v46 = vpop.eup %5035 }
 0x3aa   :  { %393 = vrot.lane.b32.xlu0 %v5036_v46, %s5259_s22 }
 0x3ab   :  { %v5038_v48 = vpop.eup %5037 }
 0x3ac   :  { %v387_v49 = vadd.f32 1.0, %v5038_v48 }
 0x3ae   :  { %5039 = vrcp.f32 %v387_v49 }
 0x3b8   :  { %v5040_v50 = vpop.eup %5039 }
 0x3b9   :  { %v391_v53 = vmul.f32 0.0, %v5040_v50 }
 0x41c   :  { %v394_v51 = vpop.permute.xlu0 %393 }
 0x41d   :  { %v396_v52 = vmul.f32 %v5040_v50, %v394_v51 }
 0x41f   :  { %398 = vrot.lane.b32.xlu1 %v396_v52, %s5260_s23 }
 0x491   :  { %v399_v54 = vpop.permute.xlu1 %398 }
 0x492   :  { %v5420_v55 = vadd.f32 %v399_v54, %v391_v53 }
 0x494   :  { %5041 = vtanh.f32 %v5420_v55 }
 0x49e   :  { %v5042_v59 = vpop.eup %5041 }
 0x49f   :  { %404 = vrot.lane.b32.xlu0 %v5042_v59, %s5261_s4 }
 0x511   :  { %v405_v60 = vpop.permute.xlu0 %404 }
 0x512   :  { %v407_v61 = vmul.f32 %v5040_v50, %v405_v60 }
 0x514   :  { %484 = vrot.lane.b32.xlu1 %v407_v61, %s5262_s5 }
 0x586   :  { %v485_v62 = vpop.permute.xlu1 %484 }
 0x587   :  { %4652 = vmatmul.mubr.msk.f32.vlgmr.msra.gmra.mrb[4].mxu0 %vm49_vm3, %v485_v62  ;;  %4671 = vmatmul.mubr.msk.f32.vlgmr.msra.gmra.mrb[8].mxu1 %vm49_vm3, %v485_v62 }
 0x588   :  { %4662 = vmatpush3.msk.msra.mxu0 %vm127_vm0, %v5333_v4  ;;  %4663 = vmatprep.mubr.msk.f32.mxu0 %vm5258_vm2, %v5257_v3 }
 0x589   :  { %4938 = vmatprep.subr.bf16.mxu0 %v5256_v0  ;;  %4681 = vmatpush3.msk.msra.mxu1 %vm127_vm0, %v5387_v30 }
 0x58a   :  { %4682 = vmatprep.mubr.msk.f32.mxu1 %vm5258_vm2, %v5257_v3  ;;  %4944 = vmatprep.subr.bf16.mxu1 %v5256_v0 }
 0x58b   :  { %4664 = vmatmul.mubr.msk.f32.vlgmr.msra.gmra.mrb[6].mxu0 %vm123_vm1, %v4397_v63 }
 0x58c   :  { %4940 = vmatpush3.bf16.msra.mxu0 %v5380_v29  ;;  %4677 = vmatprep.mubr.msk.f32.mxu0 %vm5258_vm2, %v5257_v3 }
 0x58d   :  { %4941 = vmatprep.subr.bf16.mxu0 %v5256_v0 }
 0x65a   :  { %v554_v1 = vpop.f32.mrb[4].mxu0  ;;  %v5455_v2 = vpop.f32.mrb[8].mxu1 }
 0x65b   :  { %v555_v6 = vadd.f32 %v554_v1, %v479_v36  ;;  %v4653_v7 = vpop.f32.mrb[5].mxu0  ;;  %v4672_v8 = vpop.f32.mrb[9].mxu1 }
 0x65d   :  { %v564_v27 = vadd.f32 %v5464_v22, %v555_v6 }
 0x65e   :  { %v757_v10 = vpop.f32.mrb[6].mxu0 }
 0x65f   :  { %v758_v11 = vadd.f32 %v757_v10, %v684_v41  ;;  %v4665_v12 = vpop.f32.mrb[7].mxu0 }
 0x661   :  { %v761_v13 = vadd.f32 %v5358_v9, %v758_v11 }
 0x663   :  { %5043 = vtanh.f32 %v761_v13  ;;  %v4401_v15 = vmul.f32 -1.442695, %v761_v13 }
 0x665   :  { %5045 = vpow2.f32 %v4401_v15 }
 0x66d   :  { %v5044_v14 = vpop.eup %5043 }
 0x66e   :  { %771 = vrot.lane.b32.xlu0 %v5044_v14, %s5259_s22 }
 0x66f   :  { %v5046_v16 = vpop.eup %5045 }
 0x670   :  { %v765_v17 = vadd.f32 1.0, %v5046_v16 }
 0x672   :  { %5047 = vrcp.f32 %v765_v17 }
 0x67c   :  { %v5048_v18 = vpop.eup %5047 }
 0x67d   :  { %v769_v21 = vmul.f32 %v5048_v18, %v5363_v23  ;;  %v4396_v23 = vmul.f32 -1.442695, %v564_v27 }
 0x6e0   :  { %v772_v19 = vpop.permute.xlu0 %771 }
 0x6e1   :  { %v774_v20 = vmul.f32 %v5048_v18, %v772_v19 }
 0x6e3   :  { %776 = vrot.lane.b32.xlu1 %v774_v20, %s5260_s23 }
 0x755   :  { %v777_v24 = vpop.permute.xlu1 %776 }
 0x756   :  { %v5466_v25 = vadd.f32 %v777_v24, %v769_v21 }
 0x758   :  { %5049 = vtanh.f32 %v5466_v25 }
 0x759   :  { %5051 = vtanh.f32 %v564_v27 }
 0x75a   :  { %5053 = vpow2.f32 %v4396_v23 }
 0x762   :  { %v5050_v28 = vpop.eup %5049 }
 0x763   :  { %782 = vrot.lane.b32.xlu0 %v5050_v28, %s5261_s4  ;;  %v5052_v31 = vpop.eup %5051 }
 0x764   :  { %v5054_v32 = vpop.eup %5053 }
 0x765   :  { %v568_v33 = vadd.f32 1.0, %v5054_v32 }
 0x767   :  { %574 = vrot.lane.b32.xlu0 %v5052_v31, %s5263_s24  ;;  %5055 = vrcp.f32 %v568_v33 }
 0x771   :  { %v5056_v36 = vpop.eup %5055 }
 0x772   :  { %v572_v41 = vmul.f32 0.0, %v5056_v36 }
 0x7d5   :  { %v783_v34 = vpop.permute.xlu0 %782 }
 0x7d6   :  { %v785_v35 = vmul.f32 %v5048_v18, %v783_v34 }
 0x7d8   :  { %857 = vrot.lane.b32.xlu1 %v785_v35, %s5262_s5 }
 0x7d9   :  { %v575_v37 = vpop.permute.xlu0 %574 }
 0x7da   :  { %v577_v38 = vmul.f32 %v5056_v36, %v575_v37 }
 0x7dc   :  { %579 = vrot.lane.b32.xlu0 %v577_v38, %s5264_s25 }
 0x84a   :  { %v858_v40 = vpop.permute.xlu1 %857 }
 0x84b   :  { %4678 = vmatmul.mubr.msk.f32.vlgmr.msra.gmra.mrb[8].mxu0 %vm49_vm3, %v858_v40 }
 0x84c   :  { %4943 = vmatpush3.bf16.msra.mxu0 %v5429_v58  ;;  %4689 = vmatprep.mubr.msk.f32.mxu0 %vm5258_vm2, %v5257_v3 }
 0x84d   :  { %4699 = vmatprep.subr.mxu0 %v5257_v3 }
 0x84e   :  { %v580_v42 = vpop.permute.xlu0 %579 }
 0x84f   :  { %v5479_v43 = vadd.f32 %v580_v42, %v572_v41 }
 0x851   :  { %5057 = vtanh.f32 %v5479_v43 }
 0x85b   :  { %v5058_v44 = vpop.eup %5057 }
 0x85c   :  { %585 = vrot.lane.b32.xlu0 %v5058_v44, %s5265_s26 }
 0x8ce   :  { %v586_v45 = vpop.permute.xlu0 %585 }
 0x8cf   :  { %v5483_v46 = vmul.f32 %v5056_v36, %v586_v45 }
 0x8d1   :  { %611 = vrot.lane.b32.xlu0 %v5483_v46, %s5266_s27 }
 0x91e   :  { %v927_v47 = vpop.f32.mrb[8].mxu0 }
 0x91f   :  { %v928_v48 = vadd.f32 %v927_v47, %v5455_v2  ;;  %v4679_v49 = vpop.f32.mrb[9].mxu0 }
 0x921   :  { %v931_v50 = vadd.f32 %v5415_v39, %v928_v48 }
 0x923   :  { %5059 = vtanh.f32 %v931_v50  ;;  %v4404_v53 = vmul.f32 -1.442695, %v931_v50 }
 0x925   :  { %5061 = vpow2.f32 %v4404_v53 }
 0x92d   :  { %v5060_v51 = vpop.eup %5059 }
 0x92e   :  { %941 = vrot.lane.b32.xlu1 %v5060_v51, %s5259_s22 }
 0x92f   :  { %v5062_v54 = vpop.eup %5061 }
 0x930   :  { %v935_v56 = vadd.f32 1.0, %v5062_v54 }
 0x932   :  { %5063 = vrcp.f32 %v935_v56 }
 0x93c   :  { %v5064_v57 = vpop.eup %5063 }
 0x93d   :  { %v939_v61 = vmul.f32 %v5064_v57, %v5420_v55  ;;  %v4410_v55 = vld [vmem:[%s6033_s0 + $0x10] sm:$0xff] }
 0x943   :  { %v5490_v52 = vpop.permute.xlu0 %611 }
 0x944   :  { %4683 = vmatmul.mubr.msk.f32.vlgmr.msra.gmra.mrb[10].mxu1 %vm123_vm1, %v5490_v52 }
 0x945   :  { %4946 = vmatpush3.bf16.msra.mxu1 %v5335_v5  ;;  %4696 = vmatprep.mubr.msk.f32.mxu1 %vm5258_vm2, %v5257_v3 }
 0x946   :  { %4947 = vmatprep.subr.bf16.mxu1 %v5256_v0 }
 0x948   :  { %4697 = vmatmul.mubr.msk.f32.vlgmr.msra.gmra.mrb[12].mxu1 %vm49_vm3, %v858_v40 }
 0x949   :  { %4949 = vmatpush3.bf16.msra.mxu1 %v5372_v26  ;;  %4708 = vmatprep.mubr.msk.f32.mxu1 %vm5258_vm2, %v5257_v3 }
 0x94a   :  { %4718 = vmatprep.subr.mxu1 %v5257_v3 }
 0x9a0   :  { %v942_v59 = vpop.permute.xlu1 %941 }
 0x9a1   :  { %v944_v60 = vmul.f32 %v5064_v57, %v942_v59 }
 0x9a3   :  { %946 = vrot.lane.b32.xlu1 %v944_v60, %s5260_s23 }
 0xa15   :  { %v947_v62 = vpop.permute.xlu1 %946 }
 0xa16   :  { %v5505_v63 = vadd.f32 %v947_v62, %v939_v61 }
 0xa17   :  { %v1024_v1 = vpop.f32.mrb[10].mxu1 }
 0xa18   :  { %5065 = vtanh.f32 %v5505_v63  ;;  %v4684_v2 = vpop.f32.mrb[11].mxu1 }
 0xa1b   :  { %v1222_v6 = vpop.f32.mrb[12].mxu1 }
 0xa1c   :  { %v4698_v7 = vpop.f32.mrb[13].mxu1 }
 0xa22   :  { %v5066_v8 = vpop.eup %5065 }
 0xa23   :  { %952 = vrot.lane.b32.xlu1 %v5066_v8, %s5261_s4 }
 0xa95   :  { %v953_v10 = vpop.permute.xlu1 %952 }
 0xa96   :  { %v955_v11 = vmul.f32 %v5064_v57, %v953_v10 }
 0xa98   :  { %1029 = vrot.lane.b32.xlu1 %v955_v11, %s5262_s5 }
 0xb0a   :  { %v1030_v12 = vpop.permute.xlu1 %1029 }
 0xb0b   :  { %4690 = vmatmul.mubr.msk.f32.vlgmr.msra.gmra.mrb[10].mxu0 %vm49_vm3, %v1030_v12  ;;  %4709 = vmatmul.mubr.msk.f32.vlgmr.msra.gmra.mrb[14].mxu1 %vm49_vm3, %v1030_v12 }
 0xb0c   :  { %4700 = vmatpush3.msk.msra.mxu0 %vm127_vm0, %v5333_v4  ;;  %4701 = vmatprep.mubr.msk.f32.mxu0 %vm5258_vm2, %v5257_v3 }
 0xb0d   :  { %4950 = vmatprep.subr.bf16.mxu0 %v5256_v0  ;;  %4719 = vmatpush3.msk.msra.mxu1 %vm127_vm0, %v5387_v30 }
 0xb0e   :  { %4720 = vmatprep.mubr.msk.f32.mxu1 %vm5258_vm2, %v5257_v3  ;;  %4956 = vmatprep.subr.bf16.mxu1 %v5256_v0 }
 0xb0f   :  { %4702 = vmatmul.mubr.msk.f32.vlgmr.msra.gmra.mrb[12].mxu0 %vm123_vm1, %v4410_v55 }
 0xb10   :  { %4952 = vmatpush3.bf16.msra.mxu0 %v5380_v29  ;;  %4715 = vmatprep.mubr.msk.f32.mxu0 %vm5258_vm2, %v5257_v3 }
 0xb11   :  { %4953 = vmatprep.subr.bf16.mxu0 %v5256_v0 }
 0xbde   :  { %v1099_v13 = vpop.f32.mrb[10].mxu0  ;;  %v1390_v14 = vpop.f32.mrb[14].mxu1 }
 0xbdf   :  { %v1100_v15 = vadd.f32 %v1099_v13, %v1024_v1  ;;  %v4691_v16 = vpop.f32.mrb[11].mxu0  ;;  %v4710_v17 = vpop.f32.mrb[15].mxu1 }
 0xbe1   :  { %v1103_v37 = vadd.f32 %v5464_v22, %v1100_v15 }
 0xbe2   :  { %v1295_v18 = vpop.f32.mrb[12].mxu0 }
 0xbe3   :  { %v1296_v19 = vadd.f32 %v1295_v18, %v1222_v6  ;;  %v4703_v20 = vpop.f32.mrb[13].mxu0  ;;  %v4408_v41 = vmul.f32 -1.442695, %v1103_v37 }
 0xbe5   :  { %v1299_v21 = vadd.f32 %v5358_v9, %v1296_v19 }
 0xbe7   :  { %5067 = vtanh.f32 %v1299_v21  ;;  %v4414_v27 = vmul.f32 -1.442695, %v1299_v21 }
 0xbe9   :  { %5069 = vpow2.f32 %v4414_v27 }
 0xbf1   :  { %v5068_v24 = vpop.eup %5067 }
 0xbf2   :  { %1309 = vrot.lane.b32.xlu0 %v5068_v24, %s5259_s22 }
 0xbf3   :  { %v5070_v28 = vpop.eup %5069 }
 0xbf4   :  { %v1303_v31 = vadd.f32 1.0, %v5070_v28 }
 0xbf6   :  { %5071 = vrcp.f32 %v1303_v31 }
 0xc00   :  { %v5072_v23 = vpop.eup %5071 }
 0xc01   :  { %v1307_v34 = vmul.f32 %v5072_v23, %v5466_v25 }
 0xc64   :  { %v1310_v32 = vpop.permute.xlu0 %1309 }
 0xc65   :  { %v1312_v33 = vmul.f32 %v5072_v23, %v1310_v32 }
 0xc67   :  { %1314 = vrot.lane.b32.xlu1 %v1312_v33, %s5260_s23 }
 0xcd9   :  { %v1315_v35 = vpop.permute.xlu1 %1314 }
 0xcda   :  { %v5534_v36 = vadd.f32 %v1315_v35, %v1307_v34 }
 0xcdc   :  { %5073 = vtanh.f32 %v5534_v36 }
 0xcdd   :  { %5075 = vtanh.f32 %v1103_v37 }
 0xcde   :  { %5077 = vpow2.f32 %v4408_v41 }
 0xce6   :  { %v5074_v38 = vpop.eup %5073 }
 0xce7   :  { %1320 = vrot.lane.b32.xlu0 %v5074_v38, %s5261_s4  ;;  %v5076_v40 = vpop.eup %5075 }
 0xce8   :  { %v5078_v42 = vpop.eup %5077 }
 0xce9   :  { %v1107_v44 = vadd.f32 1.0, %v5078_v42 }
 0xceb   :  { %1113 = vrot.lane.b32.xlu0 %v5076_v40, %s5263_s24  ;;  %5079 = vrcp.f32 %v1107_v44 }
 0xcf5   :  { %v5080_v47 = vpop.eup %5079 }
 0xcf6   :  { %v1111_v51 = vmul.f32 %v5080_v47, %v5479_v43 }
 0xd59   :  { %v1321_v25 = vpop.permute.xlu0 %1320 }
 0xd5a   :  { %v1323_v45 = vmul.f32 %v5072_v23, %v1321_v25 }
 0xd5c   :  { %1395 = vrot.lane.b32.xlu1 %v1323_v45, %s5262_s5 }
 0xd5d   :  { %v1114_v48 = vpop.permute.xlu0 %1113 }
 0xd5e   :  { %v1116_v49 = vmul.f32 %v5080_v47, %v1114_v48 }
 0xd60   :  { %1118 = vrot.lane.b32.xlu0 %v1116_v49, %s5264_s25 }
 0xdce   :  { %v1396_v50 = vpop.permute.xlu1 %1395 }
 0xdcf   :  { %4716 = vmatmul.mubr.msk.f32.vlgmr.msra.gmra.mrb[14].mxu0 %vm49_vm3, %v1396_v50 }
 0xdd0   :  { %4955 = vmatpush3.bf16.msra.mxu0 %v5429_v58  ;;  %4727 = vmatprep.mubr.msk.f32.mxu0 %vm5258_vm2, %v5257_v3 }
 0xdd1   :  { %4737 = vmatprep.subr.mxu0 %v5257_v3 }
 0xdd2   :  { %v1119_v53 = vpop.permute.xlu0 %1118 }
 0xdd3   :  { %v5548_v54 = vadd.f32 %v1119_v53, %v1111_v51 }
 0xdd5   :  { %5081 = vtanh.f32 %v5548_v54 }
 0xddf   :  { %v5082_v56 = vpop.eup %5081 }
 0xde0   :  { %1124 = vrot.lane.b32.xlu0 %v5082_v56, %s5265_s26 }
 0xe52   :  { %v1125_v57 = vpop.permute.xlu0 %1124 }
 0xe53   :  { %v5552_v59 = vmul.f32 %v5080_v47, %v1125_v57 }
 0xe55   :  { %1148 = vrot.lane.b32.xlu0 %v5552_v59, %s5266_s27 }
 0xea2   :  { %v1465_v60 = vpop.f32.mrb[14].mxu0 }
 0xea3   :  { %v1466_v61 = vadd.f32 %v1465_v60, %v1390_v14  ;;  %v4717_v62 = vpop.f32.mrb[15].mxu0 }
 0xea5   :  { %v1469_v43 = vadd.f32 %v5415_v39, %v1466_v61 }
 0xea7   :  { %5083 = vtanh.f32 %v1469_v43  ;;  %v4417_v6 = vmul.f32 -1.442695, %v1469_v43 }
 0xea9   :  { %5085 = vpow2.f32 %v4417_v6 }
 0xeb1   :  { %v5084_v1 = vpop.eup %5083 }
 0xeb2   :  { %1479 = vrot.lane.b32.xlu1 %v5084_v1, %s5259_s22 }
 0xeb3   :  { %v5086_v7 = vpop.eup %5085 }
 0xeb4   :  { %v1473_v8 = vadd.f32 1.0, %v5086_v7 }
 0xeb6   :  { %5087 = vrcp.f32 %v1473_v8 }
 0xec0   :  { %v5088_v10 = vpop.eup %5087 }
 0xec1   :  { %v1477_v55 = vmul.f32 %v5088_v10, %v5505_v63  ;;  %v4423_v63 = vld [vmem:[%s6033_s0 + $0x18] sm:$0xff] }
 0xec7   :  { %v5558_v2 = vpop.permute.xlu0 %1148 }
 0xec8   :  { %4721 = vmatmul.mubr.msk.f32.vlgmr.msra.gmra.mrb[16].mxu1 %vm123_vm1, %v5558_v2 }
 0xec9   :  { %4958 = vmatpush3.bf16.msra.mxu1 %v5335_v5  ;;  %4734 = vmatprep.mubr.msk.f32.mxu1 %vm5258_vm2, %v5257_v3 }
 0xeca   :  { %4959 = vmatprep.subr.bf16.mxu1 %v5256_v0 }
 0xecc   :  { %4735 = vmatmul.mubr.msk.f32.vlgmr.msra.gmra.mrb[18].mxu1 %vm49_vm3, %v1396_v50 }
 0xecd   :  { %4961 = vmatpush3.bf16.msra.mxu1 %v5372_v26  ;;  %4746 = vmatprep.mubr.msk.f32.mxu1 %vm5258_vm2, %v5257_v3 }
 0xece   :  { %4756 = vmatprep.subr.mxu1 %v5257_v3 }
 0xf24   :  { %v1480_v11 = vpop.permute.xlu1 %1479 }
 0xf25   :  { %v1482_v12 = vmul.f32 %v5088_v10, %v1480_v11 }
 0xf27   :  { %1484 = vrot.lane.b32.xlu1 %v1482_v12, %s5260_s23 }
 0xf99   :  { %v1485_v13 = vpop.permute.xlu1 %1484 }
 0xf9a   :  { %v5573_v14 = vadd.f32 %v1485_v13, %v1477_v55 }
 0xf9b   :  { %v1562_v15 = vpop.f32.mrb[16].mxu1 }
 0xf9c   :  { %5089 = vtanh.f32 %v5573_v14  ;;  %v4722_v16 = vpop.f32.mrb[17].mxu1 }
 0xf9f   :  { %v1760_v17 = vpop.f32.mrb[18].mxu1 }
 0xfa0   :  { %v4736_v18 = vpop.f32.mrb[19].mxu1 }
 0xfa6   :  { %v5090_v19 = vpop.eup %5089 }
 0xfa7   :  { %1490 = vrot.lane.b32.xlu1 %v5090_v19, %s5261_s4 }
0x1019   :  { %v1491_v20 = vpop.permute.xlu1 %1490 }
0x101a   :  { %v1493_v21 = vmul.f32 %v5088_v10, %v1491_v20 }
0x101c   :  { %1567 = vrot.lane.b32.xlu1 %v1493_v21, %s5262_s5 }
0x108e   :  { %v1568_v24 = vpop.permute.xlu1 %1567 }
0x108f   :  { %4728 = vmatmul.mubr.msk.f32.vlgmr.msra.gmra.mrb[16].mxu0 %vm49_vm3, %v1568_v24  ;;  %4747 = vmatmul.mubr.msk.f32.vlgmr.msra.gmra.mrb[20].mxu1 %vm49_vm3, %v1568_v24 }
0x1090   :  { %4738 = vmatpush3.msk.msra.mxu0 %vm127_vm0, %v5333_v4  ;;  %4739 = vmatprep.mubr.msk.f32.mxu0 %vm5258_vm2, %v5257_v3 }
0x1091   :  { %4962 = vmatprep.subr.bf16.mxu0 %v5256_v0  ;;  %4757 = vmatpush3.msk.msra.mxu1 %vm127_vm0, %v5387_v30 }
0x1092   :  { %4758 = vmatprep.mubr.msk.f32.mxu1 %vm5258_vm2, %v5257_v3  ;;  %4968 = vmatprep.subr.bf16.mxu1 %v5256_v0 }
0x1093   :  { %4740 = vmatmul.mubr.msk.f32.vlgmr.msra.gmra.mrb[18].mxu0 %vm123_vm1, %v4423_v63 }
0x1094   :  { %4964 = vmatpush3.bf16.msra.mxu0 %v5380_v29  ;;  %4753 = vmatprep.mubr.msk.f32.mxu0 %vm5258_vm2, %v5257_v3 }
0x1095   :  { %4965 = vmatprep.subr.bf16.mxu0 %v5256_v0 }
0x1162   :  { %v1637_v27 = vpop.f32.mrb[16].mxu0  ;;  %v1928_v28 = vpop.f32.mrb[20].mxu1 }
0x1163   :  { %v1638_v31 = vadd.f32 %v1637_v27, %v1562_v15  ;;  %v4729_v23 = vpop.f32.mrb[17].mxu0  ;;  %v4748_v32 = vpop.f32.mrb[21].mxu1 }
0x1165   :  { %v1641_v50 = vadd.f32 %v5464_v22, %v1638_v31 }
0x1166   :  { %v1833_v33 = vpop.f32.mrb[18].mxu0 }
0x1167   :  { %v1834_v34 = vadd.f32 %v1833_v33, %v1760_v17  ;;  %v4741_v35 = vpop.f32.mrb[19].mxu0  ;;  %v4421_v56 = vmul.f32 -1.442695, %v1641_v50 }
0x1169   :  { %v1837_v37 = vadd.f32 %v5358_v9, %v1834_v34 }
0x116b   :  { %5091 = vtanh.f32 %v1837_v37  ;;  %v4427_v40 = vmul.f32 -1.442695, %v1837_v37 }
0x116d   :  { %5093 = vpow2.f32 %v4427_v40 }
0x1175   :  { %v5092_v38 = vpop.eup %5091 }
0x1176   :  { %1847 = vrot.lane.b32.xlu0 %v5092_v38, %s5259_s22 }
0x1177   :  { %v5094_v41 = vpop.eup %5093 }
0x1178   :  { %v1841_v42 = vadd.f32 1.0, %v5094_v41 }
0x117a   :  { %5095 = vrcp.f32 %v1841_v42 }
0x1184   :  { %v5096_v44 = vpop.eup %5095 }
0x1185   :  { %v1845_v47 = vmul.f32 %v5096_v44, %v5534_v36 }
0x11e8   :  { %v1848_v25 = vpop.permute.xlu0 %1847 }
0x11e9   :  { %v1850_v45 = vmul.f32 %v5096_v44, %v1848_v25 }
0x11eb   :  { %1852 = vrot.lane.b32.xlu1 %v1850_v45, %s5260_s23 }
0x125d   :  { %v1853_v48 = vpop.permute.xlu1 %1852 }
0x125e   :  { %v5602_v49 = vadd.f32 %v1853_v48, %v1845_v47 }
0x1260   :  { %5097 = vtanh.f32 %v5602_v49 }
0x1261   :  { %5099 = vtanh.f32 %v1641_v50 }
0x1262   :  { %5101 = vpow2.f32 %v4421_v56 }
0x126a   :  { %v5098_v51 = vpop.eup %5097 }
0x126b   :  { %1858 = vrot.lane.b32.xlu0 %v5098_v51, %s5261_s4  ;;  %v5100_v53 = vpop.eup %5099 }
0x126c   :  { %v5102_v57 = vpop.eup %5101 }
0x126d   :  { %v1645_v60 = vadd.f32 1.0, %v5102_v57 }
0x126f   :  { %1651 = vrot.lane.b32.xlu0 %v5100_v53, %s5263_s24  ;;  %5103 = vrcp.f32 %v1645_v60 }
0x1279   :  { %v5104_v62 = vpop.eup %5103 }
0x127a   :  { %v1649_v7 = vmul.f32 %v5104_v62, %v5548_v54 }
0x12dd   :  { %v1859_v36 = vpop.permute.xlu0 %1858 }
0x12de   :  { %v1861_v61 = vmul.f32 %v5096_v44, %v1859_v36 }
0x12e0   :  { %1933 = vrot.lane.b32.xlu1 %v1861_v61, %s5262_s5 }
0x12e1   :  { %v1652_v43 = vpop.permute.xlu0 %1651 }
0x12e2   :  { %v1654_v1 = vmul.f32 %v5104_v62, %v1652_v43 }
0x12e4   :  { %1656 = vrot.lane.b32.xlu0 %v1654_v1, %s5264_s25 }
0x1352   :  { %v1934_v6 = vpop.permute.xlu1 %1933 }
0x1353   :  { %4754 = vmatmul.mubr.msk.f32.vlgmr.msra.gmra.mrb[20].mxu0 %vm49_vm3, %v1934_v6 }
0x1354   :  { %4967 = vmatpush3.bf16.msra.mxu0 %v5429_v58  ;;  %4765 = vmatprep.mubr.msk.f32.mxu0 %vm5258_vm2, %v5257_v3 }
0x1355   :  { %4775 = vmatprep.subr.mxu0 %v5257_v3 }
0x1356   :  { %v1657_v8 = vpop.permute.xlu0 %1656 }
0x1357   :  { %v5616_v10 = vadd.f32 %v1657_v8, %v1649_v7 }
0x1359   :  { %5105 = vtanh.f32 %v5616_v10 }
0x1363   :  { %v5106_v11 = vpop.eup %5105 }
0x1364   :  { %1662 = vrot.lane.b32.xlu0 %v5106_v11, %s5265_s26 }
0x13d6   :  { %v1663_v12 = vpop.permute.xlu0 %1662 }
0x13d7   :  { %v5620_v55 = vmul.f32 %v5104_v62, %v1663_v12 }
0x13d9   :  { %1686 = vrot.lane.b32.xlu0 %v5620_v55, %s5266_s27 }
0x1426   :  { %v2003_v13 = vpop.f32.mrb[20].mxu0 }
0x1427   :  { %v2004_v15 = vadd.f32 %v2003_v13, %v1928_v28  ;;  %v4755_v16 = vpop.f32.mrb[21].mxu0 }
0x1429   :  { %v2007_v54 = vadd.f32 %v5415_v39, %v2004_v15 }
0x142b   :  { %5107 = vtanh.f32 %v2007_v54  ;;  %v4430_v19 = vmul.f32 -1.442695, %v2007_v54 }
0x142d   :  { %5109 = vpow2.f32 %v4430_v19 }
0x1435   :  { %v5108_v17 = vpop.eup %5107 }
0x1436   :  { %2017 = vrot.lane.b32.xlu1 %v5108_v17, %s5259_s22 }
0x1437   :  { %v5110_v20 = vpop.eup %5109 }
0x1438   :  { %v2011_v21 = vadd.f32 1.0, %v5110_v20 }
0x143a   :  { %5111 = vrcp.f32 %v2011_v21 }
0x1444   :  { %v5112_v24 = vpop.eup %5111 }
0x1445   :  { %v2015_v28 = vmul.f32 %v5112_v24, %v5573_v14  ;;  %v4436_v14 = vld [vmem:[%s6033_s0 + $0x20] sm:$0xff] }
0x144b   :  { %v5626_v18 = vpop.permute.xlu0 %1686 }
0x144c   :  { %4759 = vmatmul.mubr.msk.f32.vlgmr.msra.gmra.mrb[22].mxu1 %vm123_vm1, %v5626_v18 }
0x144d   :  { %4970 = vmatpush3.bf16.msra.mxu1 %v5335_v5  ;;  %4772 = vmatprep.mubr.msk.f32.mxu1 %vm5258_vm2, %v5257_v3 }
0x144e   :  { %4971 = vmatprep.subr.bf16.mxu1 %v5256_v0 }
0x1450   :  { %4773 = vmatmul.mubr.msk.f32.vlgmr.msra.gmra.mrb[24].mxu1 %vm49_vm3, %v1934_v6 }
0x1451   :  { %4973 = vmatpush3.bf16.msra.mxu1 %v5372_v26  ;;  %4784 = vmatprep.mubr.msk.f32.mxu1 %vm5258_vm2, %v5257_v3 }
0x1452   :  { %4794 = vmatprep.subr.mxu1 %v5257_v3 }
0x14a8   :  { %v2018_v63 = vpop.permute.xlu1 %2017 }
0x14a9   :  { %v2020_v27 = vmul.f32 %v5112_v24, %v2018_v63 }
0x14ab   :  { %2022 = vrot.lane.b32.xlu1 %v2020_v27, %s5260_s23 }
0x151d   :  { %v2023_v31 = vpop.permute.xlu1 %2022 }
0x151e   :  { %v5641_v23 = vadd.f32 %v2023_v31, %v2015_v28 }
0x151f   :  { %v2100_v32 = vpop.f32.mrb[22].mxu1 }
0x1520   :  { %5113 = vtanh.f32 %v5641_v23  ;;  %v4760_v33 = vpop.f32.mrb[23].mxu1 }
0x1523   :  { %v2298_v34 = vpop.f32.mrb[24].mxu1 }
0x1524   :  { %v4774_v35 = vpop.f32.mrb[25].mxu1 }
0x152a   :  { %v5114_v37 = vpop.eup %5113 }
0x152b   :  { %2028 = vrot.lane.b32.xlu1 %v5114_v37, %s5261_s4 }
0x159d   :  { %v2029_v38 = vpop.permute.xlu1 %2028 }
0x159e   :  { %v2031_v40 = vmul.f32 %v5112_v24, %v2029_v38 }
0x15a0   :  { %2105 = vrot.lane.b32.xlu1 %v2031_v40, %s5262_s5 }
0x1612   :  { %v2106_v41 = vpop.permute.xlu1 %2105 }
0x1613   :  { %4766 = vmatmul.mubr.msk.f32.vlgmr.msra.gmra.mrb[22].mxu0 %vm49_vm3, %v2106_v41  ;;  %4785 = vmatmul.mubr.msk.f32.vlgmr.msra.gmra.mrb[26].mxu1 %vm49_vm3, %v2106_v41 }
0x1614   :  { %4776 = vmatpush3.msk.msra.mxu0 %vm127_vm0, %v5333_v4  ;;  %4777 = vmatprep.mubr.msk.f32.mxu0 %vm5258_vm2, %v5257_v3 }
0x1615   :  { %4974 = vmatprep.subr.bf16.mxu0 %v5256_v0  ;;  %4795 = vmatpush3.msk.msra.mxu1 %vm127_vm0, %v5387_v30 }
0x1616   :  { %4796 = vmatprep.mubr.msk.f32.mxu1 %vm5258_vm2, %v5257_v3  ;;  %4980 = vmatprep.subr.bf16.mxu1 %v5256_v0 }
0x1617   :  { %4778 = vmatmul.mubr.msk.f32.vlgmr.msra.gmra.mrb[24].mxu0 %vm123_vm1, %v4436_v14 }
0x1618   :  { %4976 = vmatpush3.bf16.msra.mxu0 %v5380_v29  ;;  %4791 = vmatprep.mubr.msk.f32.mxu0 %vm5258_vm2, %v5257_v3 }
0x1619   :  { %4977 = vmatprep.subr.bf16.mxu0 %v5256_v0 }
0x16e6   :  { %v2175_v4 = vpop.f32.mrb[22].mxu0  ;;  %v2466_v42 = vpop.f32.mrb[26].mxu1 }
0x16e7   :  { %v2176_v44 = vadd.f32 %v2175_v4, %v2100_v32  ;;  %v4767_v25 = vpop.f32.mrb[23].mxu0  ;;  %v4786_v45 = vpop.f32.mrb[27].mxu1 }
0x16ea   :  { %v2371_v30 = vpop.f32.mrb[24].mxu0 }
0x16eb   :  { %v2372_v47 = vadd.f32 %v2371_v30, %v2298_v34  ;;  %v4779_v48 = vpop.f32.mrb[25].mxu0 }
0x16ed   :  { %v2375_v50 = vadd.f32 %v5358_v9, %v2372_v47  ;;  %v2179_v9 = vadd.f32 %v5464_v22, %v2176_v44 }
0x16ef   :  { %5115 = vtanh.f32 %v2375_v50  ;;  %v4440_v53 = vmul.f32 -1.442695, %v2375_v50  ;;  %v4434_v8 = vmul.f32 -1.442695, %v2179_v9 }
0x16f1   :  { %5117 = vpow2.f32 %v4440_v53  ;;  %v4449_v53 = vld [vmem:[%s6033_s0 + $0x28] sm:$0xff] }
0x16f9   :  { %v5116_v51 = vpop.eup %5115 }
0x16fa   :  { %2385 = vrot.lane.b32.xlu0 %v5116_v51, %s5259_s22 }
0x16fb   :  { %v5118_v56 = vpop.eup %5117 }
0x16fc   :  { %v2379_v57 = vadd.f32 1.0, %v5118_v56  ;;  %v5732_v56 = vld [vmem:[%s6037_s8] sm:$0x3f] }
0x16fe   :  { %5119 = vrcp.f32 %v2379_v57 }
0x1708   :  { %v5120_v60 = vpop.eup %5119 }
0x1709   :  { %v2383_v62 = vmul.f32 %v5120_v60, %v5602_v49 }
0x176c   :  { %v2386_v36 = vpop.permute.xlu0 %2385 }
0x176d   :  { %v2388_v61 = vmul.f32 %v5120_v60, %v2386_v36 }
0x176f   :  { %2390 = vrot.lane.b32.xlu1 %v2388_v61, %s5260_s23 }
0x17e1   :  { %v2391_v43 = vpop.permute.xlu1 %2390 }
0x17e2   :  { %v5670_v1 = vadd.f32 %v2391_v43, %v2383_v62 }
0x17e4   :  { %5121 = vtanh.f32 %v5670_v1 }
0x17e5   :  { %5123 = vtanh.f32 %v2179_v9 }
0x17e6   :  { %5125 = vpow2.f32 %v4434_v8 }
0x17ee   :  { %v5122_v6 = vpop.eup %5121 }
0x17ef   :  { %2396 = vrot.lane.b32.xlu0 %v5122_v6, %s5261_s4  ;;  %v5124_v7 = vpop.eup %5123 }
0x17f0   :  { %v5126_v11 = vpop.eup %5125 }
0x17f1   :  { %v2183_v12 = vadd.f32 1.0, %v5126_v11 }
0x17f3   :  { %2189 = vrot.lane.b32.xlu0 %v5124_v7, %s5263_s24  ;;  %5127 = vrcp.f32 %v2183_v12  ;;  %v5747_v7 = vld [vmem:[%s6034_s3] ss:$0 sm:$0xff] }
0x17fd   :  { %v5128_v15 = vpop.eup %5127 }
0x17fe   :  { %v2187_v19 = vmul.f32 %v5128_v15, %v5616_v10 }
0x1861   :  { %v2397_v49 = vpop.permute.xlu0 %2396 }
0x1862   :  { %v2399_v13 = vmul.f32 %v5120_v60, %v2397_v49 }
0x1864   :  { %2471 = vrot.lane.b32.xlu1 %v2399_v13, %s5262_s5 }
0x1865   :  { %v2190_v16 = vpop.permute.xlu0 %2189 }
0x1866   :  { %v2192_v54 = vmul.f32 %v5128_v15, %v2190_v16 }
0x1868   :  { %2194 = vrot.lane.b32.xlu0 %v2192_v54, %s5264_s25 }
0x18d6   :  { %v2472_v17 = vpop.permute.xlu1 %2471 }
0x18d7   :  { %4792 = vmatmul.mubr.msk.f32.vlgmr.msra.gmra.mrb[26].mxu0 %vm49_vm3, %v2472_v17 }
0x18d8   :  { %4979 = vmatpush3.bf16.msra.mxu0 %v5429_v58  ;;  %4803 = vmatprep.mubr.msk.f32.mxu0 %vm5258_vm2, %v5257_v3 }
0x18d9   :  { %4813 = vmatprep.subr.mxu0 %v5257_v3 }
0x18da   :  { %v2195_v20 = vpop.permute.xlu0 %2194 }
0x18db   :  { %v5684_v21 = vadd.f32 %v2195_v20, %v2187_v19 }
0x18dd   :  { %5129 = vtanh.f32 %v5684_v21 }
0x18e7   :  { %v5130_v24 = vpop.eup %5129 }
0x18e8   :  { %2200 = vrot.lane.b32.xlu0 %v5130_v24, %s5265_s26 }
0x195a   :  { %v2201_v63 = vpop.permute.xlu0 %2200 }
0x195b   :  { %v5688_v27 = vmul.f32 %v5128_v15, %v2201_v63 }
0x195d   :  { %2224 = vrot.lane.b32.xlu0 %v5688_v27, %s5266_s27 }
0x19aa   :  { %v2541_v28 = vpop.f32.mrb[26].mxu0 }
0x19ab   :  { %v2542_v31 = vadd.f32 %v2541_v28, %v2466_v42  ;;  %v4793_v32 = vpop.f32.mrb[27].mxu0 }
0x19ad   :  { %v2545_v10 = vadd.f32 %v5415_v39, %v2542_v31 }
0x19af   :  { %5131 = vtanh.f32 %v2545_v10  ;;  %v4443_v39 = vmul.f32 -1.442695, %v2545_v10 }
0x19b1   :  { %5133 = vpow2.f32 %v4443_v39 }
0x19b9   :  { %v5132_v33 = vpop.eup %5131 }
0x19ba   :  { %2555 = vrot.lane.b32.xlu1 %v5132_v33, %s5259_s22 }
0x19bb   :  { %v5134_v35 = vpop.eup %5133 }
0x19bc   :  { %v2549_v37 = vadd.f32 1.0, %v5134_v35 }
0x19be   :  { %5135 = vrcp.f32 %v2549_v37 }
0x19c8   :  { %v5136_v38 = vpop.eup %5135 }
0x19c9   :  { %v2553_v14 = vmul.f32 %v5136_v38, %v5641_v23  ;;  %v5719_v23 = vld [vmem:[%s6032_s1] sm:$0x3f] }
0x19cf   :  { %v5694_v34 = vpop.permute.xlu0 %2224 }
0x19d0   :  { %4797 = vmatmul.mubr.msk.f32.vlgmr.msra.gmra.mrb[28].mxu1 %vm123_vm1, %v5694_v34 }
0x19d1   :  { %4982 = vmatpush3.bf16.msra.mxu1 %v5335_v5  ;;  %4810 = vmatprep.mubr.msk.f32.mxu1 %vm5258_vm2, %v5257_v3 }
0x19d2   :  { %4983 = vmatprep.subr.bf16.mxu1 %v5256_v0 }
0x19d4   :  { %4811 = vmatmul.mubr.msk.f32.vlgmr.msra.gmra.mrb[30].mxu1 %vm49_vm3, %v2472_v17 }
0x19d5   :  { %4985 = vmatpush3.bf16.msra.mxu1 %v5372_v26  ;;  %4822 = vmatprep.mubr.msk.f32.mxu1 %vm5258_vm2, %v5257_v3 }
0x19d6   :  { %4832 = vmatprep.subr.mxu1 %v5257_v3 }
0x1a2c   :  { %v2556_v40 = vpop.permute.xlu1 %2555 }
0x1a2d   :  { %v2558_v41 = vmul.f32 %v5136_v38, %v2556_v40 }
0x1a2f   :  { %2560 = vrot.lane.b32.xlu1 %v2558_v41, %s5260_s23 }
0x1aa1   :  { %v2561_v4 = vpop.permute.xlu1 %2560 }
0x1aa2   :  { %v5709_v42 = vadd.f32 %v2561_v4, %v2553_v14 }
0x1aa3   :  { %v2638_v44 = vpop.f32.mrb[28].mxu1 }
0x1aa4   :  { %5137 = vtanh.f32 %v5709_v42  ;;  %v4798_v25 = vpop.f32.mrb[29].mxu1 }
0x1aa7   :  { %v2836_v45 = vpop.f32.mrb[30].mxu1 }
0x1aa8   :  { %v4812_v30 = vpop.f32.mrb[31].mxu1 }
0x1aae   :  { %v5138_v47 = vpop.eup %5137 }
0x1aaf   :  { %2566 = vrot.lane.b32.xlu1 %v5138_v47, %s5261_s4 }
0x1b21   :  { %v2567_v48 = vpop.permute.xlu1 %2566 }
0x1b22   :  { %v2569_v50 = vmul.f32 %v5136_v38, %v2567_v48 }
0x1b24   :  { %2643 = vrot.lane.b32.xlu1 %v2569_v50, %s5262_s5 }
0x1b96   :  { %v2644_v51 = vpop.permute.xlu1 %2643 }
0x1b97   :  { %4804 = vmatmul.mubr.msk.f32.vlgmr.msra.gmra.mrb[28].mxu0 %vm49_vm3, %v2644_v51  ;;  %4823 = vmatmul.mubr.msk.f32.vlgmr.msra.gmra.mrb[32].mxu1 %vm49_vm3, %v2644_v51 }
0x1b98   :  { %4814 = vmatpush3.msk.msra.mxu0 %vm127_vm0, %v5719_v23  ;;  %4815 = vmatprep.mubr.msk.f32.mxu0 %vm5258_vm2, %v5257_v3 }
0x1b99   :  { %4986 = vmatprep.subr.bf16.mxu0 %v5256_v0  ;;  %4833 = vmatpush3.msk.msra.mxu1 %vm127_vm0, %v5732_v56 }
0x1b9a   :  { %4834 = vmatprep.mubr.msk.f32.mxu1 %vm5258_vm2, %v5257_v3  ;;  %4992 = vmatprep.subr.bf16.mxu1 %v5256_v0 }
0x1b9b   :  { %4816 = vmatmul.mubr.msk.f32.vlgmr.msra.gmra.mrb[30].mxu0 %vm123_vm1, %v4449_v53 }
0x1b9c   :  { %4988 = vmatpush3.bf16.msra.mxu0 %v5380_v29  ;;  %4829 = vmatprep.mubr.msk.f32.mxu0 %vm5258_vm2, %v5257_v3 }
0x1b9d   :  { %4989 = vmatprep.subr.bf16.mxu0 %v5256_v0 }
0x1c6a   :  { %v2713_v57 = vpop.f32.mrb[28].mxu0  ;;  %v3004_v60 = vpop.f32.mrb[32].mxu1 }
0x1c6b   :  { %v2714_v36 = vadd.f32 %v2713_v57, %v2638_v44  ;;  %v4805_v61 = vpop.f32.mrb[29].mxu0  ;;  %v4824_v62 = vpop.f32.mrb[33].mxu1 }
0x1c6d   :  { %v2717_v24 = vadd.f32 %v5464_v22, %v2714_v36 }
0x1c6e   :  { %v2909_v43 = vpop.f32.mrb[30].mxu0 }
0x1c6f   :  { %v2910_v9 = vadd.f32 %v2909_v43, %v2836_v45  ;;  %v4817_v6 = vpop.f32.mrb[31].mxu0  ;;  %v4447_v31 = vmul.f32 -1.442695, %v2717_v24 }
0x1c71   :  { %v2913_v8 = vadd.f32 %v5747_v7, %v2910_v9 }
0x1c73   :  { %5139 = vtanh.f32 %v2913_v8  ;;  %v4453_v12 = vmul.f32 -1.442695, %v2913_v8 }
0x1c75   :  { %5141 = vpow2.f32 %v4453_v12 }
0x1c7d   :  { %v5140_v11 = vpop.eup %5139 }
0x1c7e   :  { %2923 = vrot.lane.b32.xlu0 %v5140_v11, %s5259_s22 }
0x1c7f   :  { %v5142_v49 = vpop.eup %5141 }
0x1c80   :  { %v2917_v13 = vadd.f32 1.0, %v5142_v49 }
0x1c82   :  { %5143 = vrcp.f32 %v2917_v13 }
0x1c8c   :  { %v5144_v15 = vpop.eup %5143 }
0x1c8d   :  { %v2921_v17 = vmul.f32 %v5144_v15, %v5670_v1 }
0x1cf0   :  { %v2924_v16 = vpop.permute.xlu0 %2923 }
0x1cf1   :  { %v2926_v54 = vmul.f32 %v5144_v15, %v2924_v16 }
0x1cf3   :  { %2928 = vrot.lane.b32.xlu1 %v2926_v54, %s5260_s23 }
0x1d65   :  { %v2929_v19 = vpop.permute.xlu1 %2928 }
0x1d66   :  { %v5753_v20 = vadd.f32 %v2929_v19, %v2921_v17 }
0x1d68   :  { %5145 = vtanh.f32 %v5753_v20 }
0x1d69   :  { %5147 = vtanh.f32 %v2717_v24 }
0x1d6a   :  { %5149 = vpow2.f32 %v4447_v31 }
0x1d72   :  { %v5146_v63 = vpop.eup %5145 }
0x1d73   :  { %2934 = vrot.lane.b32.xlu0 %v5146_v63, %s5261_s4  ;;  %v5148_v28 = vpop.eup %5147 }
0x1d74   :  { %v5150_v32 = vpop.eup %5149 }
0x1d75   :  { %v2721_v10 = vadd.f32 1.0, %v5150_v32 }
0x1d77   :  { %2727 = vrot.lane.b32.xlu0 %v5148_v28, %s5263_s24  ;;  %5151 = vrcp.f32 %v2721_v10 }
0x1d81   :  { %v5152_v39 = vpop.eup %5151 }
0x1d82   :  { %v2725_v38 = vmul.f32 %v5152_v39, %v5684_v21  ;;  %v5778_v21 = vld [vmem:[%s6038_s6] ss:$0 sm:$0xff] }
0x1de5   :  { %v2935_v1 = vpop.permute.xlu0 %2934 }
0x1de6   :  { %v2937_v33 = vmul.f32 %v5144_v15, %v2935_v1 }
0x1de8   :  { %3009 = vrot.lane.b32.xlu1 %v2937_v33, %s5262_s5 }
0x1de9   :  { %v2728_v22 = vpop.permute.xlu0 %2727 }
0x1dea   :  { %v2730_v35 = vmul.f32 %v5152_v39, %v2728_v22 }
0x1dec   :  { %2732 = vrot.lane.b32.xlu0 %v2730_v35, %s5264_s25 }
0x1e5a   :  { %v3010_v37 = vpop.permute.xlu1 %3009 }
0x1e5b   :  { %4830 = vmatmul.mubr.msk.f32.vlgmr.msra.gmra.mrb[32].mxu0 %vm49_vm3, %v3010_v37 }
0x1e5c   :  { %4991 = vmatpush3.bf16.msra.mxu0 %v5429_v58  ;;  %4841 = vmatprep.mubr.msk.f32.mxu0 %vm5258_vm2, %v5257_v3 }
0x1e5d   :  { %4851 = vmatprep.subr.mxu0 %v5257_v3 }
0x1e5e   :  { %v2733_v40 = vpop.permute.xlu0 %2732 }
0x1e5f   :  { %v5767_v41 = vadd.f32 %v2733_v40, %v2725_v38 }
0x1e61   :  { %5153 = vtanh.f32 %v5767_v41 }
0x1e6b   :  { %v5154_v14 = vpop.eup %5153 }
0x1e6c   :  { %2738 = vrot.lane.b32.xlu0 %v5154_v14, %s5265_s26 }
0x1ede   :  { %v2739_v4 = vpop.permute.xlu0 %2738 }
0x1edf   :  { %v5771_v44 = vmul.f32 %v5152_v39, %v2739_v4 }
0x1ee1   :  { %2762 = vrot.lane.b32.xlu0 %v5771_v44, %s5266_s27 }
0x1f2e   :  { %v3079_v25 = vpop.f32.mrb[32].mxu0 }
0x1f2f   :  { %v3080_v45 = vadd.f32 %v3079_v25, %v3004_v60  ;;  %v4831_v30 = vpop.f32.mrb[33].mxu0  ;;  %v5831_v25 = vld [vmem:[%s6040_s9] ss:$0 sm:$0xff] }
0x1f31   :  { %v3083_v47 = vadd.f32 %v5778_v21, %v3080_v45 }
0x1f33   :  { %5155 = vtanh.f32 %v3083_v47  ;;  %v4456_v51 = vmul.f32 -1.442695, %v3083_v47 }
0x1f35   :  { %5157 = vpow2.f32 %v4456_v51 }
0x1f3d   :  { %v5156_v48 = vpop.eup %5155 }
0x1f3e   :  { %3093 = vrot.lane.b32.xlu1 %v5156_v48, %s5259_s22 }
0x1f3f   :  { %v5158_v53 = vpop.eup %5157 }
0x1f40   :  { %v3087_v57 = vadd.f32 1.0, %v5158_v53 }
0x1f42   :  { %5159 = vrcp.f32 %v3087_v57 }
0x1f4c   :  { %v5160_v60 = vpop.eup %5159 }
0x1f4d   :  { %v3091_v62 = vmul.f32 %v5160_v60, %v5709_v42  ;;  %v4462_v42 = vld [vmem:[%s6033_s0 + $0x30] sm:$0xff] }
0x1f53   :  { %v5782_v50 = vpop.permute.xlu0 %2762 }
0x1f54   :  { %4835 = vmatmul.mubr.msk.f32.vlgmr.msra.gmra.mrb[34].mxu1 %vm123_vm1, %v5782_v50 }
0x1f55   :  { %4994 = vmatpush3.bf16.msra.mxu1 %v5335_v5  ;;  %4848 = vmatprep.mubr.msk.f32.mxu1 %vm5258_vm2, %v5257_v3 }
0x1f56   :  { %4995 = vmatprep.subr.bf16.mxu1 %v5256_v0 }
0x1f58   :  { %4849 = vmatmul.mubr.msk.f32.vlgmr.msra.gmra.mrb[36].mxu1 %vm49_vm3, %v3010_v37 }
0x1f59   :  { %4997 = vmatpush3.bf16.msra.mxu1 %v5372_v26  ;;  %4860 = vmatprep.mubr.msk.f32.mxu1 %vm5258_vm2, %v5257_v3 }
0x1f5a   :  { %4870 = vmatprep.subr.mxu1 %v5257_v3 }
0x1fb0   :  { %v3094_v36 = vpop.permute.xlu1 %3093 }
0x1fb1   :  { %v3096_v61 = vmul.f32 %v5160_v60, %v3094_v36 }
0x1fb3   :  { %3098 = vrot.lane.b32.xlu1 %v3096_v61, %s5260_s23 }
0x2025   :  { %v3099_v43 = vpop.permute.xlu1 %3098 }
0x2026   :  { %v5797_v9 = vadd.f32 %v3099_v43, %v3091_v62 }
0x2027   :  { %v3176_v6 = vpop.f32.mrb[34].mxu1 }
0x2028   :  { %5161 = vtanh.f32 %v5797_v9  ;;  %v4836_v8 = vpop.f32.mrb[35].mxu1 }
0x202b   :  { %v3374_v11 = vpop.f32.mrb[36].mxu1 }
0x202c   :  { %v4850_v12 = vpop.f32.mrb[37].mxu1 }
0x2032   :  { %v5162_v49 = vpop.eup %5161 }
0x2033   :  { %3104 = vrot.lane.b32.xlu1 %v5162_v49, %s5261_s4 }
0x20a5   :  { %v3105_v13 = vpop.permute.xlu1 %3104 }
0x20a6   :  { %v3107_v15 = vmul.f32 %v5160_v60, %v3105_v13 }
0x20a8   :  { %3181 = vrot.lane.b32.xlu1 %v3107_v15, %s5262_s5 }
0x211a   :  { %v3182_v16 = vpop.permute.xlu1 %3181 }
0x211b   :  { %4842 = vmatmul.mubr.msk.f32.vlgmr.msra.gmra.mrb[34].mxu0 %vm49_vm3, %v3182_v16  ;;  %4861 = vmatmul.mubr.msk.f32.vlgmr.msra.gmra.mrb[38].mxu1 %vm49_vm3, %v3182_v16 }
0x211c   :  { %4852 = vmatpush3.msk.msra.mxu0 %vm127_vm0, %v5719_v23  ;;  %4853 = vmatprep.mubr.msk.f32.mxu0 %vm5258_vm2, %v5257_v3 }
0x211d   :  { %4998 = vmatprep.subr.bf16.mxu0 %v5256_v0  ;;  %4871 = vmatpush3.msk.msra.mxu1 %vm127_vm0, %v5732_v56 }
0x211e   :  { %4872 = vmatprep.mubr.msk.f32.mxu1 %vm5258_vm2, %v5257_v3  ;;  %5004 = vmatprep.subr.bf16.mxu1 %v5256_v0 }
0x211f   :  { %4854 = vmatmul.mubr.msk.f32.vlgmr.msra.gmra.mrb[36].mxu0 %vm123_vm1, %v4462_v42 }
0x2120   :  { %5000 = vmatpush3.bf16.msra.mxu0 %v5380_v29  ;;  %4867 = vmatprep.mubr.msk.f32.mxu0 %vm5258_vm2, %v5257_v3 }
0x2121   :  { %5001 = vmatprep.subr.bf16.mxu0 %v5256_v0 }
0x21ee   :  { %v3251_v54 = vpop.f32.mrb[34].mxu0  ;;  %v3542_v17 = vpop.f32.mrb[38].mxu1 }
0x21ef   :  { %v3252_v19 = vadd.f32 %v3251_v54, %v3176_v6  ;;  %v4843_v24 = vpop.f32.mrb[35].mxu0  ;;  %v4862_v63 = vpop.f32.mrb[39].mxu1 }
0x21f1   :  { %v3255_v45 = vadd.f32 %v5831_v25, %v3252_v19 }
0x21f2   :  { %v3447_v28 = vpop.f32.mrb[36].mxu0 }
0x21f3   :  { %v3448_v31 = vadd.f32 %v3447_v28, %v3374_v11  ;;  %v4855_v32 = vpop.f32.mrb[37].mxu0 }
0x21f5   :  { %v3451_v10 = vadd.f32 %v5747_v7, %v3448_v31 }
0x21f7   :  { %5163 = vtanh.f32 %v3451_v10  ;;  %v4466_v33 = vmul.f32 -1.442695, %v3451_v10 }
0x21f9   :  { %5165 = vpow2.f32 %v4466_v33 }
0x2201   :  { %v5164_v1 = vpop.eup %5163 }
0x2202   :  { %3461 = vrot.lane.b32.xlu0 %v5164_v1, %s5259_s22 }
0x2203   :  { %v5166_v39 = vpop.eup %5165 }
0x2204   :  { %v3455_v22 = vadd.f32 1.0, %v5166_v39 }
0x2206   :  { %5167 = vrcp.f32 %v3455_v22 }
0x2210   :  { %v5168_v35 = vpop.eup %5167 }
0x2211   :  { %v3459_v40 = vmul.f32 %v5168_v35, %v5753_v20  ;;  %v4460_v20 = vmul.f32 -1.442695, %v3255_v45 }
0x2274   :  { %v3462_v37 = vpop.permute.xlu0 %3461 }
0x2275   :  { %v3464_v38 = vmul.f32 %v5168_v35, %v3462_v37 }
0x2277   :  { %3466 = vrot.lane.b32.xlu1 %v3464_v38, %s5260_s23 }
0x22e9   :  { %v3467_v14 = vpop.permute.xlu1 %3466 }
0x22ea   :  { %v5826_v4 = vadd.f32 %v3467_v14, %v3459_v40 }
0x22ec   :  { %5169 = vtanh.f32 %v5826_v4 }
0x22ed   :  { %5171 = vtanh.f32 %v3255_v45 }
0x22ee   :  { %5173 = vpow2.f32 %v4460_v20 }
0x22f6   :  { %v5170_v30 = vpop.eup %5169 }
0x22f7   :  { %3472 = vrot.lane.b32.xlu0 %v5170_v30, %s5261_s4  ;;  %v5172_v47 = vpop.eup %5171 }
0x22f8   :  { %v5174_v48 = vpop.eup %5173 }
0x22f9   :  { %v3259_v51 = vadd.f32 1.0, %v5174_v48 }
0x22fb   :  { %3265 = vrot.lane.b32.xlu0 %v5172_v47, %s5263_s24  ;;  %5175 = vrcp.f32 %v3259_v51 }
0x2305   :  { %v5176_v60 = vpop.eup %5175 }
0x2306   :  { %v3263_v43 = vmul.f32 %v5176_v60, %v5767_v41 }
0x2369   :  { %v3473_v53 = vpop.permute.xlu0 %3472 }
0x236a   :  { %v3475_v57 = vmul.f32 %v5168_v35, %v3473_v53 }
0x236c   :  { %3547 = vrot.lane.b32.xlu1 %v3475_v57, %s5262_s5 }
0x236d   :  { %v3266_v36 = vpop.permute.xlu0 %3265 }
0x236e   :  { %v3268_v61 = vmul.f32 %v5176_v60, %v3266_v36 }
0x2370   :  { %3270 = vrot.lane.b32.xlu0 %v3268_v61, %s5264_s25 }
0x23de   :  { %v3548_v62 = vpop.permute.xlu1 %3547 }
0x23df   :  { %4868 = vmatmul.mubr.msk.f32.vlgmr.msra.gmra.mrb[38].mxu0 %vm49_vm3, %v3548_v62 }
0x23e0   :  { %5003 = vmatpush3.bf16.msra.mxu0 %v5429_v58  ;;  %4879 = vmatprep.mubr.msk.f32.mxu0 %vm5258_vm2, %v5257_v3 }
0x23e1   :  { %4889 = vmatprep.subr.mxu0 %v5257_v3 }
0x23e2   :  { %v3271_v6 = vpop.permute.xlu0 %3270 }
0x23e3   :  { %v5845_v8 = vadd.f32 %v3271_v6, %v3263_v43 }
0x23e5   :  { %5177 = vtanh.f32 %v5845_v8 }
0x23ef   :  { %v5178_v11 = vpop.eup %5177 }
0x23f0   :  { %3276 = vrot.lane.b32.xlu0 %v5178_v11, %s5265_s26 }
0x2462   :  { %v3277_v12 = vpop.permute.xlu0 %3276 }
0x2463   :  { %v5849_v49 = vmul.f32 %v5176_v60, %v3277_v12 }
0x2465   :  { %3300 = vrot.lane.b32.xlu0 %v5849_v49, %s5266_s27 }
0x24b2   :  { %v3617_v13 = vpop.f32.mrb[38].mxu0 }
0x24b3   :  { %v3618_v15 = vadd.f32 %v3617_v13, %v3542_v17  ;;  %v4869_v16 = vpop.f32.mrb[39].mxu0 }
0x24b5   :  { %v3621_v41 = vadd.f32 %v5778_v21, %v3618_v15 }
0x24b7   :  { %5179 = vtanh.f32 %v3621_v41  ;;  %v4469_v17 = vmul.f32 -1.442695, %v3621_v41 }
0x24b9   :  { %5181 = vpow2.f32 %v4469_v17 }
0x24c1   :  { %v5180_v42 = vpop.eup %5179 }
0x24c2   :  { %3631 = vrot.lane.b32.xlu1 %v5180_v42, %s5259_s22 }
0x24c3   :  { %v5182_v19 = vpop.eup %5181 }
0x24c4   :  { %v3625_v24 = vadd.f32 1.0, %v5182_v19 }
0x24c6   :  { %5183 = vrcp.f32 %v3625_v24 }
0x24d7   :  { %v5855_v54 = vpop.permute.xlu0 %3300 }
0x24d8   :  { %4873 = vmatmul.mubr.msk.f32.vlgmr.msra.gmra.mrb[40].mxu1 %vm123_vm1, %v5855_v54 }
0x24d9   :  { %5006 = vmatpush3.bf16.msra.mxu1 %v5335_v5  ;;  %4886 = vmatprep.mubr.msk.f32.mxu1 %vm5258_vm2, %v5257_v3  ;;  %v5184_v5 = vpop.eup %5183 }
0x24da   :  { %5007 = vmatprep.subr.bf16.mxu1 %v5256_v0  ;;  %v3629_v31 = vmul.f32 %v5184_v5, %v5797_v9  ;;  %v4475_v9 = vld [vmem:[%s6033_s0 + $0x38] sm:$0xff] }
0x24dc   :  { %4887 = vmatmul.mubr.msk.f32.vlgmr.msra.gmra.mrb[42].mxu1 %vm49_vm3, %v3548_v62 }
0x24dd   :  { %5009 = vmatpush3.bf16.msra.mxu1 %v5372_v26  ;;  %4898 = vmatprep.mubr.msk.f32.mxu1 %vm5258_vm2, %v5257_v3 }
0x24de   :  { %4908 = vmatprep.subr.mxu1 %v5257_v3 }
0x2534   :  { %v3632_v63 = vpop.permute.xlu1 %3631 }
0x2535   :  { %v3634_v28 = vmul.f32 %v5184_v5, %v3632_v63 }
0x2537   :  { %3636 = vrot.lane.b32.xlu1 %v3634_v28, %s5260_s23 }
0x25a9   :  { %v3637_v32 = vpop.permute.xlu1 %3636 }
0x25aa   :  { %v5870_v10 = vadd.f32 %v3637_v32, %v3629_v31 }
0x25ab   :  { %v3714_v26 = vpop.f32.mrb[40].mxu1 }
0x25ac   :  { %5185 = vtanh.f32 %v5870_v10  ;;  %v4874_v1 = vpop.f32.mrb[41].mxu1 }
0x25af   :  { %v3912_v33 = vpop.f32.mrb[42].mxu1 }
0x25b0   :  { %v4888_v39 = vpop.f32.mrb[43].mxu1 }
0x25b6   :  { %v5186_v22 = vpop.eup %5185 }
0x25b7   :  { %3642 = vrot.lane.b32.xlu1 %v5186_v22, %s5261_s4 }
0x2629   :  { %v3643_v35 = vpop.permute.xlu1 %3642 }
0x262a   :  { %v3645_v37 = vmul.f32 %v5184_v5, %v3643_v35 }
0x262c   :  { %3719 = vrot.lane.b32.xlu1 %v3645_v37, %s5262_s5 }
0x269e   :  { %v3720_v38 = vpop.permute.xlu1 %3719 }
0x269f   :  { %4880 = vmatmul.mubr.msk.f32.vlgmr.msra.gmra.mrb[40].mxu0 %vm49_vm3, %v3720_v38  ;;  %4899 = vmatmul.mubr.msk.f32.vlgmr.msra.gmra.mrb[44].mxu1 %vm49_vm3, %v3720_v38 }
0x26a0   :  { %4890 = vmatpush3.msk.msra.mxu0 %vm127_vm0, %v5719_v23  ;;  %4891 = vmatprep.mubr.msk.f32.mxu0 %vm5258_vm2, %v5257_v3 }
0x26a1   :  { %5010 = vmatprep.subr.bf16.mxu0 %v5256_v0  ;;  %4909 = vmatpush3.msk.msra.mxu1 %vm127_vm0, %v5732_v56 }
0x26a2   :  { %4910 = vmatprep.mubr.msk.f32.mxu1 %vm5258_vm2, %v5257_v3 }
0x26a3   :  { %4892 = vmatmul.mubr.msk.f32.vlgmr.msra.gmra.mrb[42].mxu0 %vm123_vm1, %v4475_v9 }
0x26a4   :  { %5012 = vmatpush3.bf16.msra.mxu0 %v5380_v29  ;;  %4905 = vmatprep.mubr.msk.f32.mxu0 %vm5258_vm2, %v5257_v3 }
0x26a5   :  { %5013 = vmatprep.subr.bf16.mxu0 %v5256_v0 }
0x2772   :  { %v3789_v23 = vpop.f32.mrb[40].mxu0  ;;  %v4080_v40 = vpop.f32.mrb[44].mxu1 }
0x2773   :  { %v3790_v14 = vadd.f32 %v3789_v23, %v3714_v26  ;;  %v4881_v45 = vpop.f32.mrb[41].mxu0  ;;  %v4900_v30 = vpop.f32.mrb[45].mxu1 }
0x2776   :  { %v3985_v47 = vpop.f32.mrb[42].mxu0 }
0x2777   :  { %v3986_v20 = vadd.f32 %v3985_v47, %v3912_v33  ;;  %v4893_v56 = vpop.f32.mrb[43].mxu0 }
0x2778   :  { %v590_v56 = vsel %vm589_vm4, %v5483_v46, -inf }
0x2779   :  { %v3989_v48 = vadd.f32 %v5747_v7, %v3986_v20  ;;  %v3793_v7 = vadd.f32 %v5831_v25, %v3790_v14 }
0x277b   :  { %5187 = vtanh.f32 %v3989_v48  ;;  %v4479_v29 = vmul.f32 -1.442695, %v3989_v48  ;;  %v4473_v12 = vmul.f32 -1.442695, %v3793_v7 }
0x277d   :  { %5189 = vpow2.f32 %v4479_v29 }
0x2785   :  { %v5188_v51 = vpop.eup %5187 }
0x2786   :  { %3999 = vrot.lane.b32.xlu0 %v5188_v51, %s5259_s22 }
0x2787   :  { %v5190_v53 = vpop.eup %5189 }
0x2788   :  { %v3993_v57 = vadd.f32 1.0, %v5190_v53 }
0x278a   :  { %5191 = vrcp.f32 %v3993_v57 }
0x2794   :  { %v5192_v0 = vpop.eup %5191 }
0x2795   :  { %v3997_v61 = vmul.f32 %v5192_v0, %v5826_v4 }
0x27f8   :  { %v4000_v60 = vpop.permute.xlu0 %3999 }
0x27f9   :  { %v4002_v36 = vmul.f32 %v5192_v0, %v4000_v60 }
0x27fb   :  { %4004 = vrot.lane.b32.xlu1 %v4002_v36, %s5260_s23 }
0x286d   :  { %v4005_v62 = vpop.permute.xlu1 %4004 }
0x286e   :  { %v4007_v43 = vadd.f32 %v4005_v62, %v3997_v61 }
0x2870   :  { %5193 = vtanh.f32 %v4007_v43 }
0x2871   :  { %5195 = vtanh.f32 %v3793_v7 }
0x2872   :  { %5197 = vpow2.f32 %v4473_v12 }
0x287a   :  { %v5194_v6 = vpop.eup %5193 }
0x287b   :  { %4010 = vrot.lane.b32.xlu0 %v5194_v6, %s5261_s4  ;;  %v5196_v11 = vpop.eup %5195 }
0x287c   :  { %v5198_v13 = vpop.eup %5197 }
0x287d   :  { %v3797_v15 = vadd.f32 1.0, %v5198_v13 }
0x287f   :  { %3803 = vrot.lane.b32.xlu0 %v5196_v11, %s5263_s24  ;;  %5199 = vrcp.f32 %v3797_v15 }
0x2889   :  { %v5200_v4 = vpop.eup %5199 }
0x288a   :  { %v3801_v24 = vmul.f32 %v5200_v4, %v5845_v8 }
0x28ed   :  { %v4011_v16 = vpop.permute.xlu0 %4010 }
0x28ee   :  { %v4013_v41 = vmul.f32 %v5192_v0, %v4011_v16 }
0x28f0   :  { %4085 = vrot.lane.b32.xlu1 %v4013_v41, %s5262_s5 }
0x28f1   :  { %v3804_v42 = vpop.permute.xlu0 %3803 }
0x28f2   :  { %v3806_v17 = vmul.f32 %v5200_v4, %v3804_v42 }
0x28f4   :  { %3808 = vrot.lane.b32.xlu0 %v3806_v17, %s5264_s25 }
0x2962   :  { %v4086_v19 = vpop.permute.xlu1 %4085 }
0x2963   :  { %4906 = vmatmul.mubr.msk.f32.vlgmr.msra.gmra.mrb[44].mxu0 %vm49_vm3, %v4086_v19 }
0x2964   :  { %5015 = vmatpush3.bf16.msra.mxu0 %v5429_v58  ;;  %4917 = vmatprep.mubr.msk.f32.mxu0 %vm5258_vm2, %v5257_v3 }
0x2966   :  { %v3809_v5 = vpop.permute.xlu0 %3808 }
0x2967   :  { %v5908_v63 = vadd.f32 %v3809_v5, %v3801_v24 }
0x2969   :  { %5201 = vtanh.f32 %v5908_v63 }
0x2973   :  { %v5202_v28 = vpop.eup %5201 }
0x2974   :  { %3814 = vrot.lane.b32.xlu0 %v5202_v28, %s5265_s26 }
0x29e6   :  { %v3815_v31 = vpop.permute.xlu0 %3814 }
0x29e7   :  { %v5912_v32 = vmul.f32 %v5200_v4, %v3815_v31 }
0x29e9   :  { %3838 = vrot.lane.b32.xlu0 %v5912_v32, %s5266_s27 }
0x2a36   :  { %v4155_v58 = vpop.f32.mrb[44].mxu0 }
0x2a37   :  { %v4156_v26 = vadd.f32 %v4155_v58, %v4080_v40  ;;  %v4907_v1 = vpop.f32.mrb[45].mxu0 }
0x2a39   :  { %v4159_v3 = vadd.f32 %v5778_v21, %v4156_v26 }
0x2a3b   :  { %5203 = vtanh.f32 %v4159_v3  ;;  %v4482_v39 = vmul.f32 -1.442695, %v4159_v3 }
0x2a3d   :  { %5205 = vpow2.f32 %v4482_v39  ;;  %v1666_v39 = vsel %vm589_vm4, %v5620_v55, -inf }
0x2a45   :  { %v5204_v8 = vpop.eup %5203 }
0x2a46   :  { %4169 = vrot.lane.b32.xlu1 %v5204_v8, %s5259_s22 }
0x2a47   :  { %v5206_v22 = vpop.eup %5205 }
0x2a48   :  { %v4163_v35 = vadd.f32 1.0, %v5206_v22  ;;  %v2742_v22 = vsel %vm589_vm4, %v5771_v44, -inf }
0x2a4a   :  { %5207 = vrcp.f32 %v4163_v35  ;;  %v3280_v35 = vsel %vm589_vm4, %v5849_v49, -inf }
0x2a54   :  { %v5208_v37 = vpop.eup %5207 }
0x2a55   :  { %v4167_v21 = vmul.f32 %v5208_v37, %v5870_v10 }
0x2a5b   :  { %v5918_v33 = vpop.permute.xlu0 %3838 }
0x2a5c   :  { %4911 = vmatmul.mubr.msk.f32.vlgmr.msra.gmra.mrb[46].mxu1 %vm123_vm1, %v5918_v33 }
0x2ab8   :  { %v4170_v38 = vpop.permute.xlu1 %4169 }
0x2ab9   :  { %v4172_v9 = vmul.f32 %v5208_v37, %v4170_v38 }
0x2abb   :  { %4174 = vrot.lane.b32.xlu1 %v4172_v9, %s5260_s23  ;;  %v3818_v9 = vsel %vm589_vm4, %v5912_v32, -inf }
0x2b2d   :  { %v4175_v23 = vpop.permute.xlu1 %4174 }
0x2b2e   :  { %v4177_v40 = vadd.f32 %v4175_v23, %v4167_v21 }
0x2b2f   :  { %v4252_v14 = vpop.f32.mrb[46].mxu1 }
0x2b30   :  { %5209 = vtanh.f32 %v4177_v40  ;;  %v4912_v45 = vpop.f32.mrb[47].mxu1 }
0x2b3a   :  { %v5210_v30 = vpop.eup %5209 }
0x2b3b   :  { %4180 = vrot.lane.b32.xlu1 %v5210_v30, %s5261_s4 }
0x2bad   :  { %v4181_v47 = vpop.permute.xlu1 %4180 }
0x2bae   :  { %v4183_v20 = vmul.f32 %v5208_v37, %v4181_v47 }
0x2bb0   :  { %4257 = vrot.lane.b32.xlu1 %v4183_v20, %s5262_s5 }
0x2bd4   :  { %591 = vmax.xlane.f32.xlu1 %v590_v56 }
0x2c22   :  { %v4258_v48 = vpop.permute.xlu1 %4257 }
0x2c23   :  { %4918 = vmatmul.mubr.msk.f32.vlgmr.msra.gmra.mrb[46].mxu0 %vm49_vm3, %v4258_v48 }
0x2c61   :  { %v592_v36 = vpop.xlane.xlu1 %591 }
0x2c62   :  { %v593_v62 = vsub.f32 %v5483_v46, %v592_v36  ;;  %v1128_v46 = vsel %vm589_vm4, %v5552_v59, -inf }
0x2c64   :  { %v594_v43 = vmul.f32 1.442695, %v593_v62 }
0x2cf6   :  { %v4327_v10 = vpop.f32.mrb[46].mxu0 }
0x2cf7   :  { %v4328_v51 = vadd.f32 %v4327_v10, %v4252_v14  ;;  %v4919_v29 = vpop.f32.mrb[47].mxu0 }
0x2cf9   :  { %v4331_v53 = vadd.f32 %v5831_v25, %v4328_v51 }
0x2cfb   :  { %5211 = vtanh.f32 %v4331_v53  ;;  %v4486_v0 = vmul.f32 -1.442695, %v4331_v53 }
0x2cfd   :  { %5213 = vpow2.f32 %v4486_v0 }
0x2d05   :  { %v5212_v57 = vpop.eup %5211 }
0x2d06   :  { %4341 = vrot.lane.b32.xlu0 %v5212_v57, %s5263_s24 }
0x2d07   :  { %v5214_v60 = vpop.eup %5213 }
0x2d08   :  { %v4335_v61 = vadd.f32 1.0, %v5214_v60 }
0x2d0a   :  { %5215 = vrcp.f32 %v4335_v61 }
0x2d0b   :  { %5217 = vpow2.f32 %v594_v43 }
0x2d14   :  { %v5216_v7 = vpop.eup %5215 }
0x2d15   :  { %v5218_v25 = vpop.eup %5217  ;;  %v4339_v42 = vmul.f32 %v5216_v7, %v5908_v63 }
0x2d78   :  { %v4342_v6 = vpop.permute.xlu0 %4341 }
0x2d79   :  { %v4344_v11 = vmul.f32 %v5216_v7, %v4342_v6 }
0x2d7b   :  { %4346 = vrot.lane.b32.xlu0 %v4344_v11, %s5264_s25 }
0x2d7f   :  { %597 = vrot.lane.b32.xlu0 %v5218_v25, %s5266_s27 }
0x2ded   :  { %v4347_v12 = vpop.permute.xlu0 %4346 }
0x2dee   :  { %v4349_v19 = vadd.f32 %v4347_v12, %v4339_v42 }
0x2df1   :  { %v598_v13 = vpop.permute.xlu0 %597 }
0x2df2   :  { %v601_v15 = vsel %vm600_vm5, %v598_v13, 0.0 }
0x2df3   :  { %602 = vadd.xlane.f32.xlu0 %v601_v15 }
0x2df7   :  { %1129 = vmax.xlane.f32.xlu0 %v1128_v46 }
0x2e80   :  { %v603_v16 = vpop.xlane.xlu0 %602 }
0x2e81   :  { %5219 = vrcp.f32 %v603_v16 }
0x2e84   :  { %v1130_v41 = vpop.xlane.xlu0 %1129 }
0x2e85   :  { %v1131_v4 = vsub.f32 %v5552_v59, %v1130_v41 }
0x2e87   :  { %v1132_v17 = vmul.f32 1.442695, %v1131_v4 }
0x2e89   :  { %5221 = vpow2.f32 %v1132_v17 }
0x2e8a   :  { %5223 = vtanh.f32 %v4349_v19 }
0x2e8b   :  { %v5220_v24 = vpop.eup %5219 }
0x2e8c   :  { %v605_v5 = vmul.f32 %v5220_v24, %v5218_v25 }
0x2e8e   :  { %607 = vrot.lane.b32.xlu1 %v605_v5, %s5266_s27 }
0x2e93   :  { %v5222_v28 = vpop.eup %5221 }
0x2e94   :  { %1135 = vrot.lane.b32.xlu0 %v5222_v28, %s5266_s27  ;;  %v5224_v31 = vpop.eup %5223 }
0x2e98   :  { %4352 = vrot.lane.b32.xlu0 %v5224_v31, %s5265_s26 }
0x2f00   :  { %v608_v58 = vpop.permute.xlu1 %607 }
0x2f01   :  { %v614_v59 = vsel %vm600_vm5, %v608_v58, %v5490_v52  ;;  %v2204_v52 = vsel %vm589_vm4, %v5688_v27, -inf }
0x2f02   :  { %615 = vst.msk [vmem:[%s6041_s10] sm:$0xff] %vm123_vm1, %v614_v59 }
0x2f06   :  { %v1136_v63 = vpop.permute.xlu0 %1135 }
0x2f07   :  { %v1138_v26 = vsel %vm600_vm5, %v1136_v63, 0.0 }
0x2f08   :  { %1139 = vadd.xlane.f32.xlu1 %v1138_v26 }
0x2f0a   :  { %v4353_v37 = vpop.permute.xlu0 %4352 }
0x2f0b   :  { %v5958_v38 = vmul.f32 %v5216_v7, %v4353_v37 }
0x2f0d   :  { %v4356_v21 = vsel %vm589_vm4, %v5958_v38, -inf }
0x2f95   :  { %v1140_v1 = vpop.xlane.xlu1 %1139 }
0x2f96   :  { %5225 = vrcp.f32 %v1140_v1 }
0x2fa0   :  { %v5226_v3 = vpop.eup %5225 }
0x2fa1   :  { %v1142_v8 = vmul.f32 %v5226_v3, %v5222_v28 }
0x2fa3   :  { %1144 = vrot.lane.b32.xlu0 %v1142_v8, %s5266_s27 }
0x2fc2   :  { %1667 = vmax.xlane.f32.xlu0 %v1666_v39 }
0x2fc6   :  { %2205 = vmax.xlane.f32.xlu0 %v2204_v52 }
0x2fca   :  { %2743 = vmax.xlane.f32.xlu0 %v2742_v22 }
0x2fce   :  { %3281 = vmax.xlane.f32.xlu0 %v3280_v35 }
0x2fd2   :  { %3819 = vmax.xlane.f32.xlu0 %v3818_v9 }
0x2fd6   :  { %4357 = vmax.xlane.f32.xlu0 %v4356_v21 }
0x3015   :  { %v1145_v23 = vpop.permute.xlu0 %1144 }
0x3016   :  { %v1151_v40 = vsel %vm600_vm5, %v1145_v23, %v5558_v2 }
0x3017   :  { %4409 = vst.msk [vmem:[%s6041_s10 + $0x8] sm:$0xff] %vm123_vm1, %v1151_v40 }
0x304f   :  { %v1668_v14 = vpop.xlane.xlu0 %1667 }
0x3050   :  { %v1669_v45 = vsub.f32 %v5620_v55, %v1668_v14 }
0x3052   :  { %v1670_v30 = vmul.f32 1.442695, %v1669_v45 }
0x3053   :  { %v2206_v20 = vpop.xlane.xlu0 %2205 }
0x3054   :  { %5227 = vpow2.f32 %v1670_v30  ;;  %v2207_v56 = vsub.f32 %v5688_v27, %v2206_v20 }
0x3056   :  { %v2208_v2 = vmul.f32 1.442695, %v2207_v56 }
0x3057   :  { %v2744_v27 = vpop.xlane.xlu0 %2743 }
0x3058   :  { %5229 = vpow2.f32 %v2208_v2  ;;  %v2745_v7 = vsub.f32 %v5771_v44, %v2744_v27 }
0x305a   :  { %v2746_v11 = vmul.f32 1.442695, %v2745_v7 }
0x305b   :  { %v3282_v60 = vpop.xlane.xlu0 %3281 }
0x305c   :  { %v3283_v42 = vsub.f32 %v5849_v49, %v3282_v60 }
0x305e   :  { %v5228_v47 = vpop.eup %5227 }
0x305f   :  { %1673 = vrot.lane.b32.xlu1 %v5228_v47, %s5266_s27  ;;  %v3820_v36 = vpop.xlane.xlu0 %3819 }
0x3060   :  { %v3821_v44 = vsub.f32 %v5912_v32, %v3820_v36 }
0x3062   :  { %v5230_v51 = vpop.eup %5229  ;;  %v3822_v41 = vmul.f32 1.442695, %v3821_v44 }
0x3063   :  { %v4358_v61 = vpop.xlane.xlu0 %4357 }
0x3064   :  { %v4359_v19 = vsub.f32 %v5958_v38, %v4358_v61 }
0x3066   :  { %v4360_v24 = vmul.f32 1.442695, %v4359_v19 }
0x30d1   :  { %v1674_v48 = vpop.permute.xlu1 %1673 }
0x30d2   :  { %v1676_v10 = vsel %vm600_vm5, %v1674_v48, 0.0 }
0x30d3   :  { %1677 = vadd.xlane.f32.xlu1 %v1676_v10 }
0x30e4   :  { %2211 = vrot.lane.b32.xlu1 %v5230_v51, %s5266_s27 }
0x3160   :  { %v1678_v29 = vpop.xlane.xlu1 %1677 }
0x3161   :  { %5231 = vrcp.f32 %v1678_v29 }
0x3164   :  { %v2212_v57 = vpop.permute.xlu1 %2211 }
0x3165   :  { %v2214_v0 = vsel %vm600_vm5, %v2212_v57, 0.0 }
0x316b   :  { %v5232_v55 = vpop.eup %5231 }
0x316c   :  { %v1680_v53 = vmul.f32 %v5232_v55, %v5228_v47 }
0x316e   :  { %1682 = vrot.lane.b32.xlu0 %v1680_v53, %s5266_s27 }
0x318d   :  { %2215 = vadd.xlane.f32.xlu0 %v2214_v0 }
0x31e0   :  { %v1683_v62 = vpop.permute.xlu0 %1682 }
0x31e1   :  { %v1689_v43 = vsel %vm600_vm5, %v1683_v62, %v5626_v18 }
0x31e2   :  { %4422 = vst.msk [vmem:[%s6041_s10 + $0x10] sm:$0xff] %vm123_vm1, %v1689_v43 }
0x321a   :  { %v2216_v6 = vpop.xlane.xlu0 %2215 }
0x321b   :  { %5233 = vrcp.f32 %v2216_v6 }
0x321c   :  { %5235 = vpow2.f32 %v2746_v11 }
0x321d   :  { %5237 = vpow2.f32 %v3822_v41 }
0x3225   :  { %v5234_v25 = vpop.eup %5233 }
0x3226   :  { %v2218_v12 = vmul.f32 %v5234_v25, %v5230_v51  ;;  %v5236_v13 = vpop.eup %5235 }
0x3227   :  { %v5238_v4 = vpop.eup %5237 }
0x3228   :  { %2220 = vrot.lane.b32.xlu1 %v2218_v12, %s5266_s27 }
0x322c   :  { %2749 = vrot.lane.b32.xlu1 %v5236_v13, %s5266_s27 }
0x329a   :  { %v2221_v15 = vpop.permute.xlu1 %2220 }
0x329b   :  { %v2227_v18 = vsel %vm600_vm5, %v2221_v15, %v5694_v34  ;;  %v3284_v34 = vmul.f32 1.442695, %v3283_v42 }
0x329c   :  { %4435 = vst.msk [vmem:[%s6041_s10 + $0x18] sm:$0xff] %vm123_vm1, %v2227_v18 }
0x329e   :  { %v2750_v46 = vpop.permute.xlu1 %2749 }
0x329f   :  { %v2752_v16 = vsel %vm600_vm5, %v2750_v46, 0.0 }
0x32a0   :  { %2753 = vadd.xlane.f32.xlu1 %v2752_v16 }
0x32b1   :  { %3825 = vrot.lane.b32.xlu1 %v5238_v4, %s5266_s27 }
0x332d   :  { %v2754_v17 = vpop.xlane.xlu1 %2753 }
0x332e   :  { %5239 = vrcp.f32 %v2754_v17 }
0x332f   :  { %5241 = vpow2.f32 %v3284_v34 }
0x3330   :  { %5243 = vpow2.f32 %v4360_v24 }
0x3331   :  { %v3826_v39 = vpop.permute.xlu1 %3825 }
0x3332   :  { %v3828_v52 = vsel %vm600_vm5, %v3826_v39, 0.0 }
0x3338   :  { %v5240_v5 = vpop.eup %5239 }
0x3339   :  { %v2756_v32 = vmul.f32 %v5240_v5, %v5236_v13  ;;  %v5242_v28 = vpop.eup %5241 }
0x333a   :  { %v5244_v31 = vpop.eup %5243 }
0x333b   :  { %2758 = vrot.lane.b32.xlu0 %v2756_v32, %s5266_s27 }
0x333f   :  { %3287 = vrot.lane.b32.xlu0 %v5242_v28, %s5266_s27 }
0x3343   :  { %4363 = vrot.lane.b32.xlu0 %v5244_v31, %s5266_s27 }
0x33ad   :  { %v2759_v58 = vpop.permute.xlu0 %2758 }
0x33ae   :  { %v2765_v49 = vsel %vm600_vm5, %v2759_v58, %v5782_v50 }
0x33af   :  { %4448 = vst.msk [vmem:[%s6041_s10 + $0x20] sm:$0xff] %vm123_vm1, %v2765_v49 }
0x33b1   :  { %v3288_v59 = vpop.permute.xlu0 %3287 }
0x33b2   :  { %v3290_v63 = vsel %vm600_vm5, %v3288_v59, 0.0 }
0x33b3   :  { %3291 = vadd.xlane.f32.xlu0 %v3290_v63 }
0x33b5   :  { %v4364_v26 = vpop.permute.xlu0 %4363 }
0x33b6   :  { %v4366_v50 = vsel %vm600_vm5, %v4364_v26, 0.0 }
0x3440   :  { %v3292_v1 = vpop.xlane.xlu0 %3291 }
0x3441   :  { %5245 = vrcp.f32 %v3292_v1 }
0x344b   :  { %v5246_v3 = vpop.eup %5245 }
0x344c   :  { %v3294_v8 = vmul.f32 %v5246_v3, %v5242_v28 }
0x344e   :  { %3296 = vrot.lane.b32.xlu1 %v3294_v8, %s5266_s27 }
0x3472   :  { %3829 = vadd.xlane.f32.xlu1 %v3828_v52 }
0x3476   :  { %4367 = vadd.xlane.f32.xlu1 %v4366_v50 }
0x3487   :  { %4376 = vrot.lane.b32.xlu1 %v5958_v38, %s5266_s27 }
0x34c0   :  { %v3297_v22 = vpop.permute.xlu1 %3296 }
0x34c1   :  { %v3303_v35 = vsel %vm600_vm5, %v3297_v22, %v5855_v54 }
0x34c2   :  { %4461 = vst.msk [vmem:[%s6041_s10 + $0x28] sm:$0xff] %vm123_vm1, %v3303_v35 }
0x34ff   :  { %v3830_v37 = vpop.xlane.xlu1 %3829 }
0x3500   :  { %5247 = vrcp.f32 %v3830_v37 }
0x3503   :  { %v4368_v9 = vpop.xlane.xlu1 %4367 }
0x3504   :  { %5249 = vrcp.f32 %v4368_v9 }
0x3507   :  { %v4377_v45 = vpop.permute.xlu1 %4376 }
0x350a   :  { %v5248_v21 = vpop.eup %5247 }
0x350b   :  { %v3832_v23 = vmul.f32 %v5248_v21, %v5238_v4 }
0x350d   :  { %3834 = vrot.lane.b32.xlu0 %v3832_v23, %s5266_s27 }
0x350e   :  { %v5250_v40 = vpop.eup %5249 }
0x350f   :  { %v4370_v14 = vmul.f32 %v5250_v40, %v5244_v31 }
0x3511   :  { %4372 = vrot.lane.b32.xlu0 %v4370_v14, %s5266_s27 }
0x357f   :  { %v3835_v38 = vpop.permute.xlu0 %3834 }
0x3580   :  { %v3841_v54 = vsel %vm600_vm5, %v3835_v38, %v5918_v33 }
0x3581   :  { %4474 = vst.msk [vmem:[%s6041_s10 + $0x30] sm:$0xff] %vm123_vm1, %v3841_v54 }
0x3583   :  { %v4373_v30 = vpop.permute.xlu0 %4372 }
0x3584   :  { %v4379_v47 = vsel %vm600_vm5, %v4373_v30, %v4377_v45 }
0x3585   :  { %4487 = vst.msk [vmem:[%s6041_s10 + $0x38] sm:$0xff] %vm123_vm1, %v4379_v47 }

</bundles_post_ra>
